<compile_context>
chip_gen: v7x
topology: tpu7x:2x2x1
jax: 0.10.0
libtpu: 0.0.40
codegen_flags: <defaults>
</compile_context>

<pallas_src>
import jax
import jax.numpy as jnp
from jax.experimental import pallas as pl
from jax.experimental.pallas import tpu as pltpu


# ----------------------------- Pallas kernels ------------------------------

def conv_pool_kernel(x0_ref, x1_ref, x2_ref, x3_ref, w_ref, b_ref, o_ref):
    """Fused conv (im2col matmul) + bias + ReLU + 2x2/stride-2 max-pool.

    x{0..3}_ref : (tm, K) bf16 patch matrices, one per pool-window offset.
    w_ref       : (K, N)  bf16 weights (resident across the M grid).
    b_ref       : (1, N)  f32 bias.
    o_ref       : (tm, N) bf16 pooled activation.
    """
    w = w_ref[...]
    y0 = jnp.dot(x0_ref[...], w, preferred_element_type=jnp.float32)
    y1 = jnp.dot(x1_ref[...], w, preferred_element_type=jnp.float32)
    y2 = jnp.dot(x2_ref[...], w, preferred_element_type=jnp.float32)
    y3 = jnp.dot(x3_ref[...], w, preferred_element_type=jnp.float32)
    # max(relu(y+b)) == relu(max(y)+b) since +b and relu are monotonic.
    y = jnp.maximum(jnp.maximum(y0, y1), jnp.maximum(y2, y3))
    y = jnp.maximum(y + b_ref[...], 0.0)           # f32 epilogue
    o_ref[...] = y.astype(o_ref.dtype)             # single cast at the store


def fc_tail_kernel(x_ref, w1_ref, b1_ref, w2_ref, b2_ref, o_ref):
    """Fused fc1 + ReLU + fc2 + log_softmax (all in one call)."""
    h = jnp.dot(x_ref[...], w1_ref[...], preferred_element_type=jnp.float32)
    h = jnp.maximum(h + b1_ref[...], 0.0)
    logits = jnp.dot(h.astype(w2_ref.dtype), w2_ref[...],
                     preferred_element_type=jnp.float32) + b2_ref[...]
    m = jnp.max(logits, axis=-1, keepdims=True)
    s = logits - m
    lse = jnp.log(jnp.sum(jnp.exp(s), axis=-1, keepdims=True))
    o_ref[...] = s - lse


# ----------------------------- Pallas wrappers ------------------------------

def _row_tile(m, tm=256, single_block_max=512):
    # Small problems: one full block (full-dim block shapes are always legal).
    # Large problems: 256-row tiles (multiple of 8, VMEM bounded, fits v7x).
    return m if m <= single_block_max else tm


def conv_relu_pool(x_nhwc, w, b, kh, kw):
    """x_nhwc: (B, H, W, C) -> pooled relu(conv(x)) of shape (B, Hp, Wp, N)."""
    B, H, W, C = x_nhwc.shape
    Ho, Wo = H - kh + 1, W - kw + 1
    Hp, Wp = Ho // 2, Wo // 2
    xb = x_nhwc.astype(jnp.bfloat16)

    # Glue: stride-2 im2col, one patch matrix per 2x2 pool offset.
    # Rows ordered (b, ph, pw); patch columns ordered (kh, kw, cin).
    mats = []
    for di in range(2):
        for dj in range(2):
            cols = []
            for i in range(kh):
                for j in range(kw):
                    cols.append(
                        xb[:, di + i:di + i + 2 * Hp:2,
                               dj + j:dj + j + 2 * Wp:2, :])
            mats.append(jnp.concatenate(cols, axis=-1)
                        .reshape(B * Hp * Wp, kh * kw * C))

    M, K = mats[0].shape
    N = w.shape[1]
    tm = _row_tile(M)
    x_spec = pl.BlockSpec((tm, K), lambda i: (i, 0))

    out = pl.pallas_call(
        conv_pool_kernel,
        out_shape=jax.ShapeDtypeStruct((M, N), jnp.bfloat16),
        grid=(pl.cdiv(M, tm),),
        in_specs=[x_spec, x_spec, x_spec, x_spec,
                  pl.BlockSpec((K, N), lambda i: (0, 0)),
                  pl.BlockSpec((1, N), lambda i: (0, 0))],
        out_specs=pl.BlockSpec((tm, N), lambda i: (i, 0)),
        compiler_params=pltpu.CompilerParams(
            dimension_semantics=("parallel",)),
    )(*mats, w.astype(jnp.bfloat16), b.reshape(1, N).astype(jnp.float32))

    return out.reshape(B, Hp, Wp, N)


def fc_tail(x, w1, b1, w2, b2):
    """x: (B, 1024) -> log_softmax(relu(x@w1+b1) @ w2 + b2), shape (B, 10)."""
    M, K = x.shape
    N1 = w1.shape[1]
    N2 = w2.shape[1]
    tm = _row_tile(M)
    return pl.pallas_call(
        fc_tail_kernel,
        out_shape=jax.ShapeDtypeStruct((M, N2), jnp.float32),
        grid=(pl.cdiv(M, tm),),
        in_specs=[pl.BlockSpec((tm, K), lambda i: (i, 0)),
                  pl.BlockSpec((K, N1), lambda i: (0, 0)),
                  pl.BlockSpec((1, N1), lambda i: (0, 0)),
                  pl.BlockSpec((N1, N2), lambda i: (0, 0)),
                  pl.BlockSpec((1, N2), lambda i: (0, 0))],
        out_specs=pl.BlockSpec((tm, N2), lambda i: (i, 0)),
        compiler_params=pltpu.CompilerParams(
            dimension_semantics=("parallel",)),
    )(x.astype(jnp.bfloat16),
      w1.astype(jnp.bfloat16), b1.reshape(1, N1).astype(jnp.float32),
      w2.astype(jnp.bfloat16), b2.reshape(1, N2).astype(jnp.float32))


# ------------------------------ full forward --------------------------------

def mnist_net_forward(x_nchw, params):
    # x_nchw: (B, 1, 28, 28) float32 — same convention as the PyTorch module.
    x = jnp.transpose(x_nchw, (0, 2, 3, 1))                  # NHWC (B,28,28,1)
    B = x.shape[0]

    y1 = conv_relu_pool(x, params["w1"], params["b1"], 5, 5)   # (B,12,12,32)
    y2 = conv_relu_pool(y1, params["w2"], params["b2"], 5, 5)  # (B, 4, 4,64)

    flat = y2.reshape(B, 4 * 4 * 64)                           # (B, 1024)
    return fc_tail(flat, params["wf1"], params["bf1"],
                   params["wf2"], params["bf2"])               # (B, 10)


def init_params(key):
    ks = jax.random.split(key, 8)
    # conv weights generated in (KH, KW, Cin, Cout) order and reshaped to the
    # im2col matmul matrix (KH*KW*Cin, Cout) — matches the patch column order.
    w1 = (jax.random.normal(ks[0], (5, 5, 1, 32), jnp.float32) * 0.1
          ).reshape(25, 32)
    b1 = jax.random.normal(ks[1], (32,), jnp.float32) * 0.1
    w2 = (jax.random.normal(ks[2], (5, 5, 32, 64), jnp.float32) * 0.05
          ).reshape(800, 64)
    b2 = jax.random.normal(ks[3], (64,), jnp.float32) * 0.05
    wf1 = jax.random.normal(ks[4], (1024, 512), jnp.float32) * 0.02
    bf1 = jax.random.normal(ks[5], (512,), jnp.float32) * 0.02
    wf2 = jax.random.normal(ks[6], (512, 10), jnp.float32) * 0.05
    bf2 = jax.random.normal(ks[7], (10,), jnp.float32) * 0.05
    return dict(w1=w1, b1=b1, w2=w2, b2=b2,
                wf1=wf1, bf1=bf1, wf2=wf2, bf2=bf2)


if __name__ == "__main__":
    key = jax.random.PRNGKey(0)
    pkey, xkey = jax.random.split(key)
    params = init_params(pkey)

    # Batch of 2; the module's fc1 (4*4*64) hardcodes 28x28 spatial input.
    x = jax.random.normal(xkey, (2, 1, 28, 28), jnp.float32)

    fwd = jax.jit(mnist_net_forward)
    out = fwd(x, params)
    out = jax.block_until_ready(out)

    assert out.shape == (2, 10), out.shape
    assert bool(jnp.all(jnp.isfinite(out)))
    # log_softmax rows should exponentiate-and-sum to ~1 (normalised in f32).
    row_sums = jnp.sum(jnp.exp(out), axis=1)
    assert bool(jnp.all(jnp.abs(row_sums - 1.0) < 1e-4)), row_sums
    print("KERNEL_OK")
</pallas_src>

<mosaic_0001>
module attributes {stable_mosaic.version = 11 : i64} {
  func.func @conv_pool_kernel(%arg0: i32, %arg1: memref<288x25xbf16, #tpu.memory_space<vmem>>, %arg2: memref<288x25xbf16, #tpu.memory_space<vmem>>, %arg3: memref<288x25xbf16, #tpu.memory_space<vmem>>, %arg4: memref<288x25xbf16, #tpu.memory_space<vmem>>, %arg5: memref<25x32xbf16, #tpu.memory_space<vmem>>, %arg6: memref<1x32xf32, #tpu.memory_space<vmem>>, %arg7: memref<288x32xbf16, #tpu.memory_space<vmem>>) attributes {dimension_semantics = [#tpu.dimension_semantics<parallel>], iteration_bounds = array<i64: 1>, scalar_prefetch = 0 : i64, scratch_operands = 0 : i64, tpu.core_type = #tpu.core_type<tc>, window_params = [{transform_indices = @transform_0, window_bounds = array<i64: 288, 25>}, {transform_indices = @transform_1, window_bounds = array<i64: 288, 25>}, {transform_indices = @transform_2, window_bounds = array<i64: 288, 25>}, {transform_indices = @transform_3, window_bounds = array<i64: 288, 25>}, {pipeline_mode = #tpu.pipeline_mode<synchronous>, transform_indices = @transform_4, window_bounds = array<i64: 25, 32>}, {pipeline_mode = #tpu.pipeline_mode<synchronous>, transform_indices = @transform_5, window_bounds = array<i64: 1, 32>}, {transform_indices = @transform_6, window_bounds = array<i64: 288, 32>}]} {
    %c0 = arith.constant 0 : index
    %c0_0 = arith.constant 0 : index
    %0 = vector.load %arg5[%c0, %c0_0] : memref<25x32xbf16, #tpu.memory_space<vmem>>, vector<25x32xbf16>
    %c0_1 = arith.constant 0 : index
    %c0_2 = arith.constant 0 : index
    %1 = vector.load %arg1[%c0_1, %c0_2] : memref<288x25xbf16, #tpu.memory_space<vmem>>, vector<288x25xbf16>
    %cst = arith.constant dense<0.000000e+00> : vector<288x32xf32>
    %2 = tpu.matmul %1, %0, %cst {dimension_numbers = #tpu.dot_dimension_numbers<[1], [0], [0], [1], [0, 0, 1, 1], [], []>} : vector<288x25xbf16>, vector<25x32xbf16>, vector<288x32xf32> -> vector<288x32xf32>
    %c0_3 = arith.constant 0 : index
    %c0_4 = arith.constant 0 : index
    %3 = vector.load %arg2[%c0_3, %c0_4] : memref<288x25xbf16, #tpu.memory_space<vmem>>, vector<288x25xbf16>
    %cst_5 = arith.constant dense<0.000000e+00> : vector<288x32xf32>
    %4 = tpu.matmul %3, %0, %cst_5 {dimension_numbers = #tpu.dot_dimension_numbers<[1], [0], [0], [1], [0, 0, 1, 1], [], []>} : vector<288x25xbf16>, vector<25x32xbf16>, vector<288x32xf32> -> vector<288x32xf32>
    %c0_6 = arith.constant 0 : index
    %c0_7 = arith.constant 0 : index
    %5 = vector.load %arg3[%c0_6, %c0_7] : memref<288x25xbf16, #tpu.memory_space<vmem>>, vector<288x25xbf16>
    %cst_8 = arith.constant dense<0.000000e+00> : vector<288x32xf32>
    %6 = tpu.matmul %5, %0, %cst_8 {dimension_numbers = #tpu.dot_dimension_numbers<[1], [0], [0], [1], [0, 0, 1, 1], [], []>} : vector<288x25xbf16>, vector<25x32xbf16>, vector<288x32xf32> -> vector<288x32xf32>
    %c0_9 = arith.constant 0 : index
    %c0_10 = arith.constant 0 : index
    %7 = vector.load %arg4[%c0_9, %c0_10] : memref<288x25xbf16, #tpu.memory_space<vmem>>, vector<288x25xbf16>
    %cst_11 = arith.constant dense<0.000000e+00> : vector<288x32xf32>
    %8 = tpu.matmul %7, %0, %cst_11 {dimension_numbers = #tpu.dot_dimension_numbers<[1], [0], [0], [1], [0, 0, 1, 1], [], []>} : vector<288x25xbf16>, vector<25x32xbf16>, vector<288x32xf32> -> vector<288x32xf32>
    %9 = arith.maximumf %2, %4 : vector<288x32xf32>
    %10 = arith.maximumf %6, %8 : vector<288x32xf32>
    %11 = arith.maximumf %9, %10 : vector<288x32xf32>
    %c0_12 = arith.constant 0 : index
    %c0_13 = arith.constant 0 : index
    %12 = vector.load %arg6[%c0_12, %c0_13] : memref<1x32xf32, #tpu.memory_space<vmem>>, vector<1x32xf32>
    %13 = vector.broadcast %12 : vector<1x32xf32> to vector<288x32xf32>
    %14 = arith.addf %11, %13 : vector<288x32xf32>
    %cst_14 = arith.constant 0.000000e+00 : f32
    %15 = vector.broadcast %cst_14 : f32 to vector<288x32xf32>
    %16 = arith.maximumf %14, %15 : vector<288x32xf32>
    %17 = arith.truncf %16 : vector<288x32xf32> to vector<288x32xbf16>
    %c0_15 = arith.constant 0 : index
    %c0_16 = arith.constant 0 : index
    %18 = vector.load %arg7[%c0_15, %c0_16] : memref<288x32xbf16, #tpu.memory_space<vmem>>, vector<288x32xbf16>
    tpu.vector_store %arg7[%c0_15, %c0_16], %17 {strides = array<i32>} : memref<288x32xbf16, #tpu.memory_space<vmem>>, vector<288x32xbf16>,
    return
  }
  func.func @transform_0(%arg0: i32) -> (i32, i32) {
    %c0_i32 = arith.constant 0 : i32
    %c0_i32_0 = arith.constant 0 : i32
    return %arg0, %c0_i32 : i32, i32
  }
  func.func @transform_1(%arg0: i32) -> (i32, i32) {
    %c0_i32 = arith.constant 0 : i32
    %c0_i32_0 = arith.constant 0 : i32
    return %arg0, %c0_i32 : i32, i32
  }
  func.func @transform_2(%arg0: i32) -> (i32, i32) {
    %c0_i32 = arith.constant 0 : i32
    %c0_i32_0 = arith.constant 0 : i32
    return %arg0, %c0_i32 : i32, i32
  }
  func.func @transform_3(%arg0: i32) -> (i32, i32) {
    %c0_i32 = arith.constant 0 : i32
    %c0_i32_0 = arith.constant 0 : i32
    return %arg0, %c0_i32 : i32, i32
  }
  func.func @transform_4(%arg0: i32) -> (i32, i32) {
    %c0_i32 = arith.constant 0 : i32
    %c0_i32_0 = arith.constant 0 : i32
    %c0_i32_1 = arith.constant 0 : i32
    return %c0_i32, %c0_i32_0 : i32, i32
  }
  func.func @transform_5(%arg0: i32) -> (i32, i32) {
    %c0_i32 = arith.constant 0 : i32
    %c0_i32_0 = arith.constant 0 : i32
    %c0_i32_1 = arith.constant 0 : i32
    return %c0_i32, %c0_i32_0 : i32, i32
  }
  func.func @transform_6(%arg0: i32) -> (i32, i32) {
    %c0_i32 = arith.constant 0 : i32
    %c0_i32_0 = arith.constant 0 : i32
    return %arg0, %c0_i32 : i32, i32
  }
}

module attributes {stable_mosaic.version = 11 : i64} {
  func.func @conv_pool_kernel(%arg0: i32, %arg1: memref<32x800xbf16, #tpu.memory_space<vmem>>, %arg2: memref<32x800xbf16, #tpu.memory_space<vmem>>, %arg3: memref<32x800xbf16, #tpu.memory_space<vmem>>, %arg4: memref<32x800xbf16, #tpu.memory_space<vmem>>, %arg5: memref<800x64xbf16, #tpu.memory_space<vmem>>, %arg6: memref<1x64xf32, #tpu.memory_space<vmem>>, %arg7: memref<32x64xbf16, #tpu.memory_space<vmem>>) attributes {dimension_semantics = [#tpu.dimension_semantics<parallel>], iteration_bounds = array<i64: 1>, scalar_prefetch = 0 : i64, scratch_operands = 0 : i64, tpu.core_type = #tpu.core_type<tc>, window_params = [{transform_indices = @transform_0, window_bounds = array<i64: 32, 800>}, {transform_indices = @transform_1, window_bounds = array<i64: 32, 800>}, {transform_indices = @transform_2, window_bounds = array<i64: 32, 800>}, {transform_indices = @transform_3, window_bounds = array<i64: 32, 800>}, {pipeline_mode = #tpu.pipeline_mode<synchronous>, transform_indices = @transform_4, window_bounds = array<i64: 800, 64>}, {pipeline_mode = #tpu.pipeline_mode<synchronous>, transform_indices = @transform_5, window_bounds = array<i64: 1, 64>}, {transform_indices = @transform_6, window_bounds = array<i64: 32, 64>}]} {
    %c0 = arith.constant 0 : index
    %c0_0 = arith.constant 0 : index
    %0 = vector.load %arg5[%c0, %c0_0] : memref<800x64xbf16, #tpu.memory_space<vmem>>, vector<800x64xbf16>
    %c0_1 = arith.constant 0 : index
    %c0_2 = arith.constant 0 : index
    %1 = vector.load %arg1[%c0_1, %c0_2] : memref<32x800xbf16, #tpu.memory_space<vmem>>, vector<32x800xbf16>
    %cst = arith.constant dense<0.000000e+00> : vector<32x64xf32>
    %2 = tpu.matmul %1, %0, %cst {dimension_numbers = #tpu.dot_dimension_numbers<[1], [0], [0], [1], [0, 0, 1, 1], [], []>} : vector<32x800xbf16>, vector<800x64xbf16>, vector<32x64xf32> -> vector<32x64xf32>
    %c0_3 = arith.constant 0 : index
    %c0_4 = arith.constant 0 : index
    %3 = vector.load %arg2[%c0_3, %c0_4] : memref<32x800xbf16, #tpu.memory_space<vmem>>, vector<32x800xbf16>
    %cst_5 = arith.constant dense<0.000000e+00> : vector<32x64xf32>
    %4 = tpu.matmul %3, %0, %cst_5 {dimension_numbers = #tpu.dot_dimension_numbers<[1], [0], [0], [1], [0, 0, 1, 1], [], []>} : vector<32x800xbf16>, vector<800x64xbf16>, vector<32x64xf32> -> vector<32x64xf32>
    %c0_6 = arith.constant 0 : index
    %c0_7 = arith.constant 0 : index
    %5 = vector.load %arg3[%c0_6, %c0_7] : memref<32x800xbf16, #tpu.memory_space<vmem>>, vector<32x800xbf16>
    %cst_8 = arith.constant dense<0.000000e+00> : vector<32x64xf32>
    %6 = tpu.matmul %5, %0, %cst_8 {dimension_numbers = #tpu.dot_dimension_numbers<[1], [0], [0], [1], [0, 0, 1, 1], [], []>} : vector<32x800xbf16>, vector<800x64xbf16>, vector<32x64xf32> -> vector<32x64xf32>
    %c0_9 = arith.constant 0 : index
    %c0_10 = arith.constant 0 : index
    %7 = vector.load %arg4[%c0_9, %c0_10] : memref<32x800xbf16, #tpu.memory_space<vmem>>, vector<32x800xbf16>
    %cst_11 = arith.constant dense<0.000000e+00> : vector<32x64xf32>
    %8 = tpu.matmul %7, %0, %cst_11 {dimension_numbers = #tpu.dot_dimension_numbers<[1], [0], [0], [1], [0, 0, 1, 1], [], []>} : vector<32x800xbf16>, vector<800x64xbf16>, vector<32x64xf32> -> vector<32x64xf32>
    %9 = arith.maximumf %2, %4 : vector<32x64xf32>
    %10 = arith.maximumf %6, %8 : vector<32x64xf32>
    %11 = arith.maximumf %9, %10 : vector<32x64xf32>
    %c0_12 = arith.constant 0 : index
    %c0_13 = arith.constant 0 : index
    %12 = vector.load %arg6[%c0_12, %c0_13] : memref<1x64xf32, #tpu.memory_space<vmem>>, vector<1x64xf32>
    %13 = vector.broadcast %12 : vector<1x64xf32> to vector<32x64xf32>
    %14 = arith.addf %11, %13 : vector<32x64xf32>
    %cst_14 = arith.constant 0.000000e+00 : f32
    %15 = vector.broadcast %cst_14 : f32 to vector<32x64xf32>
    %16 = arith.maximumf %14, %15 : vector<32x64xf32>
    %17 = arith.truncf %16 : vector<32x64xf32> to vector<32x64xbf16>
    %c0_15 = arith.constant 0 : index
    %c0_16 = arith.constant 0 : index
    %18 = vector.load %arg7[%c0_15, %c0_16] : memref<32x64xbf16, #tpu.memory_space<vmem>>, vector<32x64xbf16>
    tpu.vector_store %arg7[%c0_15, %c0_16], %17 {strides = array<i32>} : memref<32x64xbf16, #tpu.memory_space<vmem>>, vector<32x64xbf16>,
    return
  }
  func.func @transform_0(%arg0: i32) -> (i32, i32) {
    %c0_i32 = arith.constant 0 : i32
    %c0_i32_0 = arith.constant 0 : i32
    return %arg0, %c0_i32 : i32, i32
  }
  func.func @transform_1(%arg0: i32) -> (i32, i32) {
    %c0_i32 = arith.constant 0 : i32
    %c0_i32_0 = arith.constant 0 : i32
    return %arg0, %c0_i32 : i32, i32
  }
  func.func @transform_2(%arg0: i32) -> (i32, i32) {
    %c0_i32 = arith.constant 0 : i32
    %c0_i32_0 = arith.constant 0 : i32
    return %arg0, %c0_i32 : i32, i32
  }
  func.func @transform_3(%arg0: i32) -> (i32, i32) {
    %c0_i32 = arith.constant 0 : i32
    %c0_i32_0 = arith.constant 0 : i32
    return %arg0, %c0_i32 : i32, i32
  }
  func.func @transform_4(%arg0: i32) -> (i32, i32) {
    %c0_i32 = arith.constant 0 : i32
    %c0_i32_0 = arith.constant 0 : i32
    %c0_i32_1 = arith.constant 0 : i32
    return %c0_i32, %c0_i32_0 : i32, i32
  }
  func.func @transform_5(%arg0: i32) -> (i32, i32) {
    %c0_i32 = arith.constant 0 : i32
    %c0_i32_0 = arith.constant 0 : i32
    %c0_i32_1 = arith.constant 0 : i32
    return %c0_i32, %c0_i32_0 : i32, i32
  }
  func.func @transform_6(%arg0: i32) -> (i32, i32) {
    %c0_i32 = arith.constant 0 : i32
    %c0_i32_0 = arith.constant 0 : i32
    return %arg0, %c0_i32 : i32, i32
  }
}

module attributes {stable_mosaic.version = 11 : i64} {
  func.func @fc_tail_kernel(%arg0: i32, %arg1: memref<2x1024xbf16, #tpu.memory_space<vmem>>, %arg2: memref<1024x512xbf16, #tpu.memory_space<vmem>>, %arg3: memref<1x512xf32, #tpu.memory_space<vmem>>, %arg4: memref<512x10xbf16, #tpu.memory_space<vmem>>, %arg5: memref<1x10xf32, #tpu.memory_space<vmem>>, %arg6: memref<2x10xf32, #tpu.memory_space<vmem>>) attributes {dimension_semantics = [#tpu.dimension_semantics<parallel>], iteration_bounds = array<i64: 1>, scalar_prefetch = 0 : i64, scratch_operands = 0 : i64, tpu.core_type = #tpu.core_type<tc>, window_params = [{transform_indices = @transform_0, window_bounds = array<i64: 2, 1024>}, {pipeline_mode = #tpu.pipeline_mode<synchronous>, transform_indices = @transform_1, window_bounds = array<i64: 1024, 512>}, {pipeline_mode = #tpu.pipeline_mode<synchronous>, transform_indices = @transform_2, window_bounds = array<i64: 1, 512>}, {pipeline_mode = #tpu.pipeline_mode<synchronous>, transform_indices = @transform_3, window_bounds = array<i64: 512, 10>}, {pipeline_mode = #tpu.pipeline_mode<synchronous>, transform_indices = @transform_4, window_bounds = array<i64: 1, 10>}, {transform_indices = @transform_5, window_bounds = array<i64: 2, 10>}]} {
    %c0 = arith.constant 0 : index
    %c0_0 = arith.constant 0 : index
    %0 = vector.load %arg1[%c0, %c0_0] : memref<2x1024xbf16, #tpu.memory_space<vmem>>, vector<2x1024xbf16>
    %c0_1 = arith.constant 0 : index
    %c0_2 = arith.constant 0 : index
    %1 = vector.load %arg2[%c0_1, %c0_2] : memref<1024x512xbf16, #tpu.memory_space<vmem>>, vector<1024x512xbf16>
    %cst = arith.constant dense<0.000000e+00> : vector<2x512xf32>
    %2 = tpu.matmul %0, %1, %cst {dimension_numbers = #tpu.dot_dimension_numbers<[1], [0], [0], [1], [0, 0, 1, 1], [], []>} : vector<2x1024xbf16>, vector<1024x512xbf16>, vector<2x512xf32> -> vector<2x512xf32>
    %c0_3 = arith.constant 0 : index
    %c0_4 = arith.constant 0 : index
    %3 = vector.load %arg3[%c0_3, %c0_4] : memref<1x512xf32, #tpu.memory_space<vmem>>, vector<1x512xf32>
    %4 = vector.broadcast %3 : vector<1x512xf32> to vector<2x512xf32>
    %5 = arith.addf %2, %4 : vector<2x512xf32>
    %cst_5 = arith.constant 0.000000e+00 : f32
    %6 = vector.broadcast %cst_5 : f32 to vector<2x512xf32>
    %7 = arith.maximumf %5, %6 : vector<2x512xf32>
    %8 = arith.truncf %7 : vector<2x512xf32> to vector<2x512xbf16>
    %c0_6 = arith.constant 0 : index
    %c0_7 = arith.constant 0 : index
    %9 = vector.load %arg4[%c0_6, %c0_7] : memref<512x10xbf16, #tpu.memory_space<vmem>>, vector<512x10xbf16>
    %cst_8 = arith.constant dense<0.000000e+00> : vector<2x10xf32>
    %10 = tpu.matmul %8, %9, %cst_8 {dimension_numbers = #tpu.dot_dimension_numbers<[1], [0], [0], [1], [0, 0, 1, 1], [], []>} : vector<2x512xbf16>, vector<512x10xbf16>, vector<2x10xf32> -> vector<2x10xf32>
    %c0_9 = arith.constant 0 : index
    %c0_10 = arith.constant 0 : index
    %11 = vector.load %arg5[%c0_9, %c0_10] : memref<1x10xf32, #tpu.memory_space<vmem>>, vector<1x10xf32>
    %12 = vector.broadcast %11 : vector<1x10xf32> to vector<2x10xf32>
    %13 = arith.addf %10, %12 : vector<2x10xf32>
    %cst_11 = arith.constant dense<0xFF800000> : vector<2xf32>
    %14 = vector.multi_reduction <maximumf>, %13, %cst_11 [1] : vector<2x10xf32> to vector<2xf32>
    %15 = vector.shape_cast %14 : vector<2xf32> to vector<2x1xf32>
    %16 = vector.broadcast %15 : vector<2x1xf32> to vector<2x10xf32>
    %17 = arith.subf %13, %16 : vector<2x10xf32>
    %18 = math.exp %17 : vector<2x10xf32>
    %cst_12 = arith.constant dense<0.000000e+00> : vector<2xf32>
    %19 = vector.multi_reduction <add>, %18, %cst_12 [1] : vector<2x10xf32> to vector<2xf32>
    %20 = vector.shape_cast %19 : vector<2xf32> to vector<2x1xf32>
    %21 = math.log %20 : vector<2x1xf32>
    %22 = vector.broadcast %21 : vector<2x1xf32> to vector<2x10xf32>
    %23 = arith.subf %17, %22 : vector<2x10xf32>
    %c0_13 = arith.constant 0 : index
    %c0_14 = arith.constant 0 : index
    %24 = vector.load %arg6[%c0_13, %c0_14] : memref<2x10xf32, #tpu.memory_space<vmem>>, vector<2x10xf32>
    tpu.vector_store %arg6[%c0_13, %c0_14], %23 {strides = array<i32>} : memref<2x10xf32, #tpu.memory_space<vmem>>, vector<2x10xf32>,
    return
  }
  func.func @transform_0(%arg0: i32) -> (i32, i32) {
    %c0_i32 = arith.constant 0 : i32
    %c0_i32_0 = arith.constant 0 : i32
    return %arg0, %c0_i32 : i32, i32
  }
  func.func @transform_1(%arg0: i32) -> (i32, i32) {
    %c0_i32 = arith.constant 0 : i32
    %c0_i32_0 = arith.constant 0 : i32
    %c0_i32_1 = arith.constant 0 : i32
    return %c0_i32, %c0_i32_0 : i32, i32
  }
  func.func @transform_2(%arg0: i32) -> (i32, i32) {
    %c0_i32 = arith.constant 0 : i32
    %c0_i32_0 = arith.constant 0 : i32
    %c0_i32_1 = arith.constant 0 : i32
    return %c0_i32, %c0_i32_0 : i32, i32
  }
  func.func @transform_3(%arg0: i32) -> (i32, i32) {
    %c0_i32 = arith.constant 0 : i32
    %c0_i32_0 = arith.constant 0 : i32
    %c0_i32_1 = arith.constant 0 : i32
    return %c0_i32, %c0_i32_0 : i32, i32
  }
  func.func @transform_4(%arg0: i32) -> (i32, i32) {
    %c0_i32 = arith.constant 0 : i32
    %c0_i32_0 = arith.constant 0 : i32
    %c0_i32_1 = arith.constant 0 : i32
    return %c0_i32, %c0_i32_0 : i32, i32
  }
  func.func @transform_5(%arg0: i32) -> (i32, i32) {
    %c0_i32 = arith.constant 0 : i32
    %c0_i32_0 = arith.constant 0 : i32
    return %arg0, %c0_i32 : i32, i32
  }
}

</mosaic_0001>

<bundles_post_ra>
// kernel: mnist_net_forward.3
= control target key start
LH: loop header
LB: loop body
LE: loop exit
PB: predicated region body
PF: predicated region fallthrough
CT: control target
= control target key end

     0   :  { %vm220_vm0 = vcmask 1043456   ;;  %vm221_vm1 = vcmask 1044480   ;;  %vm165_vm2 = vcmask 203776   ;;  %v2381_v1 = vmov 65535   ;;  %s3220_s4 = inlined_call_operand.vmem [shape: bf16[25,32], index: 4, kind: input, shape index: {}]   ;;  %s3221_s0 = inlined_call_operand.vmem [shape: bf16[288,25], index: 0, kind: input, shape index: {}]   ;;  %s3222_s1 = inlined_call_operand.vmem [shape: bf16[288,25], index: 1, kind: input, shape index: {}]   ;;  %s3223_s2 = inlined_call_operand.vmem [shape: bf16[288,25], index: 2, kind: input, shape index: {}]   ;;  %s3224_s3 = inlined_call_operand.vmem [shape: bf16[288,25], index: 3, kind: input, shape index: {}]   ;;  %s3225_s5 = inlined_call_operand.vmem [shape: f32[1,32], index: 5, kind: input, shape index: {}]   ;;  %s3226_s6 = inlined_call_operand.vmem [shape: bf16[288,32], index: 6, kind: output, shape index: {}]  }
   0x1   :  { %v2307_v0 = vld [vmem:[%s3220_s4] sm:$0xff]   ;;  %v222_v2 = vsel %vm220_vm0, 4294967295, %v2381_v1  ;;  %v2308_v3 = vld [vmem:[%s3220_s4 + $0x8] sm:$0x1f]   ;;  %v2313_v10 = vld [vmem:[%s3221_s0 + $0x10] sm:$0xff]   ;;  %vm1806_vm3 = vcmask 257024  }
   0x2   :  { %2146 = vmatprep.subr.bf16.mxu0 %v2307_v0  ;;  %2186 = vmatprep.subr.bf16.mxu1 %v2307_v0  ;;  %v223_v4 = vsel %vm221_vm1, %v222_v2, 0  ;;  %v2309_v5 = vld [vmem:[%s3221_s0] sm:$0xff]   ;;  %v2311_v8 = vld [vmem:[%s3221_s0 + $0x8] sm:$0xff]   ;;  %v2314_v11 = vld [vmem:[%s3222_s1 + $0x10] sm:$0xff]  }
   0x3   :  { %2147 = vmatpush3.bf16.msra.mxu0 %v2307_v0  ;;  %2187 = vmatpush3.bf16.msra.mxu1 %v2307_v0  ;;  %v225_v6 = vand.u32 %v2308_v3, %v223_v4  ;;  %v2310_v7 = vld [vmem:[%s3222_s1] sm:$0xff]   ;;  %v2312_v9 = vld [vmem:[%s3222_s1 + $0x8] sm:$0xff]   ;;  %v2315_v12 = vld [vmem:[%s3221_s0 + $0x18] sm:$0xff]  }
   0x4   :  { %2150 = vmatprep.mubr.msk.bf16.mxu0 %vm165_vm2, %v2309_v5  ;;  %2190 = vmatprep.mubr.msk.bf16.mxu1 %vm165_vm2, %v2310_v7  ;;  %v2316_v13 = vld [vmem:[%s3222_s1 + $0x18] sm:$0xff]   ;;  %v2317_v14 = vld [vmem:[%s3221_s0 + $0x20] sm:$0xff]   ;;  %v2319_v16 = vld [vmem:[%s3221_s0 + $0x28] sm:$0xff]  }
   0x5   :  { %2148 = vmatprep.subr.bf16.mxu0 %v225_v6  ;;  %2188 = vmatprep.subr.bf16.mxu1 %v225_v6  ;;  %v2318_v15 = vld [vmem:[%s3222_s1 + $0x20] sm:$0xff]   ;;  %v2320_v17 = vld [vmem:[%s3222_s1 + $0x28] sm:$0xff]   ;;  %v2321_v18 = vld [vmem:[%s3221_s0 + $0x30] sm:$0xff]  }
   0x6   :  { %v2322_v19 = vld [vmem:[%s3222_s1 + $0x30] sm:$0xff]   ;;  %v2323_v20 = vld [vmem:[%s3221_s0 + $0x38] sm:$0xff]   ;;  %v2325_v22 = vld [vmem:[%s3221_s0 + $0x40] sm:$0xff]  }
   0x7   :  { %2149 = vmatpush3.bf16.msra.mxu0 %v225_v6  ;;  %2189 = vmatpush3.bf16.msra.mxu1 %v225_v6  ;;  %v2324_v21 = vld [vmem:[%s3222_s1 + $0x38] sm:$0xff]   ;;  %v2326_v23 = vld [vmem:[%s3222_s1 + $0x40] sm:$0xff]   ;;  %v2327_v24 = vld [vmem:[%s3221_s0 + $0x48] sm:$0xff]  }
   0x8   :  { %2226 = vmatprep.subr.bf16.mxu0 %v2307_v0  ;;  %2266 = vmatprep.subr.bf16.mxu1 %v2307_v0  ;;  %v2328_v25 = vld [vmem:[%s3222_s1 + $0x48] sm:$0xff]   ;;  %v2329_v26 = vld [vmem:[%s3221_s0 + $0x50] sm:$0xff]   ;;  %v2331_v28 = vld [vmem:[%s3221_s0 + $0x58] sm:$0xff]  }
   0x9   :  { %v2330_v27 = vld [vmem:[%s3222_s1 + $0x50] sm:$0xff]   ;;  %v2332_v29 = vld [vmem:[%s3222_s1 + $0x58] sm:$0xff]   ;;  %v2333_v30 = vld [vmem:[%s3221_s0 + $0x60] sm:$0xff]  }
   0xa   :  { %2151 = vmatmul.mubr.msk.bf16.vlgmr.msra.gmra.mrb[0].mxu0 %vm165_vm2, %v2311_v8  ;;  %2191 = vmatmul.mubr.msk.bf16.vlgmr.msra.gmra.mrb[0].mxu1 %vm165_vm2, %v2312_v9  ;;  %v2334_v31 = vld [vmem:[%s3222_s1 + $0x60] sm:$0xff]   ;;  %v2335_v32 = vld [vmem:[%s3221_s0 + $0x68] sm:$0xff]   ;;  %v2337_v34 = vld [vmem:[%s3221_s0 + $0x70] sm:$0xff]  }
   0xb   :  { %2227 = vmatpush3.bf16.msra.mxu0 %v2307_v0  ;;  %2267 = vmatpush3.bf16.msra.mxu1 %v2307_v0  ;;  %v2336_v33 = vld [vmem:[%s3222_s1 + $0x68] sm:$0xff]   ;;  %v2338_v35 = vld [vmem:[%s3222_s1 + $0x70] sm:$0xff]   ;;  %v2339_v36 = vld [vmem:[%s3221_s0 + $0x78] sm:$0xff]  }
   0xc   :  { %2154 = vmatprep.mubr.msk.bf16.mxu0 %vm165_vm2, %v2313_v10  ;;  %2194 = vmatprep.mubr.msk.bf16.mxu1 %vm165_vm2, %v2314_v11  ;;  %v2340_v37 = vld [vmem:[%s3222_s1 + $0x78] sm:$0xff]   ;;  %v2341_v38 = vld [vmem:[%s3221_s0 + $0x80] sm:$0xff]   ;;  %v2343_v40 = vld [vmem:[%s3221_s0 + $0x88] sm:$0xff]  }
   0xd   :  { %2228 = vmatprep.subr.bf16.mxu0 %v225_v6  ;;  %2268 = vmatprep.subr.bf16.mxu1 %v225_v6  ;;  %v2342_v39 = vld [vmem:[%s3222_s1 + $0x80] sm:$0xff]   ;;  %v2344_v41 = vld [vmem:[%s3222_s1 + $0x88] sm:$0xff]   ;;  %v2349_v46 = vld [vmem:[%s3223_s2 + $0x10] sm:$0xff]  }
   0xe   :  { %v2345_v42 = vld [vmem:[%s3223_s2] sm:$0xff]   ;;  %v2347_v44 = vld [vmem:[%s3223_s2 + $0x8] sm:$0xff]   ;;  %v2350_v47 = vld [vmem:[%s3224_s3 + $0x10] sm:$0xff]  }
   0xf   :  { %2229 = vmatpush3.bf16.msra.mxu0 %v225_v6  ;;  %2269 = vmatpush3.bf16.msra.mxu1 %v225_v6  ;;  %v2346_v43 = vld [vmem:[%s3224_s3] sm:$0xff]   ;;  %v2348_v45 = vld [vmem:[%s3224_s3 + $0x8] sm:$0xff]   ;;  %v2351_v48 = vld [vmem:[%s3223_s2 + $0x18] sm:$0xff]  }
  0x10   :  { %v2352_v49 = vld [vmem:[%s3224_s3 + $0x18] sm:$0xff]   ;;  %v2353_v50 = vld [vmem:[%s3223_s2 + $0x20] sm:$0xff]   ;;  %v2355_v52 = vld [vmem:[%s3223_s2 + $0x28] sm:$0xff]  }
  0x11   :  { %v2354_v51 = vld [vmem:[%s3224_s3 + $0x20] sm:$0xff]   ;;  %v2356_v53 = vld [vmem:[%s3224_s3 + $0x28] sm:$0xff]   ;;  %v2357_v54 = vld [vmem:[%s3223_s2 + $0x30] sm:$0xff]  }
  0x12   :  { %2155 = vmatmul.mubr.msk.bf16.gmra.mrb[4].mxu0 %vm165_vm2, %v2315_v12  ;;  %2195 = vmatmul.mubr.msk.bf16.gmra.mrb[4].mxu1 %vm165_vm2, %v2316_v13  ;;  %v2358_v55 = vld [vmem:[%s3224_s3 + $0x30] sm:$0xff]   ;;  %v2359_v56 = vld [vmem:[%s3223_s2 + $0x38] sm:$0xff]   ;;  %v2361_v58 = vld [vmem:[%s3223_s2 + $0x40] sm:$0xff]  }
  0x13   :  { %2158 = vmatprep.mubr.msk.bf16.mxu0 %vm165_vm2, %v2317_v14  ;;  %2198 = vmatprep.mubr.msk.bf16.mxu1 %vm165_vm2, %v2318_v15  ;;  %v2360_v57 = vld [vmem:[%s3224_s3 + $0x38] sm:$0xff]   ;;  %v2362_v59 = vld [vmem:[%s3224_s3 + $0x40] sm:$0xff]   ;;  %v2363_v60 = vld [vmem:[%s3223_s2 + $0x48] sm:$0xff]  }
  0x14   :  { %v2364_v61 = vld [vmem:[%s3224_s3 + $0x48] sm:$0xff]   ;;  %v2365_v62 = vld [vmem:[%s3223_s2 + $0x50] sm:$0xff]   ;;  %v2367_v0 = vld [vmem:[%s3223_s2 + $0x58] sm:$0xff]  }
  0x15   :  { %v2366_v63 = vld [vmem:[%s3224_s3 + $0x50] sm:$0xff]   ;;  %v2368_v1 = vld [vmem:[%s3224_s3 + $0x58] sm:$0xff]   ;;  %v2369_v2 = vld [vmem:[%s3223_s2 + $0x60] sm:$0xff]  }
  0x16   :  { %v2370_v3 = vld [vmem:[%s3224_s3 + $0x60] sm:$0xff]   ;;  %v2371_v4 = vld [vmem:[%s3223_s2 + $0x68] sm:$0xff]   ;;  %v2373_v6 = vld [vmem:[%s3223_s2 + $0x70] sm:$0xff]  }
  0x17   :  { %v2372_v5 = vld [vmem:[%s3224_s3 + $0x68] sm:$0xff]   ;;  %v2374_v7 = vld [vmem:[%s3224_s3 + $0x70] sm:$0xff]   ;;  %v2375_v8 = vld [vmem:[%s3223_s2 + $0x78] sm:$0xff]  }
  0x18   :  { %v2376_v9 = vld [vmem:[%s3224_s3 + $0x78] sm:$0xff]   ;;  %v2377_v10 = vld [vmem:[%s3223_s2 + $0x80] sm:$0xff]   ;;  %v2379_v12 = vld [vmem:[%s3223_s2 + $0x88] sm:$0xff]  }
  0x19   :  { %v2378_v11 = vld [vmem:[%s3224_s3 + $0x80] sm:$0xff]   ;;  %v2380_v13 = vld [vmem:[%s3224_s3 + $0x88] sm:$0xff]  }
  0x1a   :  { %2159 = vmatmul.mubr.msk.bf16.gmra.mrb[8].mxu0 %vm165_vm2, %v2319_v16  ;;  %2199 = vmatmul.mubr.msk.bf16.gmra.mrb[8].mxu1 %vm165_vm2, %v2320_v17 }
  0x1b   :  { %2162 = vmatprep.mubr.msk.bf16.mxu0 %vm165_vm2, %v2321_v18  ;;  %2202 = vmatprep.mubr.msk.bf16.mxu1 %vm165_vm2, %v2322_v19 }
  0x22   :  { %2163 = vmatmul.mubr.msk.bf16.gmra.mrb[12].mxu0 %vm165_vm2, %v2323_v20  ;;  %2203 = vmatmul.mubr.msk.bf16.gmra.mrb[12].mxu1 %vm165_vm2, %v2324_v21 }
  0x23   :  { %2166 = vmatprep.mubr.msk.bf16.mxu0 %vm165_vm2, %v2325_v22  ;;  %2206 = vmatprep.mubr.msk.bf16.mxu1 %vm165_vm2, %v2326_v23 }
  0x2a   :  { %2167 = vmatmul.mubr.msk.bf16.gmra.mrb[16].mxu0 %vm165_vm2, %v2327_v24  ;;  %2207 = vmatmul.mubr.msk.bf16.gmra.mrb[16].mxu1 %vm165_vm2, %v2328_v25 }
  0x2b   :  { %2170 = vmatprep.mubr.msk.bf16.mxu0 %vm165_vm2, %v2329_v26  ;;  %2210 = vmatprep.mubr.msk.bf16.mxu1 %vm165_vm2, %v2330_v27 }
  0x32   :  { %2171 = vmatmul.mubr.msk.bf16.gmra.mrb[20].mxu0 %vm165_vm2, %v2331_v28  ;;  %2211 = vmatmul.mubr.msk.bf16.gmra.mrb[20].mxu1 %vm165_vm2, %v2332_v29 }
  0x33   :  { %2174 = vmatprep.mubr.msk.bf16.mxu0 %vm165_vm2, %v2333_v30  ;;  %2214 = vmatprep.mubr.msk.bf16.mxu1 %vm165_vm2, %v2334_v31 }
  0x3a   :  { %2175 = vmatmul.mubr.msk.bf16.gmra.mrb[24].mxu0 %vm165_vm2, %v2335_v32  ;;  %2215 = vmatmul.mubr.msk.bf16.gmra.mrb[24].mxu1 %vm165_vm2, %v2336_v33 }
  0x3b   :  { %2178 = vmatprep.mubr.msk.bf16.mxu0 %vm165_vm2, %v2337_v34  ;;  %2218 = vmatprep.mubr.msk.bf16.mxu1 %vm165_vm2, %v2338_v35 }
  0x42   :  { %2179 = vmatmul.mubr.msk.bf16.gmra.mrb[28].mxu0 %vm165_vm2, %v2339_v36  ;;  %2219 = vmatmul.mubr.msk.bf16.gmra.mrb[28].mxu1 %vm165_vm2, %v2340_v37 }
  0x43   :  { %2182 = vmatprep.mubr.msk.bf16.mxu0 %vm165_vm2, %v2341_v38  ;;  %2222 = vmatprep.mubr.msk.bf16.mxu1 %vm165_vm2, %v2342_v39 }
  0x4a   :  { %2183 = vmatmul.mubr.msk.bf16.gmra.mrb[32].mxu0 %vm165_vm2, %v2343_v40  ;;  %2223 = vmatmul.mubr.msk.bf16.gmra.mrb[32].mxu1 %vm165_vm2, %v2344_v41 }
  0x4b   :  { %2230 = vmatprep.mubr.msk.bf16.mxu0 %vm165_vm2, %v2345_v42  ;;  %2270 = vmatprep.mubr.msk.bf16.mxu1 %vm165_vm2, %v2346_v43 }
  0x52   :  { %2231 = vmatmul.mubr.msk.bf16.vlgmr.msra.gmra.mrb[36].mxu0 %vm165_vm2, %v2347_v44  ;;  %2271 = vmatmul.mubr.msk.bf16.vlgmr.msra.gmra.mrb[36].mxu1 %vm165_vm2, %v2348_v45 }
  0x53   :  { %2234 = vmatprep.mubr.msk.bf16.mxu0 %vm165_vm2, %v2349_v46  ;;  %2274 = vmatprep.mubr.msk.bf16.mxu1 %vm165_vm2, %v2350_v47 }
  0x5a   :  { %2235 = vmatmul.mubr.msk.bf16.gmra.mrb[40].mxu0 %vm165_vm2, %v2351_v48  ;;  %2275 = vmatmul.mubr.msk.bf16.gmra.mrb[40].mxu1 %vm165_vm2, %v2352_v49 }
  0x5b   :  { %2238 = vmatprep.mubr.msk.bf16.mxu0 %vm165_vm2, %v2353_v50  ;;  %2278 = vmatprep.mubr.msk.bf16.mxu1 %vm165_vm2, %v2354_v51 }
  0x62   :  { %2239 = vmatmul.mubr.msk.bf16.gmra.mrb[44].mxu0 %vm165_vm2, %v2355_v52  ;;  %2279 = vmatmul.mubr.msk.bf16.gmra.mrb[44].mxu1 %vm165_vm2, %v2356_v53 }
  0x63   :  { %2242 = vmatprep.mubr.msk.bf16.mxu0 %vm165_vm2, %v2357_v54  ;;  %2282 = vmatprep.mubr.msk.bf16.mxu1 %vm165_vm2, %v2358_v55 }
  0x6a   :  { %2243 = vmatmul.mubr.msk.bf16.gmra.mrb[48].mxu0 %vm165_vm2, %v2359_v56  ;;  %2283 = vmatmul.mubr.msk.bf16.gmra.mrb[48].mxu1 %vm165_vm2, %v2360_v57 }
  0x6b   :  { %2246 = vmatprep.mubr.msk.bf16.mxu0 %vm165_vm2, %v2361_v58  ;;  %2286 = vmatprep.mubr.msk.bf16.mxu1 %vm165_vm2, %v2362_v59 }
  0x72   :  { %2247 = vmatmul.mubr.msk.bf16.gmra.mrb[52].mxu0 %vm165_vm2, %v2363_v60  ;;  %2287 = vmatmul.mubr.msk.bf16.gmra.mrb[52].mxu1 %vm165_vm2, %v2364_v61 }
  0x73   :  { %2250 = vmatprep.mubr.msk.bf16.mxu0 %vm165_vm2, %v2365_v62  ;;  %2290 = vmatprep.mubr.msk.bf16.mxu1 %vm165_vm2, %v2366_v63 }
  0x7a   :  { %2251 = vmatmul.mubr.msk.bf16.gmra.mrb[56].mxu0 %vm165_vm2, %v2367_v0  ;;  %2291 = vmatmul.mubr.msk.bf16.gmra.mrb[56].mxu1 %vm165_vm2, %v2368_v1 }
  0x7b   :  { %2254 = vmatprep.mubr.msk.bf16.mxu0 %vm165_vm2, %v2369_v2  ;;  %2294 = vmatprep.mubr.msk.bf16.mxu1 %vm165_vm2, %v2370_v3 }
  0x82   :  { %2255 = vmatmul.mubr.msk.bf16.gmra.mrb[60].mxu0 %vm165_vm2, %v2371_v4  ;;  %2295 = vmatmul.mubr.msk.bf16.gmra.mrb[60].mxu1 %vm165_vm2, %v2372_v5 }
  0x83   :  { %2258 = vmatprep.mubr.msk.bf16.mxu0 %vm165_vm2, %v2373_v6  ;;  %2298 = vmatprep.mubr.msk.bf16.mxu1 %vm165_vm2, %v2374_v7  ;;  %v2930_v6 = vld [vmem:[%s3225_s5] ss:$0 sm:$0xff] }
  0x8a   :  { %2259 = vmatmul.mubr.msk.bf16.gmra.mrb[64].mxu0 %vm165_vm2, %v2375_v8  ;;  %2299 = vmatmul.mubr.msk.bf16.gmra.mrb[64].mxu1 %vm165_vm2, %v2376_v9 }
  0x8b   :  { %2262 = vmatprep.mubr.msk.bf16.mxu0 %vm165_vm2, %v2377_v10  ;;  %2302 = vmatprep.mubr.msk.bf16.mxu1 %vm165_vm2, %v2378_v11 }
  0x92   :  { %2263 = vmatmul.mubr.msk.bf16.gmra.mrb[68].mxu0 %vm165_vm2, %v2379_v12  ;;  %2303 = vmatmul.mubr.msk.bf16.gmra.mrb[68].mxu1 %vm165_vm2, %v2380_v13 }
  0xdd   :  { %v2711_v14 = vpop.f32.mrb[0].mxu0  ;;  %v2713_v15 = vpop.f32.mrb[0].mxu1 }
  0xde   :  { %v2717_v17 = vpop.f32.mrb[1].mxu0  ;;  %v2719_v18 = vpop.f32.mrb[1].mxu1 }
  0xdf   :  { %v2723_v20 = vpop.f32.mrb[2].mxu0  ;;  %v2725_v21 = vpop.f32.mrb[2].mxu1 }
  0xe0   :  { %v2729_v23 = vpop.f32.mrb[3].mxu0  ;;  %v2731_v24 = vpop.f32.mrb[3].mxu1 }
  0xe5   :  { %v2735_v26 = vpop.f32.mrb[4].mxu0  ;;  %v2737_v27 = vpop.f32.mrb[4].mxu1 }
  0xe6   :  { %v2741_v29 = vpop.f32.mrb[5].mxu0  ;;  %v2743_v30 = vpop.f32.mrb[5].mxu1 }
  0xe7   :  { %v2747_v32 = vpop.f32.mrb[6].mxu0  ;;  %v2749_v33 = vpop.f32.mrb[6].mxu1 }
  0xe8   :  { %v2753_v35 = vpop.f32.mrb[7].mxu0  ;;  %v2755_v36 = vpop.f32.mrb[7].mxu1 }
  0xed   :  { %v2759_v38 = vpop.f32.mrb[8].mxu0  ;;  %v2761_v39 = vpop.f32.mrb[8].mxu1 }
  0xee   :  { %v2765_v41 = vpop.f32.mrb[9].mxu0  ;;  %v2767_v42 = vpop.f32.mrb[9].mxu1 }
  0xef   :  { %v2771_v44 = vpop.f32.mrb[10].mxu0  ;;  %v2773_v45 = vpop.f32.mrb[10].mxu1 }
  0xf0   :  { %v2777_v47 = vpop.f32.mrb[11].mxu0  ;;  %v2779_v48 = vpop.f32.mrb[11].mxu1 }
  0xf5   :  { %v2783_v50 = vpop.f32.mrb[12].mxu0  ;;  %v2785_v51 = vpop.f32.mrb[12].mxu1 }
  0xf6   :  { %v2789_v53 = vpop.f32.mrb[13].mxu0  ;;  %v2791_v54 = vpop.f32.mrb[13].mxu1 }
  0xf7   :  { %v2795_v56 = vpop.f32.mrb[14].mxu0  ;;  %v2797_v57 = vpop.f32.mrb[14].mxu1 }
  0xf8   :  { %v2801_v59 = vpop.f32.mrb[15].mxu0  ;;  %v2803_v60 = vpop.f32.mrb[15].mxu1 }
  0xfd   :  { %v2807_v62 = vpop.f32.mrb[16].mxu0  ;;  %v2809_v63 = vpop.f32.mrb[16].mxu1 }
  0xfe   :  { %v2813_v1 = vpop.f32.mrb[17].mxu0  ;;  %v2815_v2 = vpop.f32.mrb[17].mxu1 }
  0xff   :  { %v2819_v4 = vpop.f32.mrb[18].mxu0  ;;  %v2821_v5 = vpop.f32.mrb[18].mxu1 }
 0x100   :  { %v2825_v7 = vpop.f32.mrb[19].mxu0  ;;  %v2827_v8 = vpop.f32.mrb[19].mxu1 }
 0x105   :  { %v2831_v10 = vpop.f32.mrb[20].mxu0  ;;  %v2833_v11 = vpop.f32.mrb[20].mxu1 }
 0x106   :  { %v2837_v13 = vpop.f32.mrb[21].mxu0  ;;  %v2839_v3 = vpop.f32.mrb[21].mxu1 }
 0x107   :  { %v2843_v0 = vpop.f32.mrb[22].mxu0  ;;  %v2845_v61 = vpop.f32.mrb[22].mxu1 }
 0x108   :  { %v2849_v58 = vpop.f32.mrb[23].mxu0  ;;  %v2851_v55 = vpop.f32.mrb[23].mxu1 }
 0x109   :  { %3252 = vst [vmem:[#allocation2_spill] sm:$0xff] %v2851_v55  ;;  %v3279_v55 = vmax.f32 %v2723_v20, %v2725_v21 }
 0x10d   :  { %v2855_v52 = vpop.f32.mrb[24].mxu0  ;;  %v2857_v49 = vpop.f32.mrb[24].mxu1 }
 0x10e   :  { %3253 = vst [vmem:[#allocation3_spill] sm:$0xff] %v2855_v52  ;;  %3254 = vst [vmem:[#allocation4_spill] sm:$0xff] %v2857_v49  ;;  %v2861_v46 = vpop.f32.mrb[25].mxu0  ;;  %v2863_v43 = vpop.f32.mrb[25].mxu1 }
 0x10f   :  { %3255 = vst [vmem:[#allocation5_spill] sm:$0xff] %v2861_v46  ;;  %3256 = vst [vmem:[#allocation6_spill] sm:$0xff] %v2863_v43  ;;  %v2867_v40 = vpop.f32.mrb[26].mxu0  ;;  %v2869_v37 = vpop.f32.mrb[26].mxu1 }
 0x110   :  { %3257 = vst [vmem:[#allocation7_spill] sm:$0xff] %v2867_v40  ;;  %3258 = vst [vmem:[#allocation8_spill] sm:$0xff] %v2869_v37  ;;  %v2873_v34 = vpop.f32.mrb[27].mxu0  ;;  %v2875_v31 = vpop.f32.mrb[27].mxu1 }
 0x111   :  { %3259 = vst [vmem:[#allocation9_spill] sm:$0xff] %v2873_v34  ;;  %3260 = vst [vmem:[#allocation10_spill] sm:$0xff] %v2875_v31 }
 0x115   :  { %v2879_v28 = vpop.f32.mrb[28].mxu0  ;;  %v2881_v25 = vpop.f32.mrb[28].mxu1 }
 0x116   :  { %3261 = vst [vmem:[#allocation11_spill] sm:$0xff] %v2879_v28  ;;  %3262 = vst [vmem:[#allocation12_spill] sm:$0xff] %v2881_v25  ;;  %v2885_v22 = vpop.f32.mrb[29].mxu0  ;;  %v2887_v19 = vpop.f32.mrb[29].mxu1 }
 0x117   :  { %3263 = vst [vmem:[#allocation13_spill] sm:$0xff] %v2885_v22  ;;  %3264 = vst [vmem:[#allocation14_spill] sm:$0xff] %v2887_v19  ;;  %v2891_v16 = vpop.f32.mrb[30].mxu0  ;;  %v2893_v37 = vpop.f32.mrb[30].mxu1 }
 0x118   :  { %3265 = vst [vmem:[#allocation15_spill] sm:$0xff] %v2891_v16  ;;  %3266 = vst [vmem:[#allocation16_spill] sm:$0xff] %v2893_v37  ;;  %v2897_v31 = vpop.f32.mrb[31].mxu0  ;;  %v2899_v34 = vpop.f32.mrb[31].mxu1 }
 0x119   :  { %3267 = vst [vmem:[#allocation17_spill] sm:$0xff] %v2897_v31  ;;  %3268 = vst [vmem:[#allocation18_spill] sm:$0xff] %v2899_v34 }
 0x11d   :  { %v2903_v25 = vpop.f32.mrb[32].mxu0  ;;  %v2905_v28 = vpop.f32.mrb[32].mxu1 }
 0x11e   :  { %3269 = vst [vmem:[#allocation19_spill] sm:$0xff] %v2903_v25  ;;  %3270 = vst [vmem:[#allocation20_spill] sm:$0xff] %v2905_v28  ;;  %v2909_v19 = vpop.f32.mrb[33].mxu0  ;;  %v2911_v22 = vpop.f32.mrb[33].mxu1 }
 0x11f   :  { %3271 = vst [vmem:[#allocation21_spill] sm:$0xff] %v2909_v19  ;;  %3272 = vst [vmem:[#allocation22_spill] sm:$0xff] %v2911_v22  ;;  %v2915_v37 = vpop.f32.mrb[34].mxu0  ;;  %v2917_v16 = vpop.f32.mrb[34].mxu1 }
 0x120   :  { %3273 = vst [vmem:[#allocation23_spill] sm:$0xff] %v2915_v37  ;;  %3274 = vst [vmem:[#allocation24_spill] sm:$0xff] %v2917_v16  ;;  %v2921_v34 = vpop.f32.mrb[35].mxu0  ;;  %v2923_v31 = vpop.f32.mrb[35].mxu1  ;;  %v3277_v16 = vmax.f32 %v2711_v14, %v2713_v15  ;;  %v3280_v14 = vmax.f32 %v2729_v23, %v2731_v24 }
 0x121   :  { %3275 = vst [vmem:[#allocation25_spill] sm:$0xff] %v2921_v34  ;;  %3276 = vst [vmem:[#allocation26_spill] sm:$0xff] %v2923_v31 }
 0x125   :  { %v2232_v28 = vpop.f32.mrb[36].mxu0  ;;  %v2272_v25 = vpop.f32.mrb[36].mxu1 }
 0x126   :  { %v1513_v40 = vmax.f32 %v2232_v28, %v2272_v25  ;;  %v975_v43 = vpop.f32.mrb[37].mxu0  ;;  %v1332_v46 = vpop.f32.mrb[37].mxu1  ;;  %v3278_v25 = vmax.f32 %v2717_v17, %v2719_v18 }
 0x127   :  { %v1511_v22 = vmax.f32 %v975_v43, %v1332_v46  ;;  %v2233_v19 = vpop.f32.mrb[38].mxu0  ;;  %v2273_v9 = vpop.f32.mrb[38].mxu1 }
 0x128   :  { %v1549_v37 = vmax.f32 %v3277_v16, %v1513_v40  ;;  %v1514_v49 = vmax.f32 %v2233_v19, %v2273_v9  ;;  %v978_v52 = vpop.f32.mrb[39].mxu0  ;;  %v1335_v12 = vpop.f32.mrb[39].mxu1 }
 0x129   :  { %v1547_v28 = vmax.f32 %v3278_v25, %v1511_v22  ;;  %v1512_v31 = vmax.f32 %v978_v52, %v1335_v12 }
 0x12a   :  { %v1592_v34 = vadd.f32 %v2930_v6, %v1549_v37  ;;  %v1550_v43 = vmax.f32 %v3279_v55, %v1514_v49 }
 0x12b   :  { %v1590_v46 = vadd.f32 %v2930_v6, %v1547_v28  ;;  %v1548_v15 = vmax.f32 %v3280_v14, %v1512_v31  ;;  %v3281_v31 = vmax.f32 %v2735_v26, %v2737_v27  ;;  %v3283_v27 = vmax.f32 %v2747_v32, %v2749_v33 }
 0x12c   :  { %v1628_v16 = vmax.f32 %v1592_v34, 0.0  ;;  %v1593_v19 = vadd.f32 %v2930_v6, %v1550_v43 }
 0x12d   :  { %v1626_v40 = vmax.f32 %v1590_v46, 0.0  ;;  %v1591_v17 = vadd.f32 %v2930_v6, %v1548_v15  ;;  %v2236_v18 = vpop.f32.mrb[40].mxu0  ;;  %v2276_v22 = vpop.f32.mrb[40].mxu1  ;;  %v3282_v15 = vmax.f32 %v2741_v29, %v2743_v30  ;;  %v3284_v30 = vmax.f32 %v2753_v35, %v2755_v36 }
 0x12e   :  { %v2032_v37 = vpack.c.bf16 %v1628_v16, %v1628_v16  ;;  %v1629_v52 = vmax.f32 %v1593_v19, 0.0  ;;  %v1517_v9 = vmax.f32 %v2236_v18, %v2276_v22  ;;  %v991_v20 = vpop.f32.mrb[41].mxu0  ;;  %v1348_v21 = vpop.f32.mrb[41].mxu1  ;;  %v3285_v36 = vmax.f32 %v2759_v38, %v2761_v39 }
 0x12f   :  { %v2030_v49 = vpack.c.bf16 %v1626_v40, %v1626_v40  ;;  %v1627_v55 = vmax.f32 %v1591_v17, 0.0  ;;  %v1515_v12 = vmax.f32 %v991_v20, %v1348_v21  ;;  %v2237_v25 = vpop.f32.mrb[42].mxu0  ;;  %v2277_v23 = vpop.f32.mrb[42].mxu1  ;;  %v3287_v39 = vmax.f32 %v2771_v44, %v2773_v45 }
 0x130   :  { %1809 = vst.msk [vmem:[%s3226_s6 + $0x8] sm:$0xf] %vm1806_vm3, %v2032_v37  ;;  %v2033_v24 = vpack.c.bf16 %v1629_v52, %v1629_v52  ;;  %v1553_v34 = vmax.f32 %v3281_v31, %v1517_v9  ;;  %v1518_v28 = vmax.f32 %v2237_v25, %v2277_v23  ;;  %v994_v43 = vpop.f32.mrb[43].mxu0  ;;  %v1351_v46 = vpop.f32.mrb[43].mxu1 }
 0x131   :  { %1807 = vst.msk [vmem:[%s3226_s6] sm:$0xf] %vm1806_vm3, %v2030_v49  ;;  %v2031_v14 = vpack.c.bf16 %v1627_v55, %v1627_v55  ;;  %v1551_v16 = vmax.f32 %v3282_v15, %v1515_v12  ;;  %v1516_v19 = vmax.f32 %v994_v43, %v1351_v46  ;;  %v3286_v15 = vmax.f32 %v2765_v41, %v2767_v42 }
 0x132   :  { %1810 = vst.msk [vmem:[%s3226_s6 + $0xc] sm:$0xf] %vm1806_vm3, %v2033_v24  ;;  %v1596_v26 = vadd.f32 %v2930_v6, %v1553_v34  ;;  %v1554_v40 = vmax.f32 %v3283_v27, %v1518_v28  ;;  %v3288_v42 = vmax.f32 %v2777_v47, %v2779_v48  ;;  %v3289_v48 = vmax.f32 %v2783_v50, %v2785_v51 }
 0x133   :  { %1808 = vst.msk [vmem:[%s3226_s6 + $0x4] sm:$0xf] %vm1806_vm3, %v2031_v14  ;;  %v1594_v29 = vadd.f32 %v2930_v6, %v1551_v16  ;;  %v1552_v17 = vmax.f32 %v3284_v30, %v1516_v19  ;;  %v3291_v51 = vmax.f32 %v2795_v56, %v2797_v57 }
 0x134   :  { %v1632_v18 = vmax.f32 %v1596_v26, 0.0  ;;  %v1597_v22 = vadd.f32 %v2930_v6, %v1554_v40 }
 0x135   :  { %v1630_v37 = vmax.f32 %v1594_v29, 0.0  ;;  %v1595_v52 = vadd.f32 %v2930_v6, %v1552_v17  ;;  %v2240_v9 = vpop.f32.mrb[44].mxu0  ;;  %v2280_v32 = vpop.f32.mrb[44].mxu1 }
 0x136   :  { %v2036_v33 = vpack.c.bf16 %v1632_v18, %v1632_v18  ;;  %v1633_v20 = vmax.f32 %v1597_v22, 0.0  ;;  %v1521_v21 = vmax.f32 %v2240_v9, %v2280_v32  ;;  %v1007_v49 = vpop.f32.mrb[45].mxu0  ;;  %v1364_v55 = vpop.f32.mrb[45].mxu1 }
 0x137   :  { %v2034_v12 = vpack.c.bf16 %v1630_v37, %v1630_v37  ;;  %v1631_v25 = vmax.f32 %v1595_v52, 0.0  ;;  %v1519_v23 = vmax.f32 %v1007_v49, %v1364_v55  ;;  %v2241_v24 = vpop.f32.mrb[46].mxu0  ;;  %v2281_v31 = vpop.f32.mrb[46].mxu1 }
 0x138   :  { %1813 = vst.msk [vmem:[%s3226_s6 + $0x18] sm:$0xf] %vm1806_vm3, %v2036_v33  ;;  %v2037_v35 = vpack.c.bf16 %v1633_v20, %v1633_v20  ;;  %v1557_v34 = vmax.f32 %v3285_v36, %v1521_v21  ;;  %v1522_v28 = vmax.f32 %v2241_v24, %v2281_v31  ;;  %v1010_v43 = vpop.f32.mrb[47].mxu0  ;;  %v1367_v46 = vpop.f32.mrb[47].mxu1  ;;  %v3290_v31 = vmax.f32 %v2789_v53, %v2791_v54 }
 0x139   :  { %1811 = vst.msk [vmem:[%s3226_s6 + $0x10] sm:$0xf] %vm1806_vm3, %v2034_v12  ;;  %v2035_v14 = vpack.c.bf16 %v1631_v25, %v1631_v25  ;;  %v1555_v16 = vmax.f32 %v3286_v15, %v1519_v23  ;;  %v1520_v19 = vmax.f32 %v1010_v43, %v1367_v46  ;;  %v3292_v54 = vmax.f32 %v2801_v59, %v2803_v60 }
 0x13a   :  { %1814 = vst.msk [vmem:[%s3226_s6 + $0x1c] sm:$0xf] %vm1806_vm3, %v2037_v35  ;;  %v1600_v38 = vadd.f32 %v2930_v6, %v1557_v34  ;;  %v1558_v26 = vmax.f32 %v3287_v39, %v1522_v28  ;;  %v3293_v60 = vmax.f32 %v2807_v62, %v2809_v63  ;;  %v3295_v63 = vmax.f32 %v2819_v4, %v2821_v5 }
 0x13b   :  { %1812 = vst.msk [vmem:[%s3226_s6 + $0x14] sm:$0xf] %vm1806_vm3, %v2035_v14  ;;  %v1598_v41 = vadd.f32 %v2930_v6, %v1555_v16  ;;  %v1556_v27 = vmax.f32 %v3288_v42, %v1520_v19 }
 0x13c   :  { %v1636_v40 = vmax.f32 %v1600_v38, 0.0  ;;  %v1601_v29 = vadd.f32 %v2930_v6, %v1558_v26 }
 0x13d   :  { %v1634_v30 = vmax.f32 %v1598_v41, 0.0  ;;  %v1599_v17 = vadd.f32 %v2930_v6, %v1556_v27  ;;  %v2244_v18 = vpop.f32.mrb[48].mxu0  ;;  %v2284_v44 = vpop.f32.mrb[48].mxu1 }
 0x13e   :  { %v2040_v45 = vpack.c.bf16 %v1636_v40, %v1636_v40  ;;  %v1637_v22 = vmax.f32 %v1601_v29, 0.0  ;;  %v1525_v37 = vmax.f32 %v2244_v18, %v2284_v44  ;;  %v1023_v52 = vpop.f32.mrb[49].mxu0  ;;  %v1380_v9 = vpop.f32.mrb[49].mxu1 }
 0x13f   :  { %v2038_v32 = vpack.c.bf16 %v1634_v30, %v1634_v30  ;;  %v1635_v33 = vmax.f32 %v1599_v17, 0.0  ;;  %v1523_v20 = vmax.f32 %v1023_v52, %v1380_v9  ;;  %v2245_v21 = vpop.f32.mrb[50].mxu0  ;;  %v2285_v49 = vpop.f32.mrb[50].mxu1 }
 0x140   :  { %1817 = vst.msk [vmem:[%s3226_s6 + $0x28] sm:$0xf] %vm1806_vm3, %v2040_v45  ;;  %v2041_v47 = vpack.c.bf16 %v1637_v22, %v1637_v22  ;;  %v1561_v55 = vmax.f32 %v3289_v48, %v1525_v37  ;;  %v1526_v12 = vmax.f32 %v2245_v21, %v2285_v49  ;;  %v1026_v25 = vpop.f32.mrb[51].mxu0  ;;  %v1383_v23 = vpop.f32.mrb[51].mxu1  ;;  %v3294_v22 = vmax.f32 %v2813_v1, %v2815_v2 }
 0x141   :  { %1815 = vst.msk [vmem:[%s3226_s6 + $0x20] sm:$0xf] %vm1806_vm3, %v2038_v32  ;;  %v2039_v24 = vpack.c.bf16 %v1635_v33, %v1635_v33  ;;  %v1559_v35 = vmax.f32 %v3290_v31, %v1523_v20  ;;  %v1524_v36 = vmax.f32 %v1026_v25, %v1383_v23  ;;  %v3296_v2 = vmax.f32 %v2825_v7, %v2827_v8 }
 0x142   :  { %1818 = vst.msk [vmem:[%s3226_s6 + $0x2c] sm:$0xf] %vm1806_vm3, %v2041_v47  ;;  %v1604_v50 = vadd.f32 %v2930_v6, %v1561_v55  ;;  %v1562_v34 = vmax.f32 %v3291_v51, %v1526_v12  ;;  %v3297_v8 = vmax.f32 %v2831_v10, %v2833_v11  ;;  %v3299_v11 = vmax.f32 %v2843_v0, %v2845_v61 }
 0x143   :  { %1816 = vst.msk [vmem:[%s3226_s6 + $0x24] sm:$0xf] %vm1806_vm3, %v2039_v24  ;;  %v1602_v53 = vadd.f32 %v2930_v6, %v1559_v35  ;;  %v1560_v28 = vmax.f32 %v3292_v54, %v1524_v36 }
 0x144   :  { %v1640_v43 = vmax.f32 %v1604_v50, 0.0  ;;  %v1605_v46 = vadd.f32 %v2930_v6, %v1562_v34 }
 0x145   :  { %v1638_v14 = vmax.f32 %v1602_v53, 0.0  ;;  %v1603_v15 = vadd.f32 %v2930_v6, %v1560_v28  ;;  %v2248_v16 = vpop.f32.mrb[52].mxu0  ;;  %v2288_v56 = vpop.f32.mrb[52].mxu1  ;;  %v3298_v28 = vmax.f32 %v2837_v13, %v2839_v3  ;;  %v3300_v13 = vld [vmem:[#allocation2_spill] sm:$0xff] }
 0x146   :  { %v2044_v57 = vpack.c.bf16 %v1640_v43, %v1640_v43  ;;  %v1641_v19 = vmax.f32 %v1605_v46, 0.0  ;;  %v1529_v38 = vmax.f32 %v2248_v16, %v2288_v56  ;;  %v1039_v39 = vpop.f32.mrb[53].mxu0  ;;  %v1396_v26 = vpop.f32.mrb[53].mxu1 }
 0x147   :  { %v2042_v41 = vpack.c.bf16 %v1638_v14, %v1638_v14  ;;  %v1639_v42 = vmax.f32 %v1603_v15, 0.0  ;;  %v1527_v27 = vmax.f32 %v1039_v39, %v1396_v26  ;;  %v2249_v40 = vpop.f32.mrb[54].mxu0  ;;  %v2289_v29 = vpop.f32.mrb[54].mxu1  ;;  %v3301_v15 = vmax.f32 %v2849_v58, %v3300_v13 }
 0x148   :  { %1821 = vst.msk [vmem:[%s3226_s6 + $0x38] sm:$0xf] %vm1806_vm3, %v2044_v57  ;;  %v2045_v59 = vpack.c.bf16 %v1641_v19, %v1641_v19  ;;  %v1565_v30 = vmax.f32 %v3293_v60, %v1529_v38  ;;  %v1530_v17 = vmax.f32 %v2249_v40, %v2289_v29  ;;  %v1042_v18 = vpop.f32.mrb[55].mxu0  ;;  %v1399_v44 = vpop.f32.mrb[55].mxu1 }
 0x149   :  { %1819 = vst.msk [vmem:[%s3226_s6 + $0x30] sm:$0xf] %vm1806_vm3, %v2042_v41  ;;  %v2043_v45 = vpack.c.bf16 %v1639_v42, %v1639_v42  ;;  %v1563_v37 = vmax.f32 %v3294_v22, %v1527_v27  ;;  %v1528_v52 = vmax.f32 %v1042_v18, %v1399_v44  ;;  %v3303_v18 = vld [vmem:[#allocation4_spill] sm:$0xff] }
 0x14a   :  { %1822 = vst.msk [vmem:[%s3226_s6 + $0x3c] sm:$0xf] %vm1806_vm3, %v2045_v59  ;;  %v1608_v62 = vadd.f32 %v2930_v6, %v1565_v30  ;;  %v1566_v9 = vmax.f32 %v3295_v63, %v1530_v17  ;;  %v3302_v17 = vld [vmem:[#allocation3_spill] sm:$0xff]  ;;  %v3305_v63 = vld [vmem:[#allocation5_spill] sm:$0xff] }
 0x14b   :  { %1820 = vst.msk [vmem:[%s3226_s6 + $0x34] sm:$0xf] %vm1806_vm3, %v2043_v45  ;;  %v1606_v1 = vadd.f32 %v2930_v6, %v1563_v37  ;;  %v1564_v32 = vmax.f32 %v3296_v2, %v1528_v52  ;;  %v3304_v44 = vmax.f32 %v3302_v17, %v3303_v18 }
 0x14c   :  { %v1644_v33 = vmax.f32 %v1608_v62, 0.0  ;;  %v1609_v20 = vadd.f32 %v2930_v6, %v1566_v9  ;;  %v3306_v9 = vld [vmem:[#allocation6_spill] sm:$0xff] }
 0x14d   :  { %v1642_v21 = vmax.f32 %v1606_v1, 0.0  ;;  %v1607_v49 = vadd.f32 %v2930_v6, %v1564_v32  ;;  %v2252_v47 = vpop.f32.mrb[56].mxu0  ;;  %v2292_v4 = vpop.f32.mrb[56].mxu1  ;;  %v3307_v1 = vmax.f32 %v3305_v63, %v3306_v9 }
 0x14e   :  { %v2048_v5 = vpack.c.bf16 %v1644_v33, %v1644_v33  ;;  %v1645_v48 = vmax.f32 %v1609_v20, 0.0  ;;  %v1533_v55 = vmax.f32 %v2252_v47, %v2292_v4  ;;  %v1055_v12 = vpop.f32.mrb[57].mxu0  ;;  %v1412_v25 = vpop.f32.mrb[57].mxu1  ;;  %v3308_v20 = vld [vmem:[#allocation7_spill] sm:$0xff] }
 0x14f   :  { %v2046_v23 = vpack.c.bf16 %v1642_v21, %v1642_v21  ;;  %v1643_v24 = vmax.f32 %v1607_v49, 0.0  ;;  %v1531_v31 = vmax.f32 %v1055_v12, %v1412_v25  ;;  %v2253_v35 = vpop.f32.mrb[58].mxu0  ;;  %v2293_v36 = vpop.f32.mrb[58].mxu1  ;;  %v3309_v21 = vld [vmem:[#allocation8_spill] sm:$0xff] }
 0x150   :  { %1825 = vst.msk [vmem:[%s3226_s6 + $0x48] sm:$0xf] %vm1806_vm3, %v2048_v5  ;;  %v2049_v7 = vpack.c.bf16 %v1645_v48, %v1645_v48  ;;  %v1569_v50 = vmax.f32 %v3297_v8, %v1533_v55  ;;  %v1534_v51 = vmax.f32 %v2253_v35, %v2293_v36  ;;  %v1058_v34 = vpop.f32.mrb[59].mxu0  ;;  %v1415_v53 = vpop.f32.mrb[59].mxu1  ;;  %v3310_v49 = vmax.f32 %v3308_v20, %v3309_v21  ;;  %v3311_v5 = vld [vmem:[#allocation9_spill] sm:$0xff]  ;;  %v3312_v48 = vld [vmem:[#allocation10_spill] sm:$0xff] }
 0x151   :  { %1823 = vst.msk [vmem:[%s3226_s6 + $0x40] sm:$0xf] %vm1806_vm3, %v2046_v23  ;;  %v2047_v54 = vpack.c.bf16 %v1643_v24, %v1643_v24  ;;  %v1567_v43 = vmax.f32 %v3298_v28, %v1531_v31  ;;  %v1532_v46 = vmax.f32 %v1058_v34, %v1415_v53  ;;  %v3313_v55 = vmax.f32 %v3311_v5, %v3312_v48 }
 0x152   :  { %1826 = vst.msk [vmem:[%s3226_s6 + $0x4c] sm:$0xf] %vm1806_vm3, %v2049_v7  ;;  %v1612_v10 = vadd.f32 %v2930_v6, %v1569_v50  ;;  %v1570_v14 = vmax.f32 %v3299_v11, %v1534_v51  ;;  %v3314_v11 = vld [vmem:[#allocation11_spill] sm:$0xff] }
 0x153   :  { %1824 = vst.msk [vmem:[%s3226_s6 + $0x44] sm:$0xf] %vm1806_vm3, %v2047_v54  ;;  %v1610_v3 = vadd.f32 %v2930_v6, %v1567_v43  ;;  %v1568_v16 = vmax.f32 %v3301_v15, %v1532_v46 }
 0x154   :  { %v1648_v56 = vmax.f32 %v1612_v10, 0.0  ;;  %v1613_v57 = vadd.f32 %v2930_v6, %v1570_v14  ;;  %v3315_v14 = vld [vmem:[#allocation12_spill] sm:$0xff] }
 0x155   :  { %v1646_v19 = vmax.f32 %v1610_v3, 0.0  ;;  %v1611_v38 = vadd.f32 %v2930_v6, %v1568_v16  ;;  %v2256_v39 = vpop.f32.mrb[60].mxu0  ;;  %v2296_v61 = vpop.f32.mrb[60].mxu1  ;;  %v3316_v3 = vmax.f32 %v3314_v11, %v3315_v14 }
 0x156   :  { %v2052_v0 = vpack.c.bf16 %v1648_v56, %v1648_v56  ;;  %v1649_v26 = vmax.f32 %v1613_v57, 0.0  ;;  %v1537_v41 = vmax.f32 %v2256_v39, %v2296_v61  ;;  %v1071_v42 = vpop.f32.mrb[61].mxu0  ;;  %v1428_v27 = vpop.f32.mrb[61].mxu1 }
 0x157   :  { %v2050_v40 = vpack.c.bf16 %v1646_v19, %v1646_v19  ;;  %v1647_v29 = vmax.f32 %v1611_v38, 0.0  ;;  %v1535_v59 = vmax.f32 %v1071_v42, %v1428_v27  ;;  %v2257_v60 = vpop.f32.mrb[62].mxu0  ;;  %v2297_v30 = vpop.f32.mrb[62].mxu1  ;;  %v3317_v19 = vld [vmem:[#allocation13_spill] sm:$0xff]  ;;  %v3318_v38 = vld [vmem:[#allocation14_spill] sm:$0xff]  ;;  %v3321_v42 = vld [vmem:[#allocation16_spill] sm:$0xff] }
 0x158   :  { %1829 = vst.msk [vmem:[%s3226_s6 + $0x58] sm:$0xf] %vm1806_vm3, %v2052_v0  ;;  %v2053_v58 = vpack.c.bf16 %v1649_v26, %v1649_v26  ;;  %v1573_v45 = vmax.f32 %v3304_v44, %v1537_v41  ;;  %v1538_v22 = vmax.f32 %v2257_v60, %v2297_v30  ;;  %v1074_v37 = vpop.f32.mrb[63].mxu0  ;;  %v1431_v52 = vpop.f32.mrb[63].mxu1  ;;  %v3319_v39 = vmax.f32 %v3317_v19, %v3318_v38  ;;  %v3320_v41 = vld [vmem:[#allocation15_spill] sm:$0xff]  ;;  %v3324_v60 = vld [vmem:[#allocation18_spill] sm:$0xff] }
 0x159   :  { %1827 = vst.msk [vmem:[%s3226_s6 + $0x50] sm:$0xf] %vm1806_vm3, %v2050_v40  ;;  %v2051_v62 = vpack.c.bf16 %v1647_v29, %v1647_v29  ;;  %v1571_v2 = vmax.f32 %v3307_v1, %v1535_v59  ;;  %v1536_v32 = vmax.f32 %v1074_v37, %v1431_v52  ;;  %v3322_v27 = vmax.f32 %v3320_v41, %v3321_v42  ;;  %v3323_v59 = vld [vmem:[#allocation17_spill] sm:$0xff] }
 0x15a   :  { %1830 = vst.msk [vmem:[%s3226_s6 + $0x5c] sm:$0xf] %vm1806_vm3, %v2053_v58  ;;  %v1616_v33 = vadd.f32 %v2930_v6, %v1573_v45  ;;  %v1574_v47 = vmax.f32 %v3310_v49, %v1538_v22  ;;  %v3325_v30 = vmax.f32 %v3323_v59, %v3324_v60 }
 0x15b   :  { %1828 = vst.msk [vmem:[%s3226_s6 + $0x54] sm:$0xf] %vm1806_vm3, %v2051_v62  ;;  %v1614_v4 = vadd.f32 %v2930_v6, %v1571_v2  ;;  %v1572_v12 = vmax.f32 %v3313_v55, %v1536_v32 }
 0x15c   :  { %v1652_v25 = vmax.f32 %v1616_v33, 0.0  ;;  %v1617_v23 = vadd.f32 %v2930_v6, %v1574_v47  ;;  %v3326_v47 = vld [vmem:[#allocation19_spill] sm:$0xff] }
 0x15d   :  { %v1650_v24 = vmax.f32 %v1614_v4, 0.0  ;;  %v1615_v31 = vadd.f32 %v2930_v6, %v1572_v12  ;;  %v2260_v35 = vpop.f32.mrb[64].mxu0  ;;  %v2300_v36 = vpop.f32.mrb[64].mxu1  ;;  %v3327_v4 = vld [vmem:[#allocation20_spill] sm:$0xff] }
 0x15e   :  { %v2056_v7 = vpack.c.bf16 %v1652_v25, %v1652_v25  ;;  %v1653_v8 = vmax.f32 %v1617_v23, 0.0  ;;  %v1541_v50 = vmax.f32 %v2260_v35, %v2300_v36  ;;  %v1087_v51 = vpop.f32.mrb[65].mxu0  ;;  %v1444_v34 = vpop.f32.mrb[65].mxu1  ;;  %v3328_v5 = vmax.f32 %v3326_v47, %v3327_v4 }
 0x15f   :  { %v2054_v53 = vpack.c.bf16 %v1650_v24, %v1650_v24  ;;  %v1651_v54 = vmax.f32 %v1615_v31, 0.0  ;;  %v1539_v28 = vmax.f32 %v1087_v51, %v1444_v34  ;;  %v2261_v43 = vpop.f32.mrb[66].mxu0  ;;  %v2301_v46 = vpop.f32.mrb[66].mxu1  ;;  %v3329_v24 = vld [vmem:[#allocation21_spill] sm:$0xff]  ;;  %v3330_v31 = vld [vmem:[#allocation22_spill] sm:$0xff]  ;;  %v3333_v51 = vld [vmem:[#allocation24_spill] sm:$0xff] }
 0x160   :  { %1833 = vst.msk [vmem:[%s3226_s6 + $0x68] sm:$0xf] %vm1806_vm3, %v2056_v7  ;;  %v2057_v10 = vpack.c.bf16 %v1653_v8, %v1653_v8  ;;  %v1577_v13 = vmax.f32 %v3316_v3, %v1541_v50  ;;  %v1542_v15 = vmax.f32 %v2261_v43, %v2301_v46  ;;  %v1090_v16 = vpop.f32.mrb[67].mxu0  ;;  %v1447_v56 = vpop.f32.mrb[67].mxu1  ;;  %v3331_v35 = vmax.f32 %v3329_v24, %v3330_v31  ;;  %v3332_v50 = vld [vmem:[#allocation23_spill] sm:$0xff]  ;;  %v3336_v43 = vld [vmem:[#allocation26_spill] sm:$0xff] }
 0x161   :  { %1831 = vst.msk [vmem:[%s3226_s6 + $0x60] sm:$0xf] %vm1806_vm3, %v2054_v53  ;;  %v2055_v57 = vpack.c.bf16 %v1651_v54, %v1651_v54  ;;  %v1575_v61 = vmax.f32 %v3319_v39, %v1539_v28  ;;  %v1540_v0 = vmax.f32 %v1090_v16, %v1447_v56  ;;  %v3334_v34 = vmax.f32 %v3332_v50, %v3333_v51  ;;  %v3335_v28 = vld [vmem:[#allocation25_spill] sm:$0xff] }
 0x162   :  { %1834 = vst.msk [vmem:[%s3226_s6 + $0x6c] sm:$0xf] %vm1806_vm3, %v2057_v10  ;;  %v1620_v26 = vadd.f32 %v2930_v6, %v1577_v13  ;;  %v1578_v40 = vmax.f32 %v3322_v27, %v1542_v15  ;;  %v3337_v46 = vmax.f32 %v3335_v28, %v3336_v43 }
 0x163   :  { %1832 = vst.msk [vmem:[%s3226_s6 + $0x64] sm:$0xf] %vm1806_vm3, %v2055_v57  ;;  %v1618_v29 = vadd.f32 %v2930_v6, %v1575_v61  ;;  %v1576_v58 = vmax.f32 %v3325_v30, %v1540_v0 }
 0x164   :  { %v1656_v17 = vmax.f32 %v1620_v26, 0.0  ;;  %v1621_v18 = vadd.f32 %v2930_v6, %v1578_v40 }
 0x165   :  { %v1654_v44 = vmax.f32 %v1618_v29, 0.0  ;;  %v1619_v45 = vadd.f32 %v2930_v6, %v1576_v58  ;;  %v2264_v22 = vpop.f32.mrb[68].mxu0  ;;  %v2304_v37 = vpop.f32.mrb[68].mxu1 }
 0x166   :  { %v2060_v52 = vpack.c.bf16 %v1656_v17, %v1656_v17  ;;  %v1657_v62 = vmax.f32 %v1621_v18, 0.0  ;;  %v1545_v63 = vmax.f32 %v2264_v22, %v2304_v37  ;;  %v1103_v9 = vpop.f32.mrb[69].mxu0  ;;  %v1460_v1 = vpop.f32.mrb[69].mxu1 }
 0x167   :  { %v2058_v2 = vpack.c.bf16 %v1654_v44, %v1654_v44  ;;  %v1655_v32 = vmax.f32 %v1619_v45, 0.0  ;;  %v1543_v33 = vmax.f32 %v1103_v9, %v1460_v1  ;;  %v2265_v20 = vpop.f32.mrb[70].mxu0  ;;  %v2305_v21 = vpop.f32.mrb[70].mxu1 }
 0x168   :  { %1837 = vst.msk [vmem:[%s3226_s6 + $0x78] sm:$0xf] %vm1806_vm3, %v2060_v52  ;;  %v2061_v49 = vpack.c.bf16 %v1657_v62, %v1657_v62  ;;  %v1581_v48 = vmax.f32 %v3328_v5, %v1545_v63  ;;  %v1546_v55 = vmax.f32 %v2265_v20, %v2305_v21  ;;  %v1106_v12 = vpop.f32.mrb[71].mxu0  ;;  %v1463_v25 = vpop.f32.mrb[71].mxu1 }
 0x169   :  { %1835 = vst.msk [vmem:[%s3226_s6 + $0x70] sm:$0xf] %vm1806_vm3, %v2058_v2  ;;  %v2059_v23 = vpack.c.bf16 %v1655_v32, %v1655_v32  ;;  %v1579_v36 = vmax.f32 %v3331_v35, %v1543_v33  ;;  %v1544_v7 = vmax.f32 %v1106_v12, %v1463_v25 }
 0x16a   :  { %1838 = vst.msk [vmem:[%s3226_s6 + $0x7c] sm:$0xf] %vm1806_vm3, %v2061_v49  ;;  %v1624_v8 = vadd.f32 %v2930_v6, %v1581_v48  ;;  %v1582_v53 = vmax.f32 %v3334_v34, %v1546_v55 }
 0x16b   :  { %1836 = vst.msk [vmem:[%s3226_s6 + $0x74] sm:$0xf] %vm1806_vm3, %v2059_v23  ;;  %v1622_v54 = vadd.f32 %v2930_v6, %v1579_v36  ;;  %v1580_v10 = vmax.f32 %v3337_v46, %v1544_v7 }
 0x16c   :  { %v1660_v11 = vmax.f32 %v1624_v8, 0.0  ;;  %v1625_v14 = vadd.f32 %v2930_v6, %v1582_v53 }
 0x16d   :  { %v1658_v3 = vmax.f32 %v1622_v54, 0.0  ;;  %v1623_v13 = vadd.f32 %v2930_v6, %v1580_v10 }
 0x16e   :  { %v2064_v15 = vpack.c.bf16 %v1660_v11, %v1660_v11  ;;  %v1661_v16 = vmax.f32 %v1625_v14, 0.0 }
 0x16f   :  { %v2062_v56 = vpack.c.bf16 %v1658_v3, %v1658_v3  ;;  %v1659_v57 = vmax.f32 %v1623_v13, 0.0 }
 0x170   :  { %1841 = vst.msk [vmem:[%s3226_s6 + $0x88] sm:$0xf] %vm1806_vm3, %v2064_v15  ;;  %v2065_v19 = vpack.c.bf16 %v1661_v16, %v1661_v16 }
 0x171   :  { %1839 = vst.msk [vmem:[%s3226_s6 + $0x80] sm:$0xf] %vm1806_vm3, %v2062_v56  ;;  %v2063_v38 = vpack.c.bf16 %v1659_v57, %v1659_v57 }
 0x172   :  { %1842 = vst.msk [vmem:[%s3226_s6 + $0x8c] sm:$0xf] %vm1806_vm3, %v2065_v19 }
 0x173   :  { %1840 = vst.msk [vmem:[%s3226_s6 + $0x84] sm:$0xf] %vm1806_vm3, %v2063_v38 }

// kernel: mnist_net_forward.4
= control target key start
LH: loop header
LB: loop body
LE: loop exit
PB: predicated region body
PF: predicated region fallthrough
CT: control target
= control target key end

     0   :  { %vm510_vm0 = vcmask 261120   ;;  %vm1620_vm1 = vcmask 519168   ;;  %s2999_s4 = inlined_call_operand.vmem [shape: bf16[800,64], index: 4, kind: input, shape index: {}]   ;;  %s3000_s0 = inlined_call_operand.vmem [shape: bf16[32,800], index: 0, kind: input, shape index: {}]   ;;  %s3001_s1 = inlined_call_operand.vmem [shape: bf16[32,800], index: 1, kind: input, shape index: {}]   ;;  %s3002_s2 = inlined_call_operand.vmem [shape: bf16[32,800], index: 2, kind: input, shape index: {}]   ;;  %s3003_s3 = inlined_call_operand.vmem [shape: bf16[32,800], index: 3, kind: input, shape index: {}]   ;;  %s3004_s5 = inlined_call_operand.vmem [shape: f32[1,64], index: 5, kind: input, shape index: {}]   ;;  %s3005_s6 = inlined_call_operand.vmem [shape: bf16[32,64], index: 6, kind: output, shape index: {}]  }
   0x1   :  { %v2304_v0 = vld [vmem:[%s2999_s4 + $0x40] sm:$0xff]   ;;  %v2327_v4 = vld [vmem:[%s2999_s4 + $0x48] sm:$0xff]   ;;  %v2351_v8 = vld [vmem:[%s2999_s4 + $0x50] sm:$0xff]  }
   0x2   :  { %v2309_v1 = vld [vmem:[%s2999_s4 + $0xc0] sm:$0xff]   ;;  %1752 = vmatprep.subr.bf16.mxu0 %v2304_v0  ;;  %v2333_v5 = vld [vmem:[%s2999_s4 + $0xc8] sm:$0xff]   ;;  %v2357_v9 = vld [vmem:[%s2999_s4 + $0xd0] sm:$0xff]  }
   0x3   :  { %v2315_v2 = vld [vmem:[%s2999_s4] sm:$0xff]   ;;  %1780 = vmatprep.subr.bf16.mxu1 %v2309_v1  ;;  %v2339_v6 = vld [vmem:[%s2999_s4 + $0x8] sm:$0xff]   ;;  %v2363_v10 = vld [vmem:[%s2999_s4 + $0x10] sm:$0xff]  }
   0x4   :  { %v2321_v3 = vld [vmem:[%s2999_s4 + $0x80] sm:$0xff]   ;;  %1753 = vmatpush3.bf16.msra.mxu0 %v2315_v2  ;;  %v2345_v7 = vld [vmem:[%s2999_s4 + $0x88] sm:$0xff]   ;;  %v2369_v11 = vld [vmem:[%s2999_s4 + $0x90] sm:$0xff]  }
   0x5   :  { %1781 = vmatpush3.bf16.msra.mxu1 %v2321_v3  ;;  %1754 = vmatprep.subr.bf16.mxu0 %v2327_v4  ;;  %v2375_v12 = vld [vmem:[%s2999_s4 + $0x58] sm:$0xff]   ;;  %v2399_v16 = vld [vmem:[%s2999_s4 + $0x60] sm:$0xff]   ;;  %v2423_v20 = vld [vmem:[%s2999_s4 + $0x68] sm:$0xff]  }
   0x6   :  { %1782 = vmatprep.subr.bf16.mxu1 %v2333_v5  ;;  %v2381_v13 = vld [vmem:[%s2999_s4 + $0xd8] sm:$0xff]   ;;  %v2405_v17 = vld [vmem:[%s2999_s4 + $0xe0] sm:$0xff]   ;;  %v2429_v21 = vld [vmem:[%s2999_s4 + $0xe8] sm:$0xff]  }
   0x7   :  { %v2387_v14 = vld [vmem:[%s2999_s4 + $0x18] sm:$0xff]   ;;  %v2411_v18 = vld [vmem:[%s2999_s4 + $0x20] sm:$0xff]   ;;  %v2435_v22 = vld [vmem:[%s2999_s4 + $0x28] sm:$0xff]  }
   0x8   :  { %1755 = vmatpush3.bf16.msra.mxu0 %v2339_v6  ;;  %v2393_v15 = vld [vmem:[%s2999_s4 + $0x98] sm:$0xff]   ;;  %v2417_v19 = vld [vmem:[%s2999_s4 + $0xa0] sm:$0xff]   ;;  %v2441_v23 = vld [vmem:[%s2999_s4 + $0xa8] sm:$0xff]  }
   0x9   :  { %1783 = vmatpush3.bf16.msra.mxu1 %v2345_v7  ;;  %1756 = vmatprep.subr.bf16.mxu0 %v2351_v8  ;;  %v2447_v24 = vld [vmem:[%s2999_s4 + $0x70] sm:$0xff]   ;;  %v2471_v28 = vld [vmem:[%s2999_s4 + $0x78] sm:$0xff]   ;;  %v2170_v33 = vld [vmem:[%s3000_s0 + $0x4] ss:$28 sps:$4 sm:$0xff]  }
   0xa   :  { %1784 = vmatprep.subr.bf16.mxu1 %v2357_v9  ;;  %v2453_v25 = vld [vmem:[%s2999_s4 + $0xf0] sm:$0xff]   ;;  %v2477_v29 = vld [vmem:[%s2999_s4 + $0xf8] sm:$0xff]   ;;  %v2171_v34 = vld [vmem:[%s3000_s0 + $0x8] ss:$28 sps:$4 sm:$0xff]   ;;  %549 = vmatprep.mubr.bf16.mxu0 %v2170_v33 }
   0xb   :  { %v2459_v26 = vld [vmem:[%s2999_s4 + $0x30] sm:$0xff]   ;;  %v2483_v30 = vld [vmem:[%s2999_s4 + $0x38] sm:$0xff]   ;;  %v2173_v35 = vld [vmem:[%s3000_s0 + $0xc] ss:$28 sps:$4 sm:$0xff]  }
   0xc   :  { %1757 = vmatpush3.bf16.msra.mxu0 %v2363_v10  ;;  %v2465_v27 = vld [vmem:[%s2999_s4 + $0xb0] sm:$0xff]   ;;  %v2489_v31 = vld [vmem:[%s2999_s4 + $0xb8] sm:$0xff]   ;;  %v2508_v36 = vld [vmem:[%s2999_s4 + $0x140] sm:$0xff]   ;;  %598 = vmatprep.mubr.bf16.mxu1 %v2173_v35 }
   0xd   :  { %1785 = vmatpush3.bf16.msra.mxu1 %v2369_v11  ;;  %1758 = vmatprep.subr.bf16.mxu0 %v2375_v12  ;;  %v2168_v32 = vld [vmem:[%s3000_s0] ss:$28 sps:$4 sm:$0xff]   ;;  %v2525_v39 = vld [vmem:[%s2999_s4 + $0x148] sm:$0xff]   ;;  %v2183_v43 = vld [vmem:[%s3000_s0 + $0x38] ss:$28 sps:$4 sm:$0xff]  }
   0xe   :  { %1786 = vmatprep.subr.bf16.mxu1 %v2381_v13  ;;  %v2513_v37 = vld [vmem:[%s2999_s4 + $0x180] sm:$0xff]   ;;  %v2532_v40 = vld [vmem:[%s2999_s4 + $0x108] sm:$0xff]   ;;  %v2179_v41 = vld [vmem:[%s3000_s0 + $0x3c] ss:$28 sps:$4 sm:$0xff]  }
   0xf   :  { %v2519_v38 = vld [vmem:[%s2999_s4 + $0x100] sm:$0xff]   ;;  %v2551_v45 = vld [vmem:[%s2999_s4 + $0x150] sm:$0xff]   ;;  %v2556_v46 = vld [vmem:[%s2999_s4 + $0x188] sm:$0xff]  }
  0x10   :  { %1759 = vmatpush3.bf16.msra.mxu0 %v2387_v14  ;;  %v2181_v42 = vld [vmem:[%s3000_s0 + $0x44] ss:$28 sps:$4 sm:$0xff]   ;;  %v2562_v47 = vld [vmem:[%s2999_s4 + $0x110] sm:$0xff]   ;;  %v2568_v48 = vld [vmem:[%s2999_s4 + $0x158] sm:$0xff]  }
  0x11   :  { %1787 = vmatpush3.bf16.msra.mxu1 %v2393_v15  ;;  %1760 = vmatprep.subr.bf16.mxu0 %v2399_v16  ;;  %v2184_v44 = vld [vmem:[%s3000_s0 + $0x40] ss:$28 sps:$4 sm:$0xff]   ;;  %v2190_v50 = vld [vmem:[%s3000_s0 + $0x18] ss:$28 sps:$4 sm:$0xff]   ;;  %v2192_v52 = vld [vmem:[%s3000_s0 + $0x50] ss:$28 sps:$4 sm:$0xff]  }
  0x12   :  { %1788 = vmatprep.subr.bf16.mxu1 %v2405_v17  ;;  %v2575_v49 = vld [vmem:[%s2999_s4 + $0x118] sm:$0xff]   ;;  %v2585_v51 = vld [vmem:[%s2999_s4 + $0x160] sm:$0xff]   ;;  %v2601_v54 = vld [vmem:[%s2999_s4 + $0x168] sm:$0xff]  }
  0x13   :  { %v2595_v53 = vld [vmem:[%s2999_s4 + $0x120] sm:$0xff]   ;;  %v2610_v55 = vld [vmem:[%s2999_s4 + $0x128] sm:$0xff]   ;;  %v2616_v56 = vld [vmem:[%s2999_s4 + $0x170] sm:$0xff]  }
  0x14   :  { %1761 = vmatpush3.bf16.msra.mxu0 %v2411_v18  ;;  %v2202_v57 = vld [vmem:[%s3000_s0 + $0x14] ss:$28 sps:$4 sm:$0xff]   ;;  %v2633_v59 = vld [vmem:[%s2999_s4 + $0x178] sm:$0xff]   ;;  %v2208_v60 = vld [vmem:[%s3001_s1 + $0x4] ss:$28 sps:$4 sm:$0xff]  }
  0x15   :  { %1789 = vmatpush3.bf16.msra.mxu1 %v2417_v19  ;;  %1762 = vmatprep.subr.bf16.mxu0 %v2423_v20  ;;  %v2627_v58 = vld [vmem:[%s2999_s4 + $0x130] sm:$0xff]   ;;  %v2644_v61 = vld [vmem:[%s2999_s4 + $0x138] sm:$0xff]   ;;  %v2203_v63 = vld [vmem:[%s3000_s0 + $0x4c] ss:$28 sps:$4 sm:$0xff]  }
  0x16   :  { %1790 = vmatprep.subr.bf16.mxu1 %v2429_v21  ;;  %v2200_v62 = vld [vmem:[%s3000_s0 + $0x10] ss:$28 sps:$4 sm:$0xff]   ;;  %v2212_v35 = vld [vmem:[%s3001_s1 + $0x3c] ss:$28 sps:$4 sm:$0xff]  }
  0x17   :  { %v2211_v33 = vld [vmem:[%s3001_s1 + $0xc] ss:$28 sps:$4 sm:$0xff]  }
  0x18   :  { %1763 = vmatpush3.bf16.msra.mxu0 %v2435_v22 }
  0x19   :  { %1791 = vmatpush3.bf16.msra.mxu1 %v2441_v23  ;;  %1764 = vmatprep.subr.bf16.mxu0 %v2447_v24 }
  0x1a   :  { %1792 = vmatprep.subr.bf16.mxu1 %v2453_v25 }
  0x1c   :  { %1765 = vmatpush3.bf16.msra.mxu0 %v2459_v26 }
  0x1d   :  { %1793 = vmatpush3.bf16.msra.mxu1 %v2465_v27  ;;  %1766 = vmatprep.subr.bf16.mxu0 %v2471_v28 }
  0x1e   :  { %1794 = vmatprep.subr.bf16.mxu1 %v2477_v29 }
  0x20   :  { %1767 = vmatpush3.bf16.msra.mxu0 %v2483_v30 }
  0x21   :  { %1795 = vmatpush3.bf16.msra.mxu1 %v2489_v31  ;;  %1808 = vmatprep.subr.bf16.mxu0 %v2508_v36 }
  0x22   :  { %2104 = vmatprep.subr.bf16.mxu1 %v2513_v37 }
  0x23   :  { %550 = vmatmul.mubr.bf16.vlgmr.msra.gmra.mrb[0].mxu0 %v2168_v32  ;;  %v2205_v32 = vld [vmem:[%s3000_s0 + $0x48] ss:$28 sps:$4 sm:$0xff]  }
  0x24   :  { %599 = vmatmul.mubr.bf16.vlgmr.msra.gmra.mrb[0].mxu1 %v2171_v34  ;;  %1809 = vmatpush3.bf16.msra.mxu0 %v2519_v38  ;;  %v2206_v34 = vld [vmem:[%s3001_s1] ss:$28 sps:$4 sm:$0xff]  }
  0x25   :  { %2105 = vmatpush3.bf16.msra.mxu1 %v2513_v37  ;;  %1810 = vmatprep.subr.bf16.mxu0 %v2525_v39 }
  0x26   :  { %557 = vmatprep.mubr.bf16.mxu0 %v2179_v41  ;;  %606 = vmatprep.mubr.bf16.mxu1 %v2181_v42  ;;  %v2214_v41 = vld [vmem:[%s3001_s1 + $0x38] ss:$28 sps:$4 sm:$0xff]  }
  0x27   :  { %2106 = vmatprep.subr.bf16.mxu1 %v2556_v46  ;;  %v2220_v42 = vld [vmem:[%s3001_s1 + $0x14] ss:$28 sps:$4 sm:$0xff]  }
  0x28   :  { %1811 = vmatpush3.bf16.msra.mxu0 %v2532_v40 }
  0x29   :  { %1812 = vmatprep.subr.bf16.mxu0 %v2551_v45  ;;  %2107 = vmatpush3.bf16.msra.mxu1 %v2556_v46 }
  0x2a   :  { %1840 = vmatprep.subr.bf16.mxu1 %v2304_v0 }
  0x2b   :  { %558 = vmatmul.mubr.bf16.gmra.mrb[4].mxu0 %v2183_v43  ;;  %v2209_v43 = vld [vmem:[%s3001_s1 + $0x8] ss:$28 sps:$4 sm:$0xff]  }
  0x2c   :  { %607 = vmatmul.mubr.bf16.gmra.mrb[4].mxu1 %v2184_v44  ;;  %1813 = vmatpush3.bf16.msra.mxu0 %v2562_v47  ;;  %v2215_v44 = vld [vmem:[%s3001_s1 + $0x44] ss:$28 sps:$4 sm:$0xff]  }
  0x2d   :  { %1814 = vmatprep.subr.bf16.mxu0 %v2568_v48  ;;  %2108 = vmatprep.mubr.msk.bf16.mxu1 %vm510_vm0, %v2190_v50  ;;  %v2217_v50 = vld [vmem:[%s3001_s1 + $0x40] ss:$28 sps:$4 sm:$0xff]  }
  0x2e   :  { %647 = vmatprep.mubr.bf16.mxu0 %v2202_v57  ;;  %v2218_v57 = vld [vmem:[%s3001_s1 + $0x10] ss:$28 sps:$4 sm:$0xff]  }
  0x30   :  { %1815 = vmatpush3.bf16.msra.mxu0 %v2575_v49 }
  0x31   :  { %1816 = vmatprep.subr.bf16.mxu0 %v2585_v51 }
  0x34   :  { %2109 = vmatmul.mubr.msk.bf16.vlgmr.msra.gmra.mrb[8].mxu1 %vm510_vm0, %v2192_v52  ;;  %1817 = vmatpush3.bf16.msra.mxu0 %v2595_v53  ;;  %v2221_v52 = vld [vmem:[%s3001_s1 + $0x18] ss:$28 sps:$4 sm:$0xff]  }
  0x35   :  { %1841 = vmatpush3.bf16.msra.mxu1 %v2315_v2  ;;  %1818 = vmatprep.subr.bf16.mxu0 %v2601_v54 }
  0x36   :  { %1842 = vmatprep.subr.bf16.mxu1 %v2327_v4  ;;  %837 = vmatprep.mubr.bf16.mxu1 %v2208_v60  ;;  %v2222_v60 = vld [vmem:[%s3001_s1 + $0x50] ss:$28 sps:$4 sm:$0xff]  }
  0x38   :  { %1819 = vmatpush3.bf16.msra.mxu0 %v2610_v55 }
  0x39   :  { %1843 = vmatpush3.bf16.msra.mxu1 %v2339_v6  ;;  %1820 = vmatprep.subr.bf16.mxu0 %v2616_v56 }
  0x3a   :  { %1844 = vmatprep.subr.bf16.mxu1 %v2351_v8 }
  0x3c   :  { %1821 = vmatpush3.bf16.msra.mxu0 %v2627_v58 }
  0x3d   :  { %1845 = vmatpush3.bf16.msra.mxu1 %v2363_v10  ;;  %1822 = vmatprep.subr.bf16.mxu0 %v2633_v59 }
  0x3e   :  { %1846 = vmatprep.subr.bf16.mxu1 %v2375_v12 }
  0x40   :  { %1823 = vmatpush3.bf16.msra.mxu0 %v2644_v61 }
  0x41   :  { %1847 = vmatpush3.bf16.msra.mxu1 %v2387_v14  ;;  %1868 = vmatprep.subr.bf16.mxu0 %v2309_v1 }
  0x42   :  { %1848 = vmatprep.subr.bf16.mxu1 %v2399_v16 }
  0x43   :  { %648 = vmatmul.mubr.bf16.vlgmr.msra.gmra.mrb[8].mxu0 %v2200_v62  ;;  %v2223_v62 = vld [vmem:[%s3001_s1 + $0x4c] ss:$28 sps:$4 sm:$0xff]  }
  0x44   :  { %1869 = vmatpush3.bf16.msra.mxu0 %v2321_v3  ;;  %655 = vmatprep.mubr.bf16.mxu0 %v2203_v63  ;;  %v2228_v63 = vld [vmem:[%s3002_s2 + $0x4] ss:$28 sps:$4 sm:$0xff]  }
  0x45   :  { %1849 = vmatpush3.bf16.msra.mxu1 %v2411_v18  ;;  %1870 = vmatprep.subr.bf16.mxu0 %v2333_v5 }
  0x46   :  { %1850 = vmatprep.subr.bf16.mxu1 %v2423_v20 }
  0x48   :  { %1871 = vmatpush3.bf16.msra.mxu0 %v2345_v7 }
  0x49   :  { %1851 = vmatpush3.bf16.msra.mxu1 %v2435_v22  ;;  %1872 = vmatprep.subr.bf16.mxu0 %v2357_v9 }
  0x4a   :  { %1852 = vmatprep.subr.bf16.mxu1 %v2447_v24 }
  0x4b   :  { %656 = vmatmul.mubr.bf16.gmra.mrb[12].mxu0 %v2205_v32  ;;  %v2225_v32 = vld [vmem:[%s3001_s1 + $0x48] ss:$28 sps:$4 sm:$0xff]  }
  0x4c   :  { %1873 = vmatpush3.bf16.msra.mxu0 %v2369_v11  ;;  %886 = vmatprep.mubr.bf16.mxu0 %v2211_v33  ;;  %v2231_v33 = vld [vmem:[%s3002_s2 + $0xc] ss:$28 sps:$4 sm:$0xff]  }
  0x4d   :  { %1853 = vmatpush3.bf16.msra.mxu1 %v2459_v26  ;;  %1874 = vmatprep.subr.bf16.mxu0 %v2381_v13 }
  0x4e   :  { %1854 = vmatprep.subr.bf16.mxu1 %v2471_v28 }
  0x50   :  { %1875 = vmatpush3.bf16.msra.mxu0 %v2393_v15 }
  0x51   :  { %1855 = vmatpush3.bf16.msra.mxu1 %v2483_v30  ;;  %1876 = vmatprep.subr.bf16.mxu0 %v2405_v17 }
  0x52   :  { %1896 = vmatprep.subr.bf16.mxu1 %v2508_v36 }
  0x54   :  { %838 = vmatmul.mubr.bf16.vlgmr.msra.gmra.mrb[12].mxu1 %v2206_v34  ;;  %1877 = vmatpush3.bf16.msra.mxu0 %v2417_v19  ;;  %v2229_v34 = vld [vmem:[%s3002_s2 + $0x8] ss:$28 sps:$4 sm:$0xff]  }
  0x55   :  { %1897 = vmatpush3.bf16.msra.mxu1 %v2519_v38  ;;  %845 = vmatprep.mubr.bf16.mxu1 %v2212_v35  ;;  %v2226_v35 = vld [vmem:[%s3002_s2] ss:$28 sps:$4 sm:$0xff]  }
  0x56   :  { %1898 = vmatprep.subr.bf16.mxu1 %v2525_v39  ;;  %1878 = vmatprep.subr.bf16.mxu0 %v2429_v21 }
  0x58   :  { %1879 = vmatpush3.bf16.msra.mxu0 %v2441_v23 }
  0x59   :  { %1899 = vmatpush3.bf16.msra.mxu1 %v2532_v40  ;;  %1880 = vmatprep.subr.bf16.mxu0 %v2453_v25 }
  0x5a   :  { %1900 = vmatprep.subr.bf16.mxu1 %v2551_v45 }
  0x5c   :  { %846 = vmatmul.mubr.bf16.gmra.mrb[16].mxu1 %v2214_v41  ;;  %1881 = vmatpush3.bf16.msra.mxu0 %v2465_v27  ;;  %v2232_v41 = vld [vmem:[%s3002_s2 + $0x3c] ss:$28 sps:$4 sm:$0xff]  }
  0x5d   :  { %1901 = vmatpush3.bf16.msra.mxu1 %v2562_v47  ;;  %935 = vmatprep.mubr.bf16.mxu1 %v2220_v42  ;;  %v2234_v42 = vld [vmem:[%s3002_s2 + $0x44] ss:$28 sps:$4 sm:$0xff]  }
  0x5e   :  { %1902 = vmatprep.subr.bf16.mxu1 %v2568_v48  ;;  %1882 = vmatprep.subr.bf16.mxu0 %v2477_v29 }
  0x60   :  { %1883 = vmatpush3.bf16.msra.mxu0 %v2489_v31 }
  0x61   :  { %1903 = vmatpush3.bf16.msra.mxu1 %v2575_v49  ;;  %2112 = vmatprep.subr.bf16.mxu0 %v2513_v37 }
  0x62   :  { %1904 = vmatprep.subr.bf16.mxu1 %v2585_v51 }
  0x63   :  { %887 = vmatmul.mubr.bf16.vlgmr.msra.gmra.mrb[16].mxu0 %v2209_v43  ;;  %v2237_v43 = vld [vmem:[%s3002_s2 + $0x40] ss:$28 sps:$4 sm:$0xff]  }
  0x64   :  { %894 = vmatprep.mubr.bf16.mxu0 %v2215_v44  ;;  %2113 = vmatpush3.bf16.msra.mxu0 %v2513_v37  ;;  %v2236_v44 = vld [vmem:[%s3002_s2 + $0x38] ss:$28 sps:$4 sm:$0xff]  }
  0x65   :  { %1905 = vmatpush3.bf16.msra.mxu1 %v2595_v53  ;;  %2114 = vmatprep.subr.bf16.mxu0 %v2556_v46 }
  0x66   :  { %1906 = vmatprep.subr.bf16.mxu1 %v2601_v54 }
  0x68   :  { %2115 = vmatpush3.bf16.msra.mxu0 %v2556_v46 }
  0x69   :  { %1907 = vmatpush3.bf16.msra.mxu1 %v2610_v55  ;;  %1928 = vmatprep.subr.bf16.mxu0 %v2304_v0 }
  0x6a   :  { %1908 = vmatprep.subr.bf16.mxu1 %v2616_v56 }
  0x6b   :  { %895 = vmatmul.mubr.bf16.gmra.mrb[20].mxu0 %v2217_v50  ;;  %v2238_v50 = vld [vmem:[%s3002_s2 + $0x18] ss:$28 sps:$4 sm:$0xff]  }
  0x6c   :  { %2116 = vmatprep.mubr.msk.bf16.mxu0 %vm510_vm0, %v2221_v52  ;;  %v2242_v52 = vld [vmem:[%s3002_s2 + $0x14] ss:$28 sps:$4 sm:$0xff]  }
  0x6d   :  { %1909 = vmatpush3.bf16.msra.mxu1 %v2627_v58 }
  0x6e   :  { %1910 = vmatprep.subr.bf16.mxu1 %v2633_v59 }
  0x71   :  { %1911 = vmatpush3.bf16.msra.mxu1 %v2644_v61 }
  0x72   :  { %1956 = vmatprep.subr.bf16.mxu1 %v2309_v1 }
  0x73   :  { %2117 = vmatmul.mubr.msk.bf16.vlgmr.msra.gmra.mrb[24].mxu0 %vm510_vm0, %v2222_v60 }
  0x74   :  { %936 = vmatmul.mubr.bf16.vlgmr.msra.gmra.mrb[20].mxu1 %v2218_v57  ;;  %1929 = vmatpush3.bf16.msra.mxu0 %v2315_v2  ;;  %v2239_v57 = vld [vmem:[%s3002_s2 + $0x50] ss:$28 sps:$4 sm:$0xff]  }
  0x75   :  { %1957 = vmatpush3.bf16.msra.mxu1 %v2321_v3  ;;  %1930 = vmatprep.subr.bf16.mxu0 %v2327_v4 }
  0x76   :  { %1958 = vmatprep.subr.bf16.mxu1 %v2333_v5  ;;  %943 = vmatprep.mubr.bf16.mxu1 %v2223_v62 }
  0x77   :  { %1125 = vmatprep.mubr.bf16.mxu0 %v2228_v63 }
  0x78   :  { %1931 = vmatpush3.bf16.msra.mxu0 %v2339_v6 }
  0x79   :  { %1959 = vmatpush3.bf16.msra.mxu1 %v2345_v7  ;;  %1932 = vmatprep.subr.bf16.mxu0 %v2351_v8 }
  0x7a   :  { %1960 = vmatprep.subr.bf16.mxu1 %v2357_v9 }
  0x7c   :  { %944 = vmatmul.mubr.bf16.gmra.mrb[24].mxu1 %v2225_v32  ;;  %1933 = vmatpush3.bf16.msra.mxu0 %v2363_v10 }
  0x7d   :  { %1961 = vmatpush3.bf16.msra.mxu1 %v2369_v11  ;;  %1174 = vmatprep.mubr.bf16.mxu1 %v2231_v33 }
  0x7e   :  { %1962 = vmatprep.subr.bf16.mxu1 %v2381_v13  ;;  %1934 = vmatprep.subr.bf16.mxu0 %v2375_v12 }
  0x80   :  { %1935 = vmatpush3.bf16.msra.mxu0 %v2387_v14 }
  0x81   :  { %1963 = vmatpush3.bf16.msra.mxu1 %v2393_v15  ;;  %1936 = vmatprep.subr.bf16.mxu0 %v2399_v16 }
  0x82   :  { %1964 = vmatprep.subr.bf16.mxu1 %v2405_v17 }
  0x84   :  { %1937 = vmatpush3.bf16.msra.mxu0 %v2411_v18 }
  0x85   :  { %1965 = vmatpush3.bf16.msra.mxu1 %v2417_v19  ;;  %1938 = vmatprep.subr.bf16.mxu0 %v2423_v20 }
  0x86   :  { %1966 = vmatprep.subr.bf16.mxu1 %v2429_v21 }
  0x88   :  { %1939 = vmatpush3.bf16.msra.mxu0 %v2435_v22 }
  0x89   :  { %1967 = vmatpush3.bf16.msra.mxu1 %v2441_v23  ;;  %1940 = vmatprep.subr.bf16.mxu0 %v2447_v24 }
  0x8a   :  { %1968 = vmatprep.subr.bf16.mxu1 %v2453_v25 }
  0x8c   :  { %1941 = vmatpush3.bf16.msra.mxu0 %v2459_v26 }
  0x8d   :  { %1969 = vmatpush3.bf16.msra.mxu1 %v2465_v27  ;;  %1942 = vmatprep.subr.bf16.mxu0 %v2471_v28 }
  0x8e   :  { %1970 = vmatprep.subr.bf16.mxu1 %v2477_v29 }
  0x90   :  { %1943 = vmatpush3.bf16.msra.mxu0 %v2483_v30 }
  0x91   :  { %1971 = vmatpush3.bf16.msra.mxu1 %v2489_v31  ;;  %1984 = vmatprep.subr.bf16.mxu0 %v2508_v36 }
  0x92   :  { %2120 = vmatprep.subr.bf16.mxu1 %v2513_v37 }
  0x93   :  { %1126 = vmatmul.mubr.bf16.vlgmr.msra.gmra.mrb[28].mxu0 %v2226_v35 }
  0x94   :  { %1175 = vmatmul.mubr.bf16.vlgmr.msra.gmra.mrb[28].mxu1 %v2229_v34  ;;  %1985 = vmatpush3.bf16.msra.mxu0 %v2519_v38 }
  0x95   :  { %2121 = vmatpush3.bf16.msra.mxu1 %v2513_v37  ;;  %1133 = vmatprep.mubr.bf16.mxu0 %v2232_v41 }
  0x96   :  { %1986 = vmatprep.subr.bf16.mxu0 %v2525_v39  ;;  %1182 = vmatprep.mubr.bf16.mxu1 %v2234_v42 }
  0x97   :  { %2122 = vmatprep.subr.bf16.mxu1 %v2556_v46 }
  0x98   :  { %1987 = vmatpush3.bf16.msra.mxu0 %v2532_v40 }
  0x99   :  { %2123 = vmatpush3.bf16.msra.mxu1 %v2556_v46  ;;  %1988 = vmatprep.subr.bf16.mxu0 %v2551_v45 }
  0x9a   :  { %2016 = vmatprep.subr.bf16.mxu1 %v2304_v0  ;;  %v2248_v0 = vld [vmem:[%s3003_s3 + $0x4] ss:$28 sps:$4 sm:$0xff]  }
  0x9b   :  { %1134 = vmatmul.mubr.bf16.gmra.mrb[32].mxu0 %v2236_v44 }
  0x9c   :  { %1183 = vmatmul.mubr.bf16.gmra.mrb[32].mxu1 %v2237_v43  ;;  %1989 = vmatpush3.bf16.msra.mxu0 %v2562_v47 }
  0x9d   :  { %2124 = vmatprep.mubr.msk.bf16.mxu1 %vm510_vm0, %v2238_v50  ;;  %1223 = vmatprep.mubr.bf16.mxu0 %v2242_v52 }
  0x9e   :  { %1990 = vmatprep.subr.bf16.mxu0 %v2568_v48 }
  0xa0   :  { %1991 = vmatpush3.bf16.msra.mxu0 %v2575_v49 }
  0xa1   :  { %1992 = vmatprep.subr.bf16.mxu0 %v2585_v51 }
  0xa4   :  { %2125 = vmatmul.mubr.msk.bf16.vlgmr.msra.gmra.mrb[36].mxu1 %vm510_vm0, %v2239_v57  ;;  %1993 = vmatpush3.bf16.msra.mxu0 %v2595_v53 }
  0xa5   :  { %2017 = vmatpush3.bf16.msra.mxu1 %v2315_v2  ;;  %1413 = vmatprep.mubr.bf16.mxu1 %v2248_v0  ;;  %v2240_v2 = vld [vmem:[%s3002_s2 + $0x10] ss:$28 sps:$4 sm:$0xff]  }
  0xa6   :  { %2018 = vmatprep.subr.bf16.mxu1 %v2327_v4  ;;  %1994 = vmatprep.subr.bf16.mxu0 %v2601_v54  ;;  %v2243_v4 = vld [vmem:[%s3002_s2 + $0x4c] ss:$28 sps:$4 sm:$0xff]  }
  0xa8   :  { %1995 = vmatpush3.bf16.msra.mxu0 %v2610_v55 }
  0xa9   :  { %2019 = vmatpush3.bf16.msra.mxu1 %v2339_v6  ;;  %1996 = vmatprep.subr.bf16.mxu0 %v2616_v56  ;;  %v2252_v6 = vld [vmem:[%s3003_s3 + $0x3c] ss:$28 sps:$4 sm:$0xff]  }
  0xaa   :  { %2020 = vmatprep.subr.bf16.mxu1 %v2351_v8  ;;  %v2260_v8 = vld [vmem:[%s3003_s3 + $0x14] ss:$28 sps:$4 sm:$0xff]  }
  0xac   :  { %1997 = vmatpush3.bf16.msra.mxu0 %v2627_v58 }
  0xad   :  { %2021 = vmatpush3.bf16.msra.mxu1 %v2363_v10  ;;  %1998 = vmatprep.subr.bf16.mxu0 %v2633_v59  ;;  %v2255_v10 = vld [vmem:[%s3003_s3 + $0x44] ss:$28 sps:$4 sm:$0xff]  }
  0xae   :  { %2022 = vmatprep.subr.bf16.mxu1 %v2375_v12  ;;  %v2261_v12 = vld [vmem:[%s3003_s3 + $0x18] ss:$28 sps:$4 sm:$0xff]  }
  0xb0   :  { %1999 = vmatpush3.bf16.msra.mxu0 %v2644_v61 }
  0xb1   :  { %2023 = vmatpush3.bf16.msra.mxu1 %v2387_v14  ;;  %2044 = vmatprep.subr.bf16.mxu0 %v2309_v1  ;;  %v2245_v1 = vld [vmem:[%s3002_s2 + $0x48] ss:$28 sps:$4 sm:$0xff]   ;;  %v2262_v14 = vld [vmem:[%s3003_s3 + $0x50] ss:$28 sps:$4 sm:$0xff]  }
  0xb2   :  { %2024 = vmatprep.subr.bf16.mxu1 %v2399_v16  ;;  %v2265_v16 = vld [vmem:[%s3003_s3 + $0x48] ss:$28 sps:$4 sm:$0xff]  }
  0xb3   :  { %1224 = vmatmul.mubr.bf16.vlgmr.msra.gmra.mrb[36].mxu0 %v2240_v2 }
  0xb4   :  { %2045 = vmatpush3.bf16.msra.mxu0 %v2321_v3  ;;  %1231 = vmatprep.mubr.bf16.mxu0 %v2243_v4  ;;  %v2251_v3 = vld [vmem:[%s3003_s3 + $0xc] ss:$28 sps:$4 sm:$0xff]  }
  0xb5   :  { %2025 = vmatpush3.bf16.msra.mxu1 %v2411_v18  ;;  %2046 = vmatprep.subr.bf16.mxu0 %v2333_v5  ;;  %v2246_v5 = vld [vmem:[%s3003_s3] ss:$28 sps:$4 sm:$0xff]  }
  0xb6   :  { %2026 = vmatprep.subr.bf16.mxu1 %v2423_v20 }
  0xb8   :  { %2047 = vmatpush3.bf16.msra.mxu0 %v2345_v7  ;;  %v2254_v7 = vld [vmem:[%s3003_s3 + $0x38] ss:$28 sps:$4 sm:$0xff]  }
  0xb9   :  { %2027 = vmatpush3.bf16.msra.mxu1 %v2435_v22  ;;  %2048 = vmatprep.subr.bf16.mxu0 %v2357_v9  ;;  %v2249_v9 = vld [vmem:[%s3003_s3 + $0x8] ss:$28 sps:$4 sm:$0xff]  }
  0xba   :  { %2028 = vmatprep.subr.bf16.mxu1 %v2447_v24 }
  0xbb   :  { %1232 = vmatmul.mubr.bf16.gmra.mrb[40].mxu0 %v2245_v1 }
  0xbc   :  { %2049 = vmatpush3.bf16.msra.mxu0 %v2369_v11  ;;  %1462 = vmatprep.mubr.bf16.mxu0 %v2251_v3  ;;  %v2257_v11 = vld [vmem:[%s3003_s3 + $0x40] ss:$28 sps:$4 sm:$0xff]  }
  0xbd   :  { %2029 = vmatpush3.bf16.msra.mxu1 %v2459_v26  ;;  %2050 = vmatprep.subr.bf16.mxu0 %v2381_v13  ;;  %v2258_v13 = vld [vmem:[%s3003_s3 + $0x10] ss:$28 sps:$4 sm:$0xff]  }
  0xbe   :  { %2030 = vmatprep.subr.bf16.mxu1 %v2471_v28 }
  0xc0   :  { %2051 = vmatpush3.bf16.msra.mxu0 %v2393_v15  ;;  %v2263_v15 = vld [vmem:[%s3003_s3 + $0x4c] ss:$28 sps:$4 sm:$0xff]  }
  0xc1   :  { %2031 = vmatpush3.bf16.msra.mxu1 %v2483_v30  ;;  %2052 = vmatprep.subr.bf16.mxu0 %v2405_v17 }
  0xc2   :  { %2072 = vmatprep.subr.bf16.mxu1 %v2508_v36 }
  0xc4   :  { %1414 = vmatmul.mubr.bf16.vlgmr.msra.gmra.mrb[40].mxu1 %v2246_v5  ;;  %2053 = vmatpush3.bf16.msra.mxu0 %v2417_v19 }
  0xc5   :  { %2073 = vmatpush3.bf16.msra.mxu1 %v2519_v38  ;;  %1421 = vmatprep.mubr.bf16.mxu1 %v2252_v6 }
  0xc6   :  { %2074 = vmatprep.subr.bf16.mxu1 %v2525_v39  ;;  %2054 = vmatprep.subr.bf16.mxu0 %v2429_v21 }
  0xc8   :  { %2055 = vmatpush3.bf16.msra.mxu0 %v2441_v23 }
  0xc9   :  { %2075 = vmatpush3.bf16.msra.mxu1 %v2532_v40  ;;  %2056 = vmatprep.subr.bf16.mxu0 %v2453_v25 }
  0xca   :  { %2076 = vmatprep.subr.bf16.mxu1 %v2551_v45 }
  0xcc   :  { %1422 = vmatmul.mubr.bf16.gmra.mrb[44].mxu1 %v2254_v7  ;;  %2057 = vmatpush3.bf16.msra.mxu0 %v2465_v27 }
  0xcd   :  { %2077 = vmatpush3.bf16.msra.mxu1 %v2562_v47  ;;  %1511 = vmatprep.mubr.bf16.mxu1 %v2260_v8 }
  0xce   :  { %2078 = vmatprep.subr.bf16.mxu1 %v2568_v48  ;;  %2058 = vmatprep.subr.bf16.mxu0 %v2477_v29 }
  0xd0   :  { %2059 = vmatpush3.bf16.msra.mxu0 %v2489_v31 }
  0xd1   :  { %2079 = vmatpush3.bf16.msra.mxu1 %v2575_v49  ;;  %2128 = vmatprep.subr.bf16.mxu0 %v2513_v37 }
  0xd2   :  { %2080 = vmatprep.subr.bf16.mxu1 %v2585_v51 }
  0xd3   :  { %1463 = vmatmul.mubr.bf16.vlgmr.msra.gmra.mrb[44].mxu0 %v2249_v9 }
  0xd4   :  { %1470 = vmatprep.mubr.bf16.mxu0 %v2255_v10  ;;  %2129 = vmatpush3.bf16.msra.mxu0 %v2513_v37 }
  0xd5   :  { %2081 = vmatpush3.bf16.msra.mxu1 %v2595_v53  ;;  %2130 = vmatprep.subr.bf16.mxu0 %v2556_v46 }
  0xd6   :  { %2082 = vmatprep.subr.bf16.mxu1 %v2601_v54 }
  0xd8   :  { %2131 = vmatpush3.bf16.msra.mxu0 %v2556_v46 }
  0xd9   :  { %2083 = vmatpush3.bf16.msra.mxu1 %v2610_v55 }
  0xda   :  { %2084 = vmatprep.subr.bf16.mxu1 %v2616_v56 }
  0xdb   :  { %1471 = vmatmul.mubr.bf16.gmra.mrb[48].mxu0 %v2257_v11 }
  0xdc   :  { %2132 = vmatprep.mubr.msk.bf16.mxu0 %vm510_vm0, %v2261_v12 }
  0xdd   :  { %2085 = vmatpush3.bf16.msra.mxu1 %v2627_v58 }
  0xde   :  { %2086 = vmatprep.subr.bf16.mxu1 %v2633_v59 }
  0xe1   :  { %2087 = vmatpush3.bf16.msra.mxu1 %v2644_v61 }
  0xe3   :  { %2133 = vmatmul.mubr.msk.bf16.vlgmr.msra.gmra.mrb[52].mxu0 %vm510_vm0, %v2262_v14 }
  0xe4   :  { %1512 = vmatmul.mubr.bf16.vlgmr.msra.gmra.mrb[48].mxu1 %v2258_v13 }
  0xe5   :  { %1519 = vmatprep.mubr.bf16.mxu1 %v2263_v15 }
  0xec   :  { %1520 = vmatmul.mubr.bf16.gmra.mrb[52].mxu1 %v2265_v16 }
  0xf6   :  { %v1768_v17 = vpop.f32.mrb[0].mxu0 }
  0xf7   :  { %v1796_v18 = vpop.f32.mrb[0].mxu1  ;;  %v1769_v19 = vpop.f32.mrb[1].mxu0 }
  0xf8   :  { %v1770_v20 = vadd.f32 %v1769_v19, %v1768_v17  ;;  %v1797_v21 = vpop.f32.mrb[1].mxu1  ;;  %v1771_v22 = vpop.f32.mrb[2].mxu0 }
  0xf9   :  { %v1798_v23 = vadd.f32 %v1797_v21, %v1796_v18  ;;  %v1799_v24 = vpop.f32.mrb[2].mxu1  ;;  %v1772_v25 = vpop.f32.mrb[3].mxu0 }
  0xfa   :  { %v1773_v26 = vadd.f32 %v1772_v25, %v1771_v22  ;;  %v1800_v27 = vpop.f32.mrb[3].mxu1 }
  0xfb   :  { %v601_v28 = vadd.f32 %v1798_v23, %v1770_v20  ;;  %v1801_v29 = vadd.f32 %v1800_v27, %v1799_v24 }
  0xfd   :  { %v604_v30 = vadd.f32 %v1801_v29, %v1773_v26 }
  0xfe   :  { %v1774_v31 = vpop.f32.mrb[4].mxu0 }
  0xff   :  { %v1802_v36 = vpop.f32.mrb[4].mxu1  ;;  %v1775_v37 = vpop.f32.mrb[5].mxu0 }
 0x100   :  { %v1776_v38 = vadd.f32 %v1775_v37, %v1774_v31  ;;  %v1803_v39 = vpop.f32.mrb[5].mxu1  ;;  %v1777_v40 = vpop.f32.mrb[6].mxu0 }
 0x101   :  { %v1804_v45 = vadd.f32 %v1803_v39, %v1802_v36  ;;  %v1805_v46 = vpop.f32.mrb[6].mxu1  ;;  %v1778_v47 = vpop.f32.mrb[7].mxu0 }
 0x102   :  { %v1779_v48 = vadd.f32 %v1778_v47, %v1777_v40  ;;  %v1806_v49 = vpop.f32.mrb[7].mxu1 }
 0x103   :  { %v609_v51 = vadd.f32 %v1804_v45, %v1776_v38  ;;  %v1807_v53 = vadd.f32 %v1806_v49, %v1805_v46 }
 0x105   :  { %v612_v54 = vadd.f32 %v1807_v53, %v1779_v48 }
 0x107   :  { %v2110_v55 = vpop.f32.mrb[8].mxu1 }
 0x108   :  { %v698_v56 = vpop.f32.mrb[9].mxu1 }
 0x109   :  { %v2111_v58 = vpop.f32.mrb[10].mxu1 }
 0x10a   :  { %v701_v59 = vpop.f32.mrb[11].mxu1 }
 0x116   :  { %v1824_v61 = vpop.f32.mrb[8].mxu0 }
 0x117   :  { %v1825_v60 = vpop.f32.mrb[9].mxu0 }
 0x118   :  { %v1826_v62 = vadd.f32 %v1825_v60, %v1824_v61  ;;  %v1827_v63 = vpop.f32.mrb[10].mxu0 }
 0x119   :  { %v1828_v32 = vpop.f32.mrb[11].mxu0 }
 0x11a   :  { %v650_v33 = vadd.f32 %v1826_v62, %v601_v28  ;;  %v1829_v34 = vadd.f32 %v1828_v32, %v1827_v63 }
 0x11c   :  { %v653_v35 = vadd.f32 %v1829_v34, %v604_v30  ;;  %v2935_v41 = vadd.f32 %v698_v56, %v650_v33 }
 0x11e   :  { %v1830_v42 = vpop.f32.mrb[12].mxu0  ;;  %v2937_v43 = vadd.f32 %v701_v59, %v653_v35 }
 0x11f   :  { %v1831_v44 = vpop.f32.mrb[13].mxu0 }
 0x120   :  { %v1832_v50 = vadd.f32 %v1831_v44, %v1830_v42  ;;  %v1833_v52 = vpop.f32.mrb[14].mxu0 }
 0x121   :  { %v1834_v57 = vpop.f32.mrb[15].mxu0 }
 0x122   :  { %v658_v0 = vadd.f32 %v1832_v50, %v609_v51  ;;  %v1835_v2 = vadd.f32 %v1834_v57, %v1833_v52 }
 0x124   :  { %v2939_v4 = vadd.f32 %v2110_v55, %v658_v0  ;;  %v661_v1 = vadd.f32 %v1835_v2, %v612_v54 }
 0x126   :  { %v2941_v5 = vadd.f32 %v2111_v58, %v661_v1 }
 0x127   :  { %v1856_v3 = vpop.f32.mrb[12].mxu1 }
 0x128   :  { %v1857_v6 = vpop.f32.mrb[13].mxu1 }
 0x129   :  { %v1858_v7 = vadd.f32 %v1857_v6, %v1856_v3  ;;  %v1859_v8 = vpop.f32.mrb[14].mxu1 }
 0x12a   :  { %v1860_v9 = vpop.f32.mrb[15].mxu1 }
 0x12b   :  { %v1861_v10 = vadd.f32 %v1860_v9, %v1859_v8 }
 0x12f   :  { %v1862_v11 = vpop.f32.mrb[16].mxu1 }
 0x130   :  { %v1863_v12 = vpop.f32.mrb[17].mxu1 }
 0x131   :  { %v1864_v13 = vadd.f32 %v1863_v12, %v1862_v11  ;;  %v1865_v14 = vpop.f32.mrb[18].mxu1 }
 0x132   :  { %v1866_v15 = vpop.f32.mrb[19].mxu1 }
 0x133   :  { %v1867_v16 = vadd.f32 %v1866_v15, %v1865_v14 }
 0x136   :  { %v1884_v17 = vpop.f32.mrb[16].mxu0 }
 0x137   :  { %v1885_v18 = vpop.f32.mrb[17].mxu0 }
 0x138   :  { %v1886_v19 = vadd.f32 %v1885_v18, %v1884_v17  ;;  %v1887_v20 = vpop.f32.mrb[18].mxu0 }
 0x139   :  { %v1888_v21 = vpop.f32.mrb[19].mxu0 }
 0x13a   :  { %v889_v22 = vadd.f32 %v1886_v19, %v1858_v7  ;;  %v1889_v23 = vadd.f32 %v1888_v21, %v1887_v20 }
 0x13c   :  { %v892_v24 = vadd.f32 %v1889_v23, %v1861_v10 }
 0x13e   :  { %v1890_v25 = vpop.f32.mrb[20].mxu0 }
 0x13f   :  { %v1891_v26 = vpop.f32.mrb[21].mxu0 }
 0x140   :  { %v1892_v27 = vadd.f32 %v1891_v26, %v1890_v25  ;;  %v1893_v28 = vpop.f32.mrb[22].mxu0 }
 0x141   :  { %v1894_v29 = vpop.f32.mrb[23].mxu0 }
 0x142   :  { %v897_v30 = vadd.f32 %v1892_v27, %v1864_v13  ;;  %v1895_v31 = vadd.f32 %v1894_v29, %v1893_v28 }
 0x144   :  { %v900_v36 = vadd.f32 %v1895_v31, %v1867_v16 }
 0x146   :  { %v2118_v39 = vpop.f32.mrb[24].mxu0 }
 0x147   :  { %v1912_v37 = vpop.f32.mrb[20].mxu1  ;;  %v986_v46 = vpop.f32.mrb[25].mxu0 }
 0x148   :  { %v1913_v38 = vpop.f32.mrb[21].mxu1  ;;  %v2119_v48 = vpop.f32.mrb[26].mxu0 }
 0x149   :  { %v1914_v40 = vadd.f32 %v1913_v38, %v1912_v37  ;;  %v1915_v45 = vpop.f32.mrb[22].mxu1  ;;  %v989_v53 = vpop.f32.mrb[27].mxu0 }
 0x14a   :  { %v1916_v47 = vpop.f32.mrb[23].mxu1 }
 0x14b   :  { %v1917_v49 = vadd.f32 %v1916_v47, %v1915_v45  ;;  %v938_v51 = vadd.f32 %v1914_v40, %v889_v22 }
 0x14d   :  { %v2943_v54 = vadd.f32 %v986_v46, %v938_v51  ;;  %v941_v55 = vadd.f32 %v1917_v49, %v892_v24 }
 0x14f   :  { %v1577_v56 = vmax.f32 %v2935_v41, %v2943_v54  ;;  %v2947_v58 = vadd.f32 %v989_v53, %v941_v55  ;;  %v1918_v59 = vpop.f32.mrb[24].mxu1 }
 0x150   :  { %v1919_v61 = vpop.f32.mrb[25].mxu1 }
 0x151   :  { %v1578_v60 = vmax.f32 %v2937_v43, %v2947_v58  ;;  %v1920_v62 = vadd.f32 %v1919_v61, %v1918_v59  ;;  %v1921_v63 = vpop.f32.mrb[26].mxu1 }
 0x152   :  { %v1922_v32 = vpop.f32.mrb[27].mxu1 }
 0x153   :  { %v946_v33 = vadd.f32 %v1920_v62, %v897_v30  ;;  %v1923_v34 = vadd.f32 %v1922_v32, %v1921_v63 }
 0x155   :  { %v2951_v35 = vadd.f32 %v2118_v39, %v946_v33  ;;  %v949_v42 = vadd.f32 %v1923_v34, %v900_v36 }
 0x157   :  { %v1579_v44 = vmax.f32 %v2939_v4, %v2951_v35  ;;  %v2955_v50 = vadd.f32 %v2119_v48, %v949_v42 }
 0x159   :  { %v1580_v52 = vmax.f32 %v2941_v5, %v2955_v50 }
 0x166   :  { %v1944_v0 = vpop.f32.mrb[28].mxu0 }
 0x167   :  { %v1972_v57 = vpop.f32.mrb[28].mxu1  ;;  %v1945_v1 = vpop.f32.mrb[29].mxu0 }
 0x168   :  { %v1973_v2 = vpop.f32.mrb[29].mxu1  ;;  %v1946_v7 = vadd.f32 %v1945_v1, %v1944_v0  ;;  %v1947_v8 = vpop.f32.mrb[30].mxu0 }
 0x169   :  { %v1974_v3 = vadd.f32 %v1973_v2, %v1972_v57  ;;  %v1975_v6 = vpop.f32.mrb[30].mxu1  ;;  %v1948_v10 = vpop.f32.mrb[31].mxu0 }
 0x16a   :  { %v1976_v9 = vpop.f32.mrb[31].mxu1  ;;  %v1949_v13 = vadd.f32 %v1948_v10, %v1947_v8 }
 0x16b   :  { %v1977_v11 = vadd.f32 %v1976_v9, %v1975_v6  ;;  %v1177_v12 = vadd.f32 %v1974_v3, %v1946_v7 }
 0x16d   :  { %v1180_v14 = vadd.f32 %v1977_v11, %v1949_v13 }
 0x16e   :  { %v1950_v16 = vpop.f32.mrb[32].mxu0 }
 0x16f   :  { %v1978_v15 = vpop.f32.mrb[32].mxu1  ;;  %v1951_v18 = vpop.f32.mrb[33].mxu0 }
 0x170   :  { %v1979_v17 = vpop.f32.mrb[33].mxu1  ;;  %v1952_v21 = vadd.f32 %v1951_v18, %v1950_v16  ;;  %v1953_v22 = vpop.f32.mrb[34].mxu0 }
 0x171   :  { %v1980_v19 = vadd.f32 %v1979_v17, %v1978_v15  ;;  %v1981_v20 = vpop.f32.mrb[34].mxu1  ;;  %v1954_v24 = vpop.f32.mrb[35].mxu0 }
 0x172   :  { %v1982_v23 = vpop.f32.mrb[35].mxu1  ;;  %v1955_v27 = vadd.f32 %v1954_v24, %v1953_v22 }
 0x173   :  { %v1983_v25 = vadd.f32 %v1982_v23, %v1981_v20  ;;  %v1185_v26 = vadd.f32 %v1980_v19, %v1952_v21 }
 0x175   :  { %v1188_v28 = vadd.f32 %v1983_v25, %v1955_v27 }
 0x177   :  { %v2126_v29 = vpop.f32.mrb[36].mxu1 }
 0x178   :  { %v1274_v30 = vpop.f32.mrb[37].mxu1 }
 0x179   :  { %v2127_v31 = vpop.f32.mrb[38].mxu1 }
 0x17a   :  { %v1277_v36 = vpop.f32.mrb[39].mxu1 }
 0x186   :  { %v2000_v37 = vpop.f32.mrb[36].mxu0 }
 0x187   :  { %v2001_v38 = vpop.f32.mrb[37].mxu0 }
 0x188   :  { %v2002_v39 = vadd.f32 %v2001_v38, %v2000_v37  ;;  %v2003_v40 = vpop.f32.mrb[38].mxu0 }
 0x189   :  { %v2004_v45 = vpop.f32.mrb[39].mxu0 }
 0x18a   :  { %v1226_v46 = vadd.f32 %v2002_v39, %v1177_v12  ;;  %v2005_v47 = vadd.f32 %v2004_v45, %v2003_v40 }
 0x18c   :  { %v1229_v48 = vadd.f32 %v2005_v47, %v1180_v14  ;;  %v1275_v49 = vadd.f32 %v1274_v30, %v1226_v46 }
 0x18e   :  { %v2006_v51 = vpop.f32.mrb[40].mxu0  ;;  %v2959_v53 = vadd.f32 %v1277_v36, %v1229_v48 }
 0x18f   :  { %v2007_v55 = vpop.f32.mrb[41].mxu0 }
 0x190   :  { %v2008_v59 = vadd.f32 %v2007_v55, %v2006_v51  ;;  %v2009_v61 = vpop.f32.mrb[42].mxu0 }
 0x191   :  { %v2010_v62 = vpop.f32.mrb[43].mxu0 }
 0x192   :  { %v1234_v63 = vadd.f32 %v2008_v59, %v1185_v26  ;;  %v2011_v32 = vadd.f32 %v2010_v62, %v2009_v61  ;;  %v1743_v62 = vld [vmem:[%s3004_s5] ss:$0 sm:$0xff] }
 0x194   :  { %v2961_v33 = vadd.f32 %v2126_v29, %v1234_v63  ;;  %v1237_v34 = vadd.f32 %v2011_v32, %v1188_v28 }
 0x196   :  { %v2963_v57 = vadd.f32 %v2127_v31, %v1237_v34 }
 0x197   :  { %v2032_v42 = vpop.f32.mrb[40].mxu1 }
 0x198   :  { %v2033_v0 = vpop.f32.mrb[41].mxu1 }
 0x199   :  { %v2034_v2 = vadd.f32 %v2033_v0, %v2032_v42  ;;  %v2035_v1 = vpop.f32.mrb[42].mxu1 }
 0x19a   :  { %v2036_v3 = vpop.f32.mrb[43].mxu1 }
 0x19b   :  { %v2037_v6 = vadd.f32 %v2036_v3, %v2035_v1 }
 0x19f   :  { %v2038_v7 = vpop.f32.mrb[44].mxu1 }
 0x1a0   :  { %v2039_v8 = vpop.f32.mrb[45].mxu1 }
 0x1a1   :  { %v2040_v9 = vadd.f32 %v2039_v8, %v2038_v7  ;;  %v2041_v10 = vpop.f32.mrb[46].mxu1 }
 0x1a2   :  { %v2042_v11 = vpop.f32.mrb[47].mxu1 }
 0x1a3   :  { %v2043_v12 = vadd.f32 %v2042_v11, %v2041_v10 }
 0x1a6   :  { %v2060_v13 = vpop.f32.mrb[44].mxu0 }
 0x1a7   :  { %v2061_v14 = vpop.f32.mrb[45].mxu0 }
 0x1a8   :  { %v2062_v15 = vadd.f32 %v2061_v14, %v2060_v13  ;;  %v2063_v16 = vpop.f32.mrb[46].mxu0 }
 0x1a9   :  { %v2064_v17 = vpop.f32.mrb[47].mxu0 }
 0x1aa   :  { %v1465_v18 = vadd.f32 %v2062_v15, %v2034_v2  ;;  %v2065_v19 = vadd.f32 %v2064_v17, %v2063_v16 }
 0x1ac   :  { %v1468_v20 = vadd.f32 %v2065_v19, %v2037_v6 }
 0x1ae   :  { %v2066_v21 = vpop.f32.mrb[48].mxu0 }
 0x1af   :  { %v2067_v22 = vpop.f32.mrb[49].mxu0 }
 0x1b0   :  { %v2068_v23 = vadd.f32 %v2067_v22, %v2066_v21  ;;  %v2069_v24 = vpop.f32.mrb[50].mxu0 }
 0x1b1   :  { %v2070_v25 = vpop.f32.mrb[51].mxu0 }
 0x1b2   :  { %v1473_v26 = vadd.f32 %v2068_v23, %v2040_v9  ;;  %v2071_v27 = vadd.f32 %v2070_v25, %v2069_v24 }
 0x1b4   :  { %v1476_v28 = vadd.f32 %v2071_v27, %v2043_v12 }
 0x1b6   :  { %v2134_v31 = vpop.f32.mrb[52].mxu0 }
 0x1b7   :  { %v2088_v29 = vpop.f32.mrb[48].mxu1  ;;  %v1562_v38 = vpop.f32.mrb[53].mxu0 }
 0x1b8   :  { %v2089_v30 = vpop.f32.mrb[49].mxu1  ;;  %v2135_v40 = vpop.f32.mrb[54].mxu0 }
 0x1b9   :  { %v2090_v36 = vadd.f32 %v2089_v30, %v2088_v29  ;;  %v2091_v37 = vpop.f32.mrb[50].mxu1  ;;  %v1565_v47 = vpop.f32.mrb[55].mxu0 }
 0x1ba   :  { %v2092_v39 = vpop.f32.mrb[51].mxu1 }
 0x1bb   :  { %v2093_v45 = vadd.f32 %v2092_v39, %v2091_v37  ;;  %v1514_v46 = vadd.f32 %v2090_v36, %v1465_v18 }
 0x1bd   :  { %v1563_v48 = vadd.f32 %v1562_v38, %v1514_v46  ;;  %v1517_v51 = vadd.f32 %v2093_v45, %v1468_v20 }
 0x1bf   :  { %v1581_v55 = vmax.f32 %v1275_v49, %v1563_v48  ;;  %v1566_v59 = vadd.f32 %v1565_v47, %v1517_v51  ;;  %v2094_v61 = vpop.f32.mrb[52].mxu1 }
 0x1c0   :  { %v2095_v63 = vpop.f32.mrb[53].mxu1 }
 0x1c1   :  { %v1585_v32 = vmax.f32 %v1577_v56, %v1581_v55  ;;  %v1582_v34 = vmax.f32 %v2959_v53, %v1566_v59  ;;  %v2096_v42 = vadd.f32 %v2095_v63, %v2094_v61  ;;  %v2097_v0 = vpop.f32.mrb[54].mxu1 }
 0x1c2   :  { %v2098_v2 = vpop.f32.mrb[55].mxu1 }
 0x1c3   :  { %v1596_v1 = vadd.f32 %v1743_v62, %v1585_v32  ;;  %v1586_v49 = vmax.f32 %v1578_v60, %v1582_v34  ;;  %v1522_v3 = vadd.f32 %v2096_v42, %v1473_v26  ;;  %v2099_v6 = vadd.f32 %v2098_v2, %v2097_v0 }
 0x1c5   :  { %v1600_v7 = vmax.f32 %v1596_v1, 0.0  ;;  %v1597_v8 = vadd.f32 %v1743_v62, %v1586_v49  ;;  %v1571_v9 = vadd.f32 %v2134_v31, %v1522_v3  ;;  %v1525_v10 = vadd.f32 %v2099_v6, %v1476_v28 }
 0x1c7   :  { %v1748_v11 = vpack.c.bf16 %v1600_v7, %v1600_v7  ;;  %v1601_v41 = vmax.f32 %v1597_v8, 0.0  ;;  %v1583_v54 = vmax.f32 %v2961_v33, %v1571_v9  ;;  %v1574_v56 = vadd.f32 %v2135_v40, %v1525_v10 }
 0x1c9   :  { %1621 = vst.msk [vmem:[%s3005_s6] sm:$0xf] %vm1620_vm1, %v1748_v11  ;;  %v1749_v53 = vpack.c.bf16 %v1601_v41, %v1601_v41  ;;  %v1587_v43 = vmax.f32 %v1579_v44, %v1583_v54  ;;  %v1584_v58 = vmax.f32 %v2963_v57, %v1574_v56 }
 0x1cb   :  { %1622 = vst.msk [vmem:[%s3005_s6 + $0x4] sm:$0xf] %vm1620_vm1, %v1749_v53  ;;  %v1598_v60 = vadd.f32 %v1743_v62, %v1587_v43  ;;  %v1588_v33 = vmax.f32 %v1580_v52, %v1584_v58 }
 0x1cd   :  { %v1602_v12 = vmax.f32 %v1598_v60, 0.0  ;;  %v1599_v13 = vadd.f32 %v1743_v62, %v1588_v33 }
 0x1cf   :  { %v1750_v14 = vpack.c.bf16 %v1602_v12, %v1602_v12  ;;  %v1603_v15 = vmax.f32 %v1599_v13, 0.0 }
 0x1d1   :  { %1623 = vst.msk [vmem:[%s3005_s6 + $0x8] sm:$0xf] %vm1620_vm1, %v1750_v14  ;;  %v1751_v4 = vpack.c.bf16 %v1603_v15, %v1603_v15 }
 0x1d3   :  { %1624 = vst.msk [vmem:[%s3005_s6 + $0xc] sm:$0xf] %vm1620_vm1, %v1751_v4 }

// kernel: mnist_net_forward.5
= control target key start
LH: loop header
LB: loop body
LE: loop exit
PB: predicated region body
PF: predicated region fallthrough
CT: control target
= control target key end

     0   :  { %v281_v36 = vlaneseq  ;;  %v3154_v37 = vmov 1966171168   ;;  %s4107_s0 = inlined_call_operand.vmem [shape: bf16[2,1024], index: 0, kind: input, shape index: {}]   ;;  %s4108_s1 = inlined_call_operand.vmem [shape: bf16[1024,512], index: 1, kind: input, shape index: {}]   ;;  %s4109_s2 = inlined_call_operand.vmem [shape: f32[1,512], index: 2, kind: input, shape index: {}]   ;;  %s4110_s3 = inlined_call_operand.vmem [shape: bf16[512,10], index: 3, kind: input, shape index: {}]   ;;  %s4111_s4 = inlined_call_operand.vmem [shape: f32[1,10], index: 4, kind: input, shape index: {}]   ;;  %s4112_s5 = inlined_call_operand.hbm [shape: f32[2,10], index: 5, kind: output, shape index: {}]  }
   0x1   :  { %v2709_v0 = vld [vmem:[%s4108_s1 + $0x4] ss:$16 sps:$4 sm:$0xff]   ;;  %v2711_v1 = vld [vmem:[%s4108_s1 + $0xc] ss:$16 sps:$4 sm:$0xff]   ;;  %v2713_v2 = vld [vmem:[%s4108_s1] ss:$16 sps:$4 sm:$0xff]   ;;  %v304_v38 = vunpack.c.l.s4 %v3154_v37 }
   0x2   :  { %1639 = vmatprep.subr.bf16.mxu0 %v2709_v0  ;;  %v2714_v3 = vld [vmem:[%s4108_s1 + $0x8] ss:$16 sps:$4 sm:$0xff]   ;;  %1803 = vmatprep.subr.bf16.mxu1 %v2711_v1  ;;  %v2715_v4 = vld [vmem:[%s4108_s1 + $0x24] ss:$16 sps:$4 sm:$0xff]   ;;  %v2717_v5 = vld [vmem:[%s4108_s1 + $0x2c] ss:$16 sps:$4 sm:$0xff]  }
   0x3   :  { %1640 = vmatpush1.bf16.msra.mxu0 %v2713_v2  ;;  %1804 = vmatpush1.bf16.msra.mxu1 %v2714_v3  ;;  %v2719_v6 = vld [vmem:[%s4108_s1 + $0x20] ss:$16 sps:$4 sm:$0xff]   ;;  %v2720_v7 = vld [vmem:[%s4108_s1 + $0x28] ss:$16 sps:$4 sm:$0xff]   ;;  %v2721_v8 = vld [vmem:[%s4108_s1 + $0x44] ss:$16 sps:$4 sm:$0xff]   ;;  %v305_v43 = vunpack.c.0.s8 %v304_v38 }
   0x4   :  { %1641 = vmatprep.subr.bf16.mxu0 %v2715_v4  ;;  %1805 = vmatprep.subr.bf16.mxu1 %v2717_v5  ;;  %v2723_v9 = vld [vmem:[%s4108_s1 + $0x4c] ss:$16 sps:$4 sm:$0xff]   ;;  %v2725_v10 = vld [vmem:[%s4108_s1 + $0x40] ss:$16 sps:$4 sm:$0xff]   ;;  %v2726_v11 = vld [vmem:[%s4108_s1 + $0x48] ss:$16 sps:$4 sm:$0xff]  }
   0x5   :  { %v2727_v12 = vld [vmem:[%s4108_s1 + $0x64] ss:$16 sps:$4 sm:$0xff]   ;;  %v2729_v13 = vld [vmem:[%s4108_s1 + $0x6c] ss:$16 sps:$4 sm:$0xff]   ;;  %v2731_v14 = vld [vmem:[%s4108_s1 + $0x60] ss:$16 sps:$4 sm:$0xff]  }
   0x6   :  { %v2732_v15 = vld [vmem:[%s4108_s1 + $0x68] ss:$16 sps:$4 sm:$0xff]   ;;  %v2733_v16 = vld [vmem:[%s4108_s1 + $0x84] ss:$16 sps:$4 sm:$0xff]   ;;  %v2735_v17 = vld [vmem:[%s4108_s1 + $0x8c] ss:$16 sps:$4 sm:$0xff]  }
   0x7   :  { %1642 = vmatpush1.bf16.msra.mxu0 %v2719_v6  ;;  %1806 = vmatpush1.bf16.msra.mxu1 %v2720_v7  ;;  %v2737_v18 = vld [vmem:[%s4108_s1 + $0x80] ss:$16 sps:$4 sm:$0xff]   ;;  %v2738_v19 = vld [vmem:[%s4108_s1 + $0x88] ss:$16 sps:$4 sm:$0xff]   ;;  %v2739_v20 = vld [vmem:[%s4108_s1 + $0xa4] ss:$16 sps:$4 sm:$0xff]  }
   0x8   :  { %1643 = vmatprep.subr.bf16.mxu0 %v2721_v8  ;;  %1807 = vmatprep.subr.bf16.mxu1 %v2723_v9  ;;  %v2741_v21 = vld [vmem:[%s4108_s1 + $0xac] ss:$16 sps:$4 sm:$0xff]   ;;  %v2743_v22 = vld [vmem:[%s4108_s1 + $0xa0] ss:$16 sps:$4 sm:$0xff]   ;;  %v2744_v23 = vld [vmem:[%s4108_s1 + $0xa8] ss:$16 sps:$4 sm:$0xff]  }
   0x9   :  { %v2745_v24 = vld [vmem:[%s4108_s1 + $0xc4] ss:$16 sps:$4 sm:$0xff]   ;;  %v2747_v25 = vld [vmem:[%s4108_s1 + $0xcc] ss:$16 sps:$4 sm:$0xff]   ;;  %v2749_v26 = vld [vmem:[%s4108_s1 + $0xc0] ss:$16 sps:$4 sm:$0xff]  }
   0xa   :  { %v2750_v27 = vld [vmem:[%s4108_s1 + $0xc8] ss:$16 sps:$4 sm:$0xff]   ;;  %v2751_v28 = vld [vmem:[%s4108_s1 + $0xe4] ss:$16 sps:$4 sm:$0xff]   ;;  %v2753_v29 = vld [vmem:[%s4108_s1 + $0xec] ss:$16 sps:$4 sm:$0xff]  }
   0xb   :  { %1644 = vmatpush1.bf16.msra.mxu0 %v2725_v10  ;;  %1808 = vmatpush1.bf16.msra.mxu1 %v2726_v11  ;;  %v2755_v30 = vld [vmem:[%s4108_s1 + $0xe0] ss:$16 sps:$4 sm:$0xff]   ;;  %v2756_v31 = vld [vmem:[%s4108_s1 + $0xe8] ss:$16 sps:$4 sm:$0xff]   ;;  %v2757_v32 = vld [vmem:[%s4108_s1 + $0x104] ss:$16 sps:$4 sm:$0xff]  }
   0xc   :  { %1645 = vmatprep.subr.bf16.mxu0 %v2727_v12  ;;  %1809 = vmatprep.subr.bf16.mxu1 %v2729_v13  ;;  %v2759_v33 = vld [vmem:[%s4108_s1 + $0x10c] ss:$16 sps:$4 sm:$0xff]   ;;  %v2761_v34 = vld [vmem:[%s4108_s1 + $0x100] ss:$16 sps:$4 sm:$0xff]   ;;  %v2762_v35 = vld [vmem:[%s4108_s1 + $0x108] ss:$16 sps:$4 sm:$0xff]  }
   0xd   :  { %v2763_v39 = vld [vmem:[%s4108_s1 + $0x124] ss:$16 sps:$4 sm:$0xff]   ;;  %v2765_v40 = vld [vmem:[%s4108_s1 + $0x12c] ss:$16 sps:$4 sm:$0xff]   ;;  %v2767_v41 = vld [vmem:[%s4108_s1 + $0x120] ss:$16 sps:$4 sm:$0xff]  }
   0xe   :  { %v3303_v42 = vshrl.u32 %v281_v36, 7  ;;  %v2768_v44 = vld [vmem:[%s4108_s1 + $0x128] ss:$16 sps:$4 sm:$0xff]   ;;  %v2769_v45 = vld [vmem:[%s4108_s1 + $0x144] ss:$16 sps:$4 sm:$0xff]  }
   0xf   :  { %1646 = vmatpush1.bf16.msra.mxu0 %v2731_v14  ;;  %1810 = vmatpush1.bf16.msra.mxu1 %v2732_v15  ;;  %v2771_v46 = vld [vmem:[%s4108_s1 + $0x14c] ss:$16 sps:$4 sm:$0xff]   ;;  %v2773_v47 = vld [vmem:[%s4108_s1 + $0x140] ss:$16 sps:$4 sm:$0xff]   ;;  %v2774_v48 = vld [vmem:[%s4108_s1 + $0x148] ss:$16 sps:$4 sm:$0xff]  }
  0x10   :  { %1647 = vmatprep.subr.bf16.mxu0 %v2733_v16  ;;  %1811 = vmatprep.subr.bf16.mxu1 %v2735_v17  ;;  %v3321_v49 = vsub.s32 %v305_v43, %v3303_v42  ;;  %v2775_v50 = vld [vmem:[%s4108_s1 + $0x164] ss:$16 sps:$4 sm:$0xff]   ;;  %v2777_v51 = vld [vmem:[%s4108_s1 + $0x16c] ss:$16 sps:$4 sm:$0xff]   ;;  %v2779_v53 = vld [vmem:[%s4108_s1 + $0x160] ss:$16 sps:$4 sm:$0xff]  }
  0x11   :  { %v22_v52 = vld [vmem:[%s4107_s0] sm:$0xff]  ;;  %v2780_v55 = vld [vmem:[%s4108_s1 + $0x168] ss:$16 sps:$4 sm:$0xff]   ;;  %v2783_v57 = vld [vmem:[%s4108_s1 + $0x18c] ss:$16 sps:$4 sm:$0xff]  }
  0x12   :  { %v309_v54 = vrot.slane %v22_v52, %v3321_v49  ;;  %v2781_v56 = vld [vmem:[%s4108_s1 + $0x184] ss:$16 sps:$4 sm:$0xff]   ;;  %v2785_v59 = vld [vmem:[%s4108_s1 + $0x180] ss:$16 sps:$4 sm:$0xff]   ;;  %v2786_v61 = vld [vmem:[%s4108_s1 + $0x188] ss:$16 sps:$4 sm:$0xff]   ;;  %v302_v9 = vcombine.high %v22_v52, %v22_v52 }
  0x13   :  { %1648 = vmatpush1.bf16.msra.mxu0 %v2737_v18  ;;  %1812 = vmatpush1.bf16.msra.mxu1 %v2738_v19  ;;  %v2787_v62 = vld [vmem:[%s4108_s1 + $0x1a4] ss:$16 sps:$4 sm:$0xff]   ;;  %v2789_v63 = vld [vmem:[%s4108_s1 + $0x1ac] ss:$16 sps:$4 sm:$0xff]   ;;  %v2791_v0 = vld [vmem:[%s4108_s1 + $0x1a0] ss:$16 sps:$4 sm:$0xff]  }
  0x14   :  { %1649 = vmatprep.subr.bf16.mxu0 %v2739_v20  ;;  %1813 = vmatprep.subr.bf16.mxu1 %v2741_v21  ;;  %v317_v58 = vcombine.high %v309_v54, %v309_v54  ;;  %v2792_v1 = vld [vmem:[%s4108_s1 + $0x1a8] ss:$16 sps:$4 sm:$0xff]   ;;  %v2793_v2 = vld [vmem:[%s4108_s1 + $0x1c4] ss:$16 sps:$4 sm:$0xff]   ;;  %v2795_v3 = vld [vmem:[%s4108_s1 + $0x1cc] ss:$16 sps:$4 sm:$0xff]   ;;  %v316_v13 = vrot.slane %v302_v9, %v3321_v49  ;;  %v3399_v15 = vrot.slane %v309_v54, %v3321_v49 }
  0x15   :  { %v2797_v4 = vld [vmem:[%s4108_s1 + $0x1c0] ss:$16 sps:$4 sm:$0xff]   ;;  %v2798_v5 = vld [vmem:[%s4108_s1 + $0x1c8] ss:$16 sps:$4 sm:$0xff]   ;;  %v2799_v6 = vld [vmem:[%s4108_s1 + $0x1e4] ss:$16 sps:$4 sm:$0xff]  }
  0x16   :  { %v339_v60 = vrot.slane %v317_v58, %v3321_v49  ;;  %v2801_v7 = vld [vmem:[%s4108_s1 + $0x1ec] ss:$16 sps:$4 sm:$0xff]   ;;  %v2803_v8 = vld [vmem:[%s4108_s1 + $0x1e0] ss:$16 sps:$4 sm:$0xff]   ;;  %v2804_v10 = vld [vmem:[%s4108_s1 + $0x1e8] ss:$16 sps:$4 sm:$0xff]   ;;  %v318_v16 = vcombine.high %v316_v13, %v316_v13  ;;  %v3414_v21 = vrot.slane %v316_v13, %v3321_v49 }
  0x17   :  { %1650 = vmatpush1.bf16.msra.mxu0 %v2743_v22  ;;  %1814 = vmatpush1.bf16.msra.mxu1 %v2744_v23  ;;  %v2807_v11 = vld [vmem:[%s4108_s1 + $0x204] ss:$16 sps:$4 sm:$0xff]   ;;  %v2810_v12 = vld [vmem:[%s4108_s1 + $0x20c] ss:$16 sps:$4 sm:$0xff]   ;;  %v2805_v14 = vld [vmem:[%s4108_s1 + $0x200] ss:$16 sps:$4 sm:$0xff]  }
  0x18   :  { %1651 = vmatprep.subr.bf16.mxu0 %v2745_v24  ;;  %1815 = vmatprep.subr.bf16.mxu1 %v2747_v25  ;;  %v2808_v17 = vld [vmem:[%s4108_s1 + $0x208] ss:$16 sps:$4 sm:$0xff]   ;;  %v2813_v18 = vld [vmem:[%s4108_s1 + $0x224] ss:$16 sps:$4 sm:$0xff]   ;;  %v2816_v19 = vld [vmem:[%s4108_s1 + $0x22c] ss:$16 sps:$4 sm:$0xff]   ;;  %v3411_v20 = vrot.slane %v318_v16, %v3321_v49  ;;  %v349_v22 = vcombine.high %v339_v60, %v339_v60 }
  0x19   :  { %1671 = vmatprep.mubr.bf16.mxu0 %v339_v60  ;;  %1835 = vmatprep.mubr.bf16.mxu1 %v339_v60  ;;  %v2811_v23 = vld [vmem:[%s4108_s1 + $0x220] ss:$16 sps:$4 sm:$0xff]   ;;  %v2814_v24 = vld [vmem:[%s4108_s1 + $0x228] ss:$16 sps:$4 sm:$0xff]   ;;  %v2819_v25 = vld [vmem:[%s4108_s1 + $0x244] ss:$16 sps:$4 sm:$0xff]  }
  0x1a   :  { %v2832_v36 = vld [vmem:[%s4108_s1 + $0x288] ss:$16 sps:$4 sm:$0xff]   ;;  %v2837_v37 = vld [vmem:[%s4108_s1 + $0x2a4] ss:$16 sps:$4 sm:$0xff]   ;;  %v2840_v38 = vld [vmem:[%s4108_s1 + $0x2ac] ss:$16 sps:$4 sm:$0xff]  }
  0x1b   :  { %1652 = vmatpush1.bf16.msra.mxu0 %v2749_v26  ;;  %1816 = vmatpush1.bf16.msra.mxu1 %v2750_v27  ;;  %v2822_v26 = vld [vmem:[%s4108_s1 + $0x24c] ss:$16 sps:$4 sm:$0xff]   ;;  %v2817_v27 = vld [vmem:[%s4108_s1 + $0x240] ss:$16 sps:$4 sm:$0xff]   ;;  %v2850_v49 = vld [vmem:[%s4108_s1 + $0x2e8] ss:$16 sps:$4 sm:$0xff]  }
  0x1c   :  { %1653 = vmatprep.subr.bf16.mxu0 %v2751_v28  ;;  %1817 = vmatprep.subr.bf16.mxu1 %v2753_v29  ;;  %v2820_v28 = vld [vmem:[%s4108_s1 + $0x248] ss:$16 sps:$4 sm:$0xff]   ;;  %v2825_v29 = vld [vmem:[%s4108_s1 + $0x264] ss:$16 sps:$4 sm:$0xff]   ;;  %v2846_v43 = vld [vmem:[%s4108_s1 + $0x2cc] ss:$16 sps:$4 sm:$0xff]  }
  0x1d   :  { %v2853_v52 = vld [vmem:[%s4108_s1 + $0x300] ss:$16 sps:$4 sm:$0xff]   ;;  %v2861_v54 = vld [vmem:[%s4108_s1 + $0x324] ss:$16 sps:$4 sm:$0xff]   ;;  %v2886_v9 = vld [vmem:[%s4108_s1 + $0x3a8] ss:$16 sps:$4 sm:$0xff]  }
  0x1e   :  { %v2867_v58 = vld [vmem:[%s4108_s1 + $0x344] ss:$16 sps:$4 sm:$0xff]   ;;  %v2865_v60 = vld [vmem:[%s4108_s1 + $0x340] ss:$16 sps:$4 sm:$0xff]   ;;  %v2892_v13 = vld [vmem:[%s4108_s1 + $0x3c8] ss:$16 sps:$4 sm:$0xff]  }
  0x1f   :  { %1654 = vmatpush1.bf16.msra.mxu0 %v2755_v30  ;;  %1818 = vmatpush1.bf16.msra.mxu1 %v2756_v31  ;;  %v2828_v30 = vld [vmem:[%s4108_s1 + $0x26c] ss:$16 sps:$4 sm:$0xff]   ;;  %v2823_v31 = vld [vmem:[%s4108_s1 + $0x260] ss:$16 sps:$4 sm:$0xff]  }
  0x20   :  { %1655 = vmatprep.subr.bf16.mxu0 %v2757_v32  ;;  %1819 = vmatprep.subr.bf16.mxu1 %v2759_v33  ;;  %v2826_v32 = vld [vmem:[%s4108_s1 + $0x268] ss:$16 sps:$4 sm:$0xff]   ;;  %v2831_v33 = vld [vmem:[%s4108_s1 + $0x284] ss:$16 sps:$4 sm:$0xff]   ;;  %v2900_v16 = vld [vmem:[%s4108_s1 + $0x3ec] ss:$16 sps:$4 sm:$0xff]  }
  0x23   :  { %1656 = vmatpush1.bf16.msra.mxu0 %v2761_v34  ;;  %1820 = vmatpush1.bf16.msra.mxu1 %v2762_v35  ;;  %v2834_v34 = vld [vmem:[%s4108_s1 + $0x28c] ss:$16 sps:$4 sm:$0xff]   ;;  %v2829_v35 = vld [vmem:[%s4108_s1 + $0x280] ss:$16 sps:$4 sm:$0xff]  }
  0x24   :  { %1657 = vmatprep.subr.bf16.mxu0 %v2763_v39  ;;  %1821 = vmatprep.subr.bf16.mxu1 %v2765_v40  ;;  %v2835_v39 = vld [vmem:[%s4108_s1 + $0x2a0] ss:$16 sps:$4 sm:$0xff]   ;;  %v2838_v40 = vld [vmem:[%s4108_s1 + $0x2a8] ss:$16 sps:$4 sm:$0xff]  }
  0x27   :  { %1658 = vmatpush1.bf16.msra.mxu0 %v2767_v41  ;;  %1822 = vmatpush1.bf16.msra.mxu1 %v2768_v44  ;;  %v2843_v41 = vld [vmem:[%s4108_s1 + $0x2c4] ss:$16 sps:$4 sm:$0xff]   ;;  %v2841_v44 = vld [vmem:[%s4108_s1 + $0x2c0] ss:$16 sps:$4 sm:$0xff]  }
  0x28   :  { %1659 = vmatprep.subr.bf16.mxu0 %v2769_v45  ;;  %1823 = vmatprep.subr.bf16.mxu1 %v2771_v46  ;;  %v2844_v45 = vld [vmem:[%s4108_s1 + $0x2c8] ss:$16 sps:$4 sm:$0xff]   ;;  %v2849_v46 = vld [vmem:[%s4108_s1 + $0x2e4] ss:$16 sps:$4 sm:$0xff]  }
  0x2b   :  { %1660 = vmatpush1.bf16.msra.mxu0 %v2773_v47  ;;  %1824 = vmatpush1.bf16.msra.mxu1 %v2774_v48  ;;  %v2852_v47 = vld [vmem:[%s4108_s1 + $0x2ec] ss:$16 sps:$4 sm:$0xff]   ;;  %v2847_v48 = vld [vmem:[%s4108_s1 + $0x2e0] ss:$16 sps:$4 sm:$0xff]  }
  0x2c   :  { %1661 = vmatprep.subr.bf16.mxu0 %v2775_v50  ;;  %1825 = vmatprep.subr.bf16.mxu1 %v2777_v51  ;;  %v2855_v50 = vld [vmem:[%s4108_s1 + $0x304] ss:$16 sps:$4 sm:$0xff]   ;;  %v2858_v51 = vld [vmem:[%s4108_s1 + $0x30c] ss:$16 sps:$4 sm:$0xff]  }
  0x2f   :  { %1662 = vmatpush1.bf16.msra.mxu0 %v2779_v53  ;;  %1826 = vmatpush1.bf16.msra.mxu1 %v2780_v55  ;;  %v2856_v53 = vld [vmem:[%s4108_s1 + $0x308] ss:$16 sps:$4 sm:$0xff]   ;;  %v2864_v55 = vld [vmem:[%s4108_s1 + $0x32c] ss:$16 sps:$4 sm:$0xff]  }
  0x30   :  { %1663 = vmatprep.subr.bf16.mxu0 %v2781_v56  ;;  %1827 = vmatprep.subr.bf16.mxu1 %v2783_v57  ;;  %v2859_v56 = vld [vmem:[%s4108_s1 + $0x320] ss:$16 sps:$4 sm:$0xff]   ;;  %v2862_v57 = vld [vmem:[%s4108_s1 + $0x328] ss:$16 sps:$4 sm:$0xff]  }
  0x33   :  { %1664 = vmatpush1.bf16.msra.mxu0 %v2785_v59  ;;  %1828 = vmatpush1.bf16.msra.mxu1 %v2786_v61  ;;  %v2870_v59 = vld [vmem:[%s4108_s1 + $0x34c] ss:$16 sps:$4 sm:$0xff]   ;;  %v2868_v61 = vld [vmem:[%s4108_s1 + $0x348] ss:$16 sps:$4 sm:$0xff]  }
  0x34   :  { %1665 = vmatprep.subr.bf16.mxu0 %v2787_v62  ;;  %1829 = vmatprep.subr.bf16.mxu1 %v2789_v63  ;;  %v2873_v62 = vld [vmem:[%s4108_s1 + $0x364] ss:$16 sps:$4 sm:$0xff]   ;;  %v2876_v63 = vld [vmem:[%s4108_s1 + $0x36c] ss:$16 sps:$4 sm:$0xff]  }
  0x37   :  { %1666 = vmatpush1.bf16.msra.mxu0 %v2791_v0  ;;  %1830 = vmatpush1.bf16.msra.mxu1 %v2792_v1  ;;  %v2871_v0 = vld [vmem:[%s4108_s1 + $0x360] ss:$16 sps:$4 sm:$0xff]   ;;  %v2874_v1 = vld [vmem:[%s4108_s1 + $0x368] ss:$16 sps:$4 sm:$0xff]  }
  0x38   :  { %1667 = vmatprep.subr.bf16.mxu0 %v2793_v2  ;;  %1831 = vmatprep.subr.bf16.mxu1 %v2795_v3  ;;  %v2879_v2 = vld [vmem:[%s4108_s1 + $0x384] ss:$16 sps:$4 sm:$0xff]   ;;  %v2882_v3 = vld [vmem:[%s4108_s1 + $0x38c] ss:$16 sps:$4 sm:$0xff]  }
  0x3b   :  { %1668 = vmatpush1.bf16.msra.mxu0 %v2797_v4  ;;  %1832 = vmatpush1.bf16.msra.mxu1 %v2798_v5  ;;  %v2877_v4 = vld [vmem:[%s4108_s1 + $0x380] ss:$16 sps:$4 sm:$0xff]   ;;  %v2880_v5 = vld [vmem:[%s4108_s1 + $0x388] ss:$16 sps:$4 sm:$0xff]  }
  0x3c   :  { %1669 = vmatprep.subr.bf16.mxu0 %v2799_v6  ;;  %1833 = vmatprep.subr.bf16.mxu1 %v2801_v7  ;;  %v2885_v6 = vld [vmem:[%s4108_s1 + $0x3a4] ss:$16 sps:$4 sm:$0xff]   ;;  %v2888_v7 = vld [vmem:[%s4108_s1 + $0x3ac] ss:$16 sps:$4 sm:$0xff]  }
  0x3f   :  { %1670 = vmatpush1.bf16.msra.mxu0 %v2803_v8  ;;  %1834 = vmatpush1.bf16.msra.mxu1 %v2804_v10  ;;  %v2883_v8 = vld [vmem:[%s4108_s1 + $0x3a0] ss:$16 sps:$4 sm:$0xff]   ;;  %v2891_v10 = vld [vmem:[%s4108_s1 + $0x3c4] ss:$16 sps:$4 sm:$0xff]  }
  0x40   :  { %1680 = vmatprep.subr.bf16.mxu0 %v2807_v11  ;;  %1844 = vmatprep.subr.bf16.mxu1 %v2810_v12  ;;  %v2894_v11 = vld [vmem:[%s4108_s1 + $0x3cc] ss:$16 sps:$4 sm:$0xff]   ;;  %v2889_v12 = vld [vmem:[%s4108_s1 + $0x3c0] ss:$16 sps:$4 sm:$0xff]  }
  0x42   :  { %1672 = vmatmul.mubr.bf16.vlgmr.msra.gmra.mrb[0].mxu0 %v3399_v15  ;;  %1836 = vmatmul.mubr.bf16.vlgmr.msra.gmra.mrb[0].mxu1 %v3399_v15 }
  0x43   :  { %1681 = vmatpush1.bf16.msra.mxu0 %v2805_v14  ;;  %1845 = vmatpush1.bf16.msra.mxu1 %v2808_v17  ;;  %v2897_v14 = vld [vmem:[%s4108_s1 + $0x3e4] ss:$16 sps:$4 sm:$0xff]   ;;  %v2895_v17 = vld [vmem:[%s4108_s1 + $0x3e0] ss:$16 sps:$4 sm:$0xff]  }
  0x44   :  { %1682 = vmatprep.subr.bf16.mxu0 %v2813_v18  ;;  %1846 = vmatprep.subr.bf16.mxu1 %v2816_v19  ;;  %v2898_v18 = vld [vmem:[%s4108_s1 + $0x3e8] ss:$16 sps:$4 sm:$0xff]   ;;  %v2903_v19 = vld [vmem:[%s4108_s1 + $0x404] ss:$16 sps:$4 sm:$0xff]  }
  0x45   :  { %1712 = vmatprep.mubr.bf16.mxu0 %v349_v22  ;;  %1876 = vmatprep.mubr.bf16.mxu1 %v349_v22  ;;  %v2906_v22 = vld [vmem:[%s4108_s1 + $0x40c] ss:$16 sps:$4 sm:$0xff]  }
  0x47   :  { %1683 = vmatpush1.bf16.msra.mxu0 %v2811_v23  ;;  %1847 = vmatpush1.bf16.msra.mxu1 %v2814_v24  ;;  %v2901_v23 = vld [vmem:[%s4108_s1 + $0x400] ss:$16 sps:$4 sm:$0xff]   ;;  %v347_v24 = vcombine.high %v3399_v15, %v3399_v15 }
  0x48   :  { %1684 = vmatprep.subr.bf16.mxu0 %v2819_v25  ;;  %1848 = vmatprep.subr.bf16.mxu1 %v2822_v26  ;;  %v2904_v25 = vld [vmem:[%s4108_s1 + $0x408] ss:$16 sps:$4 sm:$0xff]   ;;  %v2909_v26 = vld [vmem:[%s4108_s1 + $0x424] ss:$16 sps:$4 sm:$0xff]   ;;  %v2907_v15 = vld [vmem:[%s4108_s1 + $0x420] ss:$16 sps:$4 sm:$0xff]  }
  0x4b   :  { %1685 = vmatpush1.bf16.msra.mxu0 %v2817_v27  ;;  %1849 = vmatpush1.bf16.msra.mxu1 %v2820_v28  ;;  %v2912_v27 = vld [vmem:[%s4108_s1 + $0x42c] ss:$16 sps:$4 sm:$0xff]   ;;  %v2910_v28 = vld [vmem:[%s4108_s1 + $0x428] ss:$16 sps:$4 sm:$0xff]  }
  0x4c   :  { %1686 = vmatprep.subr.bf16.mxu0 %v2825_v29  ;;  %1850 = vmatprep.subr.bf16.mxu1 %v2828_v30  ;;  %v2915_v29 = vld [vmem:[%s4108_s1 + $0x444] ss:$16 sps:$4 sm:$0xff]   ;;  %v2918_v30 = vld [vmem:[%s4108_s1 + $0x44c] ss:$16 sps:$4 sm:$0xff]  }
  0x4f   :  { %1687 = vmatpush1.bf16.msra.mxu0 %v2823_v31  ;;  %1851 = vmatpush1.bf16.msra.mxu1 %v2826_v32  ;;  %v2913_v31 = vld [vmem:[%s4108_s1 + $0x440] ss:$16 sps:$4 sm:$0xff]   ;;  %v2916_v32 = vld [vmem:[%s4108_s1 + $0x448] ss:$16 sps:$4 sm:$0xff]  }
  0x50   :  { %1688 = vmatprep.subr.bf16.mxu0 %v2831_v33  ;;  %1852 = vmatprep.subr.bf16.mxu1 %v2834_v34  ;;  %v2921_v33 = vld [vmem:[%s4108_s1 + $0x464] ss:$16 sps:$4 sm:$0xff]   ;;  %v2924_v34 = vld [vmem:[%s4108_s1 + $0x46c] ss:$16 sps:$4 sm:$0xff]  }
  0x53   :  { %1689 = vmatpush1.bf16.msra.mxu0 %v2829_v35  ;;  %1853 = vmatpush1.bf16.msra.mxu1 %v2832_v36  ;;  %v2919_v35 = vld [vmem:[%s4108_s1 + $0x460] ss:$16 sps:$4 sm:$0xff]   ;;  %v2922_v36 = vld [vmem:[%s4108_s1 + $0x468] ss:$16 sps:$4 sm:$0xff]  }
  0x54   :  { %1690 = vmatprep.subr.bf16.mxu0 %v2837_v37  ;;  %1854 = vmatprep.subr.bf16.mxu1 %v2840_v38  ;;  %v2927_v37 = vld [vmem:[%s4108_s1 + $0x484] ss:$16 sps:$4 sm:$0xff]   ;;  %v2930_v38 = vld [vmem:[%s4108_s1 + $0x48c] ss:$16 sps:$4 sm:$0xff]  }
  0x57   :  { %1691 = vmatpush1.bf16.msra.mxu0 %v2835_v39  ;;  %1855 = vmatpush1.bf16.msra.mxu1 %v2838_v40  ;;  %v2925_v39 = vld [vmem:[%s4108_s1 + $0x480] ss:$16 sps:$4 sm:$0xff]   ;;  %v2928_v40 = vld [vmem:[%s4108_s1 + $0x488] ss:$16 sps:$4 sm:$0xff]  }
  0x58   :  { %1692 = vmatprep.subr.bf16.mxu0 %v2843_v41  ;;  %1856 = vmatprep.subr.bf16.mxu1 %v2846_v43  ;;  %v2933_v41 = vld [vmem:[%s4108_s1 + $0x4a4] ss:$16 sps:$4 sm:$0xff]   ;;  %v2936_v43 = vld [vmem:[%s4108_s1 + $0x4ac] ss:$16 sps:$4 sm:$0xff]  }
  0x5b   :  { %1693 = vmatpush1.bf16.msra.mxu0 %v2841_v44  ;;  %1857 = vmatpush1.bf16.msra.mxu1 %v2844_v45  ;;  %v2931_v44 = vld [vmem:[%s4108_s1 + $0x4a0] ss:$16 sps:$4 sm:$0xff]   ;;  %v2934_v45 = vld [vmem:[%s4108_s1 + $0x4a8] ss:$16 sps:$4 sm:$0xff]  }
  0x5c   :  { %1694 = vmatprep.subr.bf16.mxu0 %v2849_v46  ;;  %1858 = vmatprep.subr.bf16.mxu1 %v2852_v47  ;;  %v2939_v46 = vld [vmem:[%s4108_s1 + $0x4c4] ss:$16 sps:$4 sm:$0xff]   ;;  %v2942_v47 = vld [vmem:[%s4108_s1 + $0x4cc] ss:$16 sps:$4 sm:$0xff]  }
  0x5f   :  { %1695 = vmatpush1.bf16.msra.mxu0 %v2847_v48  ;;  %1859 = vmatpush1.bf16.msra.mxu1 %v2850_v49  ;;  %v2937_v48 = vld [vmem:[%s4108_s1 + $0x4c0] ss:$16 sps:$4 sm:$0xff]   ;;  %v2940_v49 = vld [vmem:[%s4108_s1 + $0x4c8] ss:$16 sps:$4 sm:$0xff]  }
  0x60   :  { %1696 = vmatprep.subr.bf16.mxu0 %v2855_v50  ;;  %1860 = vmatprep.subr.bf16.mxu1 %v2858_v51  ;;  %v2945_v50 = vld [vmem:[%s4108_s1 + $0x4e4] ss:$16 sps:$4 sm:$0xff]   ;;  %v2948_v51 = vld [vmem:[%s4108_s1 + $0x4ec] ss:$16 sps:$4 sm:$0xff]  }
  0x63   :  { %1697 = vmatpush1.bf16.msra.mxu0 %v2853_v52  ;;  %1861 = vmatpush1.bf16.msra.mxu1 %v2856_v53  ;;  %v2943_v52 = vld [vmem:[%s4108_s1 + $0x4e0] ss:$16 sps:$4 sm:$0xff]   ;;  %v2946_v53 = vld [vmem:[%s4108_s1 + $0x4e8] ss:$16 sps:$4 sm:$0xff]  }
  0x64   :  { %1698 = vmatprep.subr.bf16.mxu0 %v2861_v54  ;;  %1862 = vmatprep.subr.bf16.mxu1 %v2864_v55  ;;  %v2951_v54 = vld [vmem:[%s4108_s1 + $0x504] ss:$16 sps:$4 sm:$0xff]   ;;  %v2954_v55 = vld [vmem:[%s4108_s1 + $0x50c] ss:$16 sps:$4 sm:$0xff]  }
  0x67   :  { %1699 = vmatpush1.bf16.msra.mxu0 %v2859_v56  ;;  %1863 = vmatpush1.bf16.msra.mxu1 %v2862_v57  ;;  %v2949_v56 = vld [vmem:[%s4108_s1 + $0x500] ss:$16 sps:$4 sm:$0xff]   ;;  %v2952_v57 = vld [vmem:[%s4108_s1 + $0x508] ss:$16 sps:$4 sm:$0xff]  }
  0x68   :  { %1700 = vmatprep.subr.bf16.mxu0 %v2867_v58  ;;  %1864 = vmatprep.subr.bf16.mxu1 %v2870_v59  ;;  %v2957_v58 = vld [vmem:[%s4108_s1 + $0x524] ss:$16 sps:$4 sm:$0xff]   ;;  %v2960_v59 = vld [vmem:[%s4108_s1 + $0x52c] ss:$16 sps:$4 sm:$0xff]  }
  0x6b   :  { %1701 = vmatpush1.bf16.msra.mxu0 %v2865_v60  ;;  %1865 = vmatpush1.bf16.msra.mxu1 %v2868_v61  ;;  %v2955_v60 = vld [vmem:[%s4108_s1 + $0x520] ss:$16 sps:$4 sm:$0xff]   ;;  %v2958_v61 = vld [vmem:[%s4108_s1 + $0x528] ss:$16 sps:$4 sm:$0xff]  }
  0x6c   :  { %1702 = vmatprep.subr.bf16.mxu0 %v2873_v62  ;;  %1866 = vmatprep.subr.bf16.mxu1 %v2876_v63  ;;  %v2963_v62 = vld [vmem:[%s4108_s1 + $0x544] ss:$16 sps:$4 sm:$0xff]   ;;  %v2966_v63 = vld [vmem:[%s4108_s1 + $0x54c] ss:$16 sps:$4 sm:$0xff]  }
  0x6f   :  { %1703 = vmatpush1.bf16.msra.mxu0 %v2871_v0  ;;  %1867 = vmatpush1.bf16.msra.mxu1 %v2874_v1  ;;  %v2961_v0 = vld [vmem:[%s4108_s1 + $0x540] ss:$16 sps:$4 sm:$0xff]   ;;  %v2964_v1 = vld [vmem:[%s4108_s1 + $0x548] ss:$16 sps:$4 sm:$0xff]  }
  0x70   :  { %1704 = vmatprep.subr.bf16.mxu0 %v2879_v2  ;;  %1868 = vmatprep.subr.bf16.mxu1 %v2882_v3  ;;  %v2969_v2 = vld [vmem:[%s4108_s1 + $0x564] ss:$16 sps:$4 sm:$0xff]   ;;  %v2972_v3 = vld [vmem:[%s4108_s1 + $0x56c] ss:$16 sps:$4 sm:$0xff]  }
  0x73   :  { %1705 = vmatpush1.bf16.msra.mxu0 %v2877_v4  ;;  %1869 = vmatpush1.bf16.msra.mxu1 %v2880_v5  ;;  %v2967_v4 = vld [vmem:[%s4108_s1 + $0x560] ss:$16 sps:$4 sm:$0xff]   ;;  %v2970_v5 = vld [vmem:[%s4108_s1 + $0x568] ss:$16 sps:$4 sm:$0xff]  }
  0x74   :  { %1706 = vmatprep.subr.bf16.mxu0 %v2885_v6  ;;  %1870 = vmatprep.subr.bf16.mxu1 %v2888_v7  ;;  %v2975_v6 = vld [vmem:[%s4108_s1 + $0x584] ss:$16 sps:$4 sm:$0xff]   ;;  %v2978_v7 = vld [vmem:[%s4108_s1 + $0x58c] ss:$16 sps:$4 sm:$0xff]  }
  0x77   :  { %1707 = vmatpush1.bf16.msra.mxu0 %v2883_v8  ;;  %1871 = vmatpush1.bf16.msra.mxu1 %v2886_v9  ;;  %v2973_v8 = vld [vmem:[%s4108_s1 + $0x580] ss:$16 sps:$4 sm:$0xff]   ;;  %v2976_v9 = vld [vmem:[%s4108_s1 + $0x588] ss:$16 sps:$4 sm:$0xff]  }
  0x78   :  { %1708 = vmatprep.subr.bf16.mxu0 %v2891_v10  ;;  %1872 = vmatprep.subr.bf16.mxu1 %v2894_v11  ;;  %v2981_v10 = vld [vmem:[%s4108_s1 + $0x5a4] ss:$16 sps:$4 sm:$0xff]   ;;  %v2984_v11 = vld [vmem:[%s4108_s1 + $0x5ac] ss:$16 sps:$4 sm:$0xff]  }
  0x7b   :  { %1709 = vmatpush1.bf16.msra.mxu0 %v2889_v12  ;;  %1873 = vmatpush1.bf16.msra.mxu1 %v2892_v13  ;;  %v2979_v12 = vld [vmem:[%s4108_s1 + $0x5a0] ss:$16 sps:$4 sm:$0xff]   ;;  %v2982_v13 = vld [vmem:[%s4108_s1 + $0x5a8] ss:$16 sps:$4 sm:$0xff]  }
  0x7c   :  { %1710 = vmatprep.subr.bf16.mxu0 %v2897_v14  ;;  %1874 = vmatprep.subr.bf16.mxu1 %v2900_v16  ;;  %v2987_v14 = vld [vmem:[%s4108_s1 + $0x5c4] ss:$16 sps:$4 sm:$0xff]   ;;  %v2990_v16 = vld [vmem:[%s4108_s1 + $0x5cc] ss:$16 sps:$4 sm:$0xff]  }
  0x7f   :  { %1711 = vmatpush1.bf16.msra.mxu0 %v2895_v17  ;;  %1875 = vmatpush1.bf16.msra.mxu1 %v2898_v18  ;;  %v2985_v17 = vld [vmem:[%s4108_s1 + $0x5c0] ss:$16 sps:$4 sm:$0xff]   ;;  %v2988_v18 = vld [vmem:[%s4108_s1 + $0x5c8] ss:$16 sps:$4 sm:$0xff]  }
  0x80   :  { %1721 = vmatprep.subr.bf16.mxu0 %v2903_v19  ;;  %1885 = vmatprep.subr.bf16.mxu1 %v2906_v22  ;;  %v2993_v19 = vld [vmem:[%s4108_s1 + $0x5e4] ss:$16 sps:$4 sm:$0xff]   ;;  %v2996_v22 = vld [vmem:[%s4108_s1 + $0x5ec] ss:$16 sps:$4 sm:$0xff]  }
  0x82   :  { %1713 = vmatmul.mubr.bf16.vlgmr.msra.gmra.mrb[0].mxu0 %v347_v24  ;;  %1877 = vmatmul.mubr.bf16.vlgmr.msra.gmra.mrb[0].mxu1 %v347_v24  ;;  %v2994_v24 = vld [vmem:[%s4108_s1 + $0x5e8] ss:$16 sps:$4 sm:$0xff]  }
  0x83   :  { %1722 = vmatpush1.bf16.msra.mxu0 %v2901_v23  ;;  %1886 = vmatpush1.bf16.msra.mxu1 %v2904_v25  ;;  %v2991_v23 = vld [vmem:[%s4108_s1 + $0x5e0] ss:$16 sps:$4 sm:$0xff]   ;;  %v3000_v25 = vld [vmem:[%s4108_s1 + $0x604] ss:$16 sps:$4 sm:$0xff]  }
  0x84   :  { %1723 = vmatprep.subr.bf16.mxu0 %v2909_v26  ;;  %1887 = vmatprep.subr.bf16.mxu1 %v2912_v27  ;;  %v3003_v26 = vld [vmem:[%s4108_s1 + $0x60c] ss:$16 sps:$4 sm:$0xff]   ;;  %v2998_v27 = vld [vmem:[%s4108_s1 + $0x600] ss:$16 sps:$4 sm:$0xff]  }
  0x85   :  { %1753 = vmatprep.mubr.bf16.mxu0 %v3411_v20  ;;  %1917 = vmatprep.mubr.bf16.mxu1 %v3411_v20 }
  0x87   :  { %1724 = vmatpush1.bf16.msra.mxu0 %v2907_v15  ;;  %1888 = vmatpush1.bf16.msra.mxu1 %v2910_v28  ;;  %v3001_v15 = vld [vmem:[%s4108_s1 + $0x608] ss:$16 sps:$4 sm:$0xff]   ;;  %v3006_v28 = vld [vmem:[%s4108_s1 + $0x624] ss:$16 sps:$4 sm:$0xff]  }
  0x88   :  { %1725 = vmatprep.subr.bf16.mxu0 %v2915_v29  ;;  %1889 = vmatprep.subr.bf16.mxu1 %v2918_v30  ;;  %v3009_v29 = vld [vmem:[%s4108_s1 + $0x62c] ss:$16 sps:$4 sm:$0xff]   ;;  %v3004_v30 = vld [vmem:[%s4108_s1 + $0x620] ss:$16 sps:$4 sm:$0xff]  }
  0x8b   :  { %1726 = vmatpush1.bf16.msra.mxu0 %v2913_v31  ;;  %1890 = vmatpush1.bf16.msra.mxu1 %v2916_v32  ;;  %v3007_v31 = vld [vmem:[%s4108_s1 + $0x628] ss:$16 sps:$4 sm:$0xff]   ;;  %v350_v32 = vcombine.high %v3411_v20, %v3411_v20  ;;  %v3010_v20 = vld [vmem:[%s4108_s1 + $0x640] ss:$16 sps:$4 sm:$0xff]  }
  0x8c   :  { %1727 = vmatprep.subr.bf16.mxu0 %v2921_v33  ;;  %1891 = vmatprep.subr.bf16.mxu1 %v2924_v34  ;;  %v3012_v33 = vld [vmem:[%s4108_s1 + $0x644] ss:$16 sps:$4 sm:$0xff]   ;;  %v3015_v34 = vld [vmem:[%s4108_s1 + $0x64c] ss:$16 sps:$4 sm:$0xff]  }
  0x8f   :  { %1728 = vmatpush1.bf16.msra.mxu0 %v2919_v35  ;;  %1892 = vmatpush1.bf16.msra.mxu1 %v2922_v36  ;;  %v3013_v35 = vld [vmem:[%s4108_s1 + $0x648] ss:$16 sps:$4 sm:$0xff]  }
  0x90   :  { %1729 = vmatprep.subr.bf16.mxu0 %v2927_v37  ;;  %1893 = vmatprep.subr.bf16.mxu1 %v2930_v38 }
  0x93   :  { %1730 = vmatpush1.bf16.msra.mxu0 %v2925_v39  ;;  %1894 = vmatpush1.bf16.msra.mxu1 %v2928_v40 }
  0x94   :  { %1731 = vmatprep.subr.bf16.mxu0 %v2933_v41  ;;  %1895 = vmatprep.subr.bf16.mxu1 %v2936_v43 }
  0x97   :  { %1732 = vmatpush1.bf16.msra.mxu0 %v2931_v44  ;;  %1896 = vmatpush1.bf16.msra.mxu1 %v2934_v45 }
  0x98   :  { %1733 = vmatprep.subr.bf16.mxu0 %v2939_v46  ;;  %1897 = vmatprep.subr.bf16.mxu1 %v2942_v47 }
  0x9b   :  { %1734 = vmatpush1.bf16.msra.mxu0 %v2937_v48  ;;  %1898 = vmatpush1.bf16.msra.mxu1 %v2940_v49 }
  0x9c   :  { %1735 = vmatprep.subr.bf16.mxu0 %v2945_v50  ;;  %1899 = vmatprep.subr.bf16.mxu1 %v2948_v51 }
  0x9f   :  { %1736 = vmatpush1.bf16.msra.mxu0 %v2943_v52  ;;  %1900 = vmatpush1.bf16.msra.mxu1 %v2946_v53 }
  0xa0   :  { %1737 = vmatprep.subr.bf16.mxu0 %v2951_v54  ;;  %1901 = vmatprep.subr.bf16.mxu1 %v2954_v55 }
  0xa3   :  { %1738 = vmatpush1.bf16.msra.mxu0 %v2949_v56  ;;  %1902 = vmatpush1.bf16.msra.mxu1 %v2952_v57 }
  0xa4   :  { %1739 = vmatprep.subr.bf16.mxu0 %v2957_v58  ;;  %1903 = vmatprep.subr.bf16.mxu1 %v2960_v59 }
  0xa7   :  { %1740 = vmatpush1.bf16.msra.mxu0 %v2955_v60  ;;  %1904 = vmatpush1.bf16.msra.mxu1 %v2958_v61 }
  0xa8   :  { %1741 = vmatprep.subr.bf16.mxu0 %v2963_v62  ;;  %1905 = vmatprep.subr.bf16.mxu1 %v2966_v63 }
  0xab   :  { %1742 = vmatpush1.bf16.msra.mxu0 %v2961_v0  ;;  %1906 = vmatpush1.bf16.msra.mxu1 %v2964_v1 }
  0xac   :  { %1743 = vmatprep.subr.bf16.mxu0 %v2969_v2  ;;  %1907 = vmatprep.subr.bf16.mxu1 %v2972_v3 }
  0xaf   :  { %1744 = vmatpush1.bf16.msra.mxu0 %v2967_v4  ;;  %1908 = vmatpush1.bf16.msra.mxu1 %v2970_v5 }
  0xb0   :  { %1745 = vmatprep.subr.bf16.mxu0 %v2975_v6  ;;  %1909 = vmatprep.subr.bf16.mxu1 %v2978_v7 }
  0xb3   :  { %1746 = vmatpush1.bf16.msra.mxu0 %v2973_v8  ;;  %1910 = vmatpush1.bf16.msra.mxu1 %v2976_v9 }
  0xb4   :  { %1747 = vmatprep.subr.bf16.mxu0 %v2981_v10  ;;  %1911 = vmatprep.subr.bf16.mxu1 %v2984_v11 }
  0xb7   :  { %1748 = vmatpush1.bf16.msra.mxu0 %v2979_v12  ;;  %1912 = vmatpush1.bf16.msra.mxu1 %v2982_v13 }
  0xb8   :  { %1749 = vmatprep.subr.bf16.mxu0 %v2987_v14  ;;  %1913 = vmatprep.subr.bf16.mxu1 %v2990_v16 }
  0xbb   :  { %1750 = vmatpush1.bf16.msra.mxu0 %v2985_v17  ;;  %1914 = vmatpush1.bf16.msra.mxu1 %v2988_v18 }
  0xbc   :  { %1751 = vmatprep.subr.bf16.mxu0 %v2993_v19  ;;  %1915 = vmatprep.subr.bf16.mxu1 %v2996_v22 }
  0xbf   :  { %1752 = vmatpush1.bf16.msra.mxu0 %v2991_v23  ;;  %1916 = vmatpush1.bf16.msra.mxu1 %v2994_v24 }
  0xc0   :  { %1762 = vmatprep.subr.bf16.mxu0 %v3000_v25  ;;  %1926 = vmatprep.subr.bf16.mxu1 %v3003_v26 }
  0xc2   :  { %1754 = vmatmul.mubr.bf16.vlgmr.msra.gmra.mrb[0].mxu0 %v3414_v21  ;;  %1918 = vmatmul.mubr.bf16.vlgmr.msra.gmra.mrb[0].mxu1 %v3414_v21 }
  0xc3   :  { %1763 = vmatpush1.bf16.msra.mxu0 %v2998_v27  ;;  %1927 = vmatpush1.bf16.msra.mxu1 %v3001_v15 }
  0xc4   :  { %1764 = vmatprep.subr.bf16.mxu0 %v3006_v28  ;;  %1928 = vmatprep.subr.bf16.mxu1 %v3009_v29 }
  0xc5   :  { %1794 = vmatprep.mubr.bf16.mxu0 %v350_v32  ;;  %1958 = vmatprep.mubr.bf16.mxu1 %v350_v32 }
  0xc7   :  { %1765 = vmatpush1.bf16.msra.mxu0 %v3004_v30  ;;  %1929 = vmatpush1.bf16.msra.mxu1 %v3007_v31 }
  0xc8   :  { %10 = vsyncpa [#allocation3], 0  ;;  %1766 = vmatprep.subr.bf16.mxu0 %v3012_v33  ;;  %1930 = vmatprep.subr.bf16.mxu1 %v3015_v34  ;;  %v3018_v36 = vld [vmem:[%s4108_s1 + $0x664] ss:$16 sps:$4 sm:$0xff]   ;;  %v3021_v37 = vld [vmem:[%s4108_s1 + $0x66c] ss:$16 sps:$4 sm:$0xff]   ;;  %v348_v29 = vcombine.high %v3414_v21, %v3414_v21 }
  0xc9   :  { %v3016_v38 = vld [vmem:[%s4108_s1 + $0x660] ss:$16 sps:$4 sm:$0xff]   ;;  %v3019_v39 = vld [vmem:[%s4108_s1 + $0x668] ss:$16 sps:$4 sm:$0xff]   ;;  %v3024_v40 = vld [vmem:[%s4108_s1 + $0x684] ss:$16 sps:$4 sm:$0xff]  }
  0xca   :  { %v3027_v41 = vld [vmem:[%s4108_s1 + $0x68c] ss:$16 sps:$4 sm:$0xff]   ;;  %v3022_v43 = vld [vmem:[%s4108_s1 + $0x680] ss:$16 sps:$4 sm:$0xff]   ;;  %v3025_v44 = vld [vmem:[%s4108_s1 + $0x688] ss:$16 sps:$4 sm:$0xff]  }
  0xcb   :  { %1767 = vmatpush1.bf16.msra.mxu0 %v3010_v20  ;;  %1931 = vmatpush1.bf16.msra.mxu1 %v3013_v35  ;;  %v3030_v45 = vld [vmem:[%s4108_s1 + $0x6a4] ss:$16 sps:$4 sm:$0xff]   ;;  %v3033_v46 = vld [vmem:[%s4108_s1 + $0x6ac] ss:$16 sps:$4 sm:$0xff]   ;;  %v3028_v47 = vld [vmem:[%s4108_s1 + $0x6a0] ss:$16 sps:$4 sm:$0xff]  }
  0xcc   :  { %1768 = vmatprep.subr.bf16.mxu0 %v3018_v36  ;;  %1932 = vmatprep.subr.bf16.mxu1 %v3021_v37  ;;  %v3031_v48 = vld [vmem:[%s4108_s1 + $0x6a8] ss:$16 sps:$4 sm:$0xff]   ;;  %v3036_v49 = vld [vmem:[%s4108_s1 + $0x6c4] ss:$16 sps:$4 sm:$0xff]   ;;  %v3039_v50 = vld [vmem:[%s4108_s1 + $0x6cc] ss:$16 sps:$4 sm:$0xff]  }
  0xcd   :  { %v3034_v51 = vld [vmem:[%s4108_s1 + $0x6c0] ss:$16 sps:$4 sm:$0xff]   ;;  %v3037_v52 = vld [vmem:[%s4108_s1 + $0x6c8] ss:$16 sps:$4 sm:$0xff]   ;;  %v3042_v53 = vld [vmem:[%s4108_s1 + $0x6e4] ss:$16 sps:$4 sm:$0xff]  }
  0xce   :  { %v3045_v54 = vld [vmem:[%s4108_s1 + $0x6ec] ss:$16 sps:$4 sm:$0xff]   ;;  %v3040_v55 = vld [vmem:[%s4108_s1 + $0x6e0] ss:$16 sps:$4 sm:$0xff]   ;;  %v3043_v56 = vld [vmem:[%s4108_s1 + $0x6e8] ss:$16 sps:$4 sm:$0xff]  }
  0xcf   :  { %1769 = vmatpush1.bf16.msra.mxu0 %v3016_v38  ;;  %1933 = vmatpush1.bf16.msra.mxu1 %v3019_v39  ;;  %v3048_v57 = vld [vmem:[%s4108_s1 + $0x704] ss:$16 sps:$4 sm:$0xff]   ;;  %v3051_v58 = vld [vmem:[%s4108_s1 + $0x70c] ss:$16 sps:$4 sm:$0xff]   ;;  %v3046_v59 = vld [vmem:[%s4108_s1 + $0x700] ss:$16 sps:$4 sm:$0xff]  }
  0xd0   :  { %1770 = vmatprep.subr.bf16.mxu0 %v3024_v40  ;;  %1934 = vmatprep.subr.bf16.mxu1 %v3027_v41  ;;  %v3049_v60 = vld [vmem:[%s4108_s1 + $0x708] ss:$16 sps:$4 sm:$0xff]   ;;  %v3054_v61 = vld [vmem:[%s4108_s1 + $0x724] ss:$16 sps:$4 sm:$0xff]   ;;  %v3057_v62 = vld [vmem:[%s4108_s1 + $0x72c] ss:$16 sps:$4 sm:$0xff]  }
  0xd1   :  { %v3052_v63 = vld [vmem:[%s4108_s1 + $0x720] ss:$16 sps:$4 sm:$0xff]   ;;  %v3055_v0 = vld [vmem:[%s4108_s1 + $0x728] ss:$16 sps:$4 sm:$0xff]   ;;  %v3060_v1 = vld [vmem:[%s4108_s1 + $0x744] ss:$16 sps:$4 sm:$0xff]  }
  0xd2   :  { %v3063_v2 = vld [vmem:[%s4108_s1 + $0x74c] ss:$16 sps:$4 sm:$0xff]   ;;  %v3058_v3 = vld [vmem:[%s4108_s1 + $0x740] ss:$16 sps:$4 sm:$0xff]   ;;  %v3061_v4 = vld [vmem:[%s4108_s1 + $0x748] ss:$16 sps:$4 sm:$0xff]  }
  0xd3   :  { %1771 = vmatpush1.bf16.msra.mxu0 %v3022_v43  ;;  %1935 = vmatpush1.bf16.msra.mxu1 %v3025_v44  ;;  %v3066_v5 = vld [vmem:[%s4108_s1 + $0x764] ss:$16 sps:$4 sm:$0xff]   ;;  %v3069_v6 = vld [vmem:[%s4108_s1 + $0x76c] ss:$16 sps:$4 sm:$0xff]   ;;  %v3064_v7 = vld [vmem:[%s4108_s1 + $0x760] ss:$16 sps:$4 sm:$0xff]  }
  0xd4   :  { %1772 = vmatprep.subr.bf16.mxu0 %v3030_v45  ;;  %1936 = vmatprep.subr.bf16.mxu1 %v3033_v46  ;;  %v3067_v8 = vld [vmem:[%s4108_s1 + $0x768] ss:$16 sps:$4 sm:$0xff]   ;;  %v3072_v9 = vld [vmem:[%s4108_s1 + $0x784] ss:$16 sps:$4 sm:$0xff]   ;;  %v3075_v10 = vld [vmem:[%s4108_s1 + $0x78c] ss:$16 sps:$4 sm:$0xff]  }
  0xd5   :  { %v3070_v11 = vld [vmem:[%s4108_s1 + $0x780] ss:$16 sps:$4 sm:$0xff]   ;;  %v3073_v12 = vld [vmem:[%s4108_s1 + $0x788] ss:$16 sps:$4 sm:$0xff]   ;;  %v3078_v13 = vld [vmem:[%s4108_s1 + $0x7a4] ss:$16 sps:$4 sm:$0xff]  }
  0xd6   :  { %v3081_v14 = vld [vmem:[%s4108_s1 + $0x7ac] ss:$16 sps:$4 sm:$0xff]   ;;  %v3076_v16 = vld [vmem:[%s4108_s1 + $0x7a0] ss:$16 sps:$4 sm:$0xff]   ;;  %v3079_v17 = vld [vmem:[%s4108_s1 + $0x7a8] ss:$16 sps:$4 sm:$0xff]  }
  0xd7   :  { %1773 = vmatpush1.bf16.msra.mxu0 %v3028_v47  ;;  %1937 = vmatpush1.bf16.msra.mxu1 %v3031_v48  ;;  %v3084_v18 = vld [vmem:[%s4108_s1 + $0x7c4] ss:$16 sps:$4 sm:$0xff]   ;;  %v3087_v19 = vld [vmem:[%s4108_s1 + $0x7cc] ss:$16 sps:$4 sm:$0xff]   ;;  %v3082_v22 = vld [vmem:[%s4108_s1 + $0x7c0] ss:$16 sps:$4 sm:$0xff]  }
  0xd8   :  { %1774 = vmatprep.subr.bf16.mxu0 %v3036_v49  ;;  %1938 = vmatprep.subr.bf16.mxu1 %v3039_v50  ;;  %v3085_v23 = vld [vmem:[%s4108_s1 + $0x7c8] ss:$16 sps:$4 sm:$0xff]   ;;  %v3090_v24 = vld [vmem:[%s4108_s1 + $0x7e4] ss:$16 sps:$4 sm:$0xff]   ;;  %v3093_v25 = vld [vmem:[%s4108_s1 + $0x7ec] ss:$16 sps:$4 sm:$0xff]  }
  0xd9   :  { %v3088_v26 = vld [vmem:[%s4108_s1 + $0x7e0] ss:$16 sps:$4 sm:$0xff]   ;;  %v3091_v27 = vld [vmem:[%s4108_s1 + $0x7e8] ss:$16 sps:$4 sm:$0xff]   ;;  %vm2318_vm0 = vcmask 74752  }
  0xda   :  { %v3094_v15 = vld [vmem:[%s4110_s3 + $0x40] sm:$0xff]   ;;  %v3098_v32 = vld [vmem:[%s4110_s3 + $0x48] sm:$0xff]   ;;  %v3102_v20 = vld [vmem:[%s4110_s3 + $0x50] sm:$0xff]  }
  0xdb   :  { %1775 = vmatpush1.bf16.msra.mxu0 %v3034_v51  ;;  %1939 = vmatpush1.bf16.msra.mxu1 %v3037_v52  ;;  %v3095_v28 = vld [vmem:[%s4110_s3 + $0xc0] sm:$0xff]   ;;  %v3099_v21 = vld [vmem:[%s4110_s3 + $0xc8] sm:$0xff]   ;;  %v3103_v35 = vld [vmem:[%s4110_s3 + $0xd0] sm:$0xff]  }
  0xdc   :  { %1776 = vmatprep.subr.bf16.mxu0 %v3042_v53  ;;  %1940 = vmatprep.subr.bf16.mxu1 %v3045_v54  ;;  %v3096_v30 = vld [vmem:[%s4110_s3] sm:$0xff]   ;;  %v3100_v33 = vld [vmem:[%s4110_s3 + $0x8] sm:$0xff]   ;;  %v3104_v36 = vld [vmem:[%s4110_s3 + $0x10] sm:$0xff]  }
  0xdd   :  { %v3097_v31 = vld [vmem:[%s4110_s3 + $0x80] sm:$0xff]   ;;  %v3101_v34 = vld [vmem:[%s4110_s3 + $0x88] sm:$0xff]   ;;  %v3105_v37 = vld [vmem:[%s4110_s3 + $0x90] sm:$0xff]  }
  0xde   :  { %v3106_v38 = vld [vmem:[%s4110_s3 + $0x58] sm:$0xff]   ;;  %v3110_v43 = vld [vmem:[%s4110_s3 + $0x60] sm:$0xff]   ;;  %v3114_v47 = vld [vmem:[%s4110_s3 + $0x68] sm:$0xff]  }
  0xdf   :  { %1777 = vmatpush1.bf16.msra.mxu0 %v3040_v55  ;;  %1941 = vmatpush1.bf16.msra.mxu1 %v3043_v56  ;;  %v3107_v39 = vld [vmem:[%s4110_s3 + $0xd8] sm:$0xff]   ;;  %v3111_v44 = vld [vmem:[%s4110_s3 + $0xe0] sm:$0xff]   ;;  %v3115_v48 = vld [vmem:[%s4110_s3 + $0xe8] sm:$0xff]  }
  0xe0   :  { %1778 = vmatprep.subr.bf16.mxu0 %v3048_v57  ;;  %1942 = vmatprep.subr.bf16.mxu1 %v3051_v58  ;;  %v3108_v40 = vld [vmem:[%s4110_s3 + $0x18] sm:$0xff]   ;;  %v3112_v45 = vld [vmem:[%s4110_s3 + $0x20] sm:$0xff]   ;;  %v3116_v49 = vld [vmem:[%s4110_s3 + $0x28] sm:$0xff]  }
  0xe1   :  { %v3109_v41 = vld [vmem:[%s4110_s3 + $0x98] sm:$0xff]   ;;  %v3113_v46 = vld [vmem:[%s4110_s3 + $0xa0] sm:$0xff]   ;;  %v3117_v50 = vld [vmem:[%s4110_s3 + $0xa8] sm:$0xff]  }
  0xe2   :  { %v3118_v51 = vld [vmem:[%s4110_s3 + $0x70] sm:$0xff]   ;;  %v3122_v55 = vld [vmem:[%s4110_s3 + $0x78] sm:$0xff]  }
  0xe3   :  { %1779 = vmatpush1.bf16.msra.mxu0 %v3046_v59  ;;  %1943 = vmatpush1.bf16.msra.mxu1 %v3049_v60  ;;  %v3119_v52 = vld [vmem:[%s4110_s3 + $0xf0] sm:$0xff]   ;;  %v3123_v56 = vld [vmem:[%s4110_s3 + $0xf8] sm:$0xff]   ;;  %v283_v59 = vsub.s32 0, %v3303_v42  ;;  %v291_v60 = vsub.s32 2, %v3303_v42 }
  0xe4   :  { %1780 = vmatprep.subr.bf16.mxu0 %v3054_v61  ;;  %1944 = vmatprep.subr.bf16.mxu1 %v3057_v62  ;;  %v3120_v53 = vld [vmem:[%s4110_s3 + $0x30] sm:$0xff]   ;;  %v3124_v57 = vld [vmem:[%s4110_s3 + $0x38] sm:$0xff]   ;;  %v279_v61 = vld [vmem:[%s4109_s2] sm:$0xf]  ;;  %v287_v62 = vsub.s32 1, %v3303_v42 }
  0xe5   :  { %v3121_v54 = vld [vmem:[%s4110_s3 + $0xb0] sm:$0xff]   ;;  %v3125_v58 = vld [vmem:[%s4110_s3 + $0xb8] sm:$0xff]  }
  0xe7   :  { %1781 = vmatpush1.bf16.msra.mxu0 %v3052_v63  ;;  %1945 = vmatpush1.bf16.msra.mxu1 %v3055_v0  ;;  %v295_v63 = vsub.s32 3, %v3303_v42  ;;  %v284_v0 = vrot.slane %v279_v61, %v283_v59 }
  0xe8   :  { %1782 = vmatprep.subr.bf16.mxu0 %v3060_v1  ;;  %1946 = vmatprep.subr.bf16.mxu1 %v3063_v2  ;;  %v292_v1 = vrot.slane %v279_v61, %v291_v60  ;;  %v288_v2 = vrot.slane %v279_v61, %v287_v62 }
  0xeb   :  { %1783 = vmatpush1.bf16.msra.mxu0 %v3058_v3  ;;  %1947 = vmatpush1.bf16.msra.mxu1 %v3061_v4  ;;  %v296_v3 = vrot.slane %v279_v61, %v295_v63 }
  0xec   :  { %1784 = vmatprep.subr.bf16.mxu0 %v3066_v5  ;;  %1948 = vmatprep.subr.bf16.mxu1 %v3069_v6 }
  0xef   :  { %1785 = vmatpush1.bf16.msra.mxu0 %v3064_v7  ;;  %1949 = vmatpush1.bf16.msra.mxu1 %v3067_v8 }
  0xf0   :  { %1786 = vmatprep.subr.bf16.mxu0 %v3072_v9  ;;  %1950 = vmatprep.subr.bf16.mxu1 %v3075_v10 }
  0xf3   :  { %1787 = vmatpush1.bf16.msra.mxu0 %v3070_v11  ;;  %1951 = vmatpush1.bf16.msra.mxu1 %v3073_v12 }
  0xf4   :  { %1788 = vmatprep.subr.bf16.mxu0 %v3078_v13  ;;  %1952 = vmatprep.subr.bf16.mxu1 %v3081_v14 }
  0xf7   :  { %1789 = vmatpush1.bf16.msra.mxu0 %v3076_v16  ;;  %1953 = vmatpush1.bf16.msra.mxu1 %v3079_v17 }
  0xf8   :  { %1790 = vmatprep.subr.bf16.mxu0 %v3084_v18  ;;  %1954 = vmatprep.subr.bf16.mxu1 %v3087_v19 }
  0xfb   :  { %1791 = vmatpush1.bf16.msra.mxu0 %v3082_v22  ;;  %1955 = vmatpush1.bf16.msra.mxu1 %v3085_v23 }
  0xfc   :  { %1792 = vmatprep.subr.bf16.mxu0 %v3090_v24  ;;  %1956 = vmatprep.subr.bf16.mxu1 %v3093_v25 }
  0xff   :  { %1793 = vmatpush1.bf16.msra.mxu0 %v3088_v26  ;;  %1957 = vmatpush1.bf16.msra.mxu1 %v3091_v27 }
 0x100   :  { %2635 = vmatprep.subr.bf16.mxu0 %v3094_v15  ;;  %2657 = vmatprep.subr.bf16.mxu1 %v3095_v28  ;;  %v2602_v15 = vld [vmem:[%s4111_s4] ss:$0 sm:$0xff]  ;;  %s3155_s4 = smov [#allocation2]  }
 0x101   :  { %s2338_s26 = sshll.u32 %s3155_s4, 4  ;;  %s2339_s26 = int_to_ptr.vmem [resolvable:$true] %s2338_s26 }
 0x102   :  { %1795 = vmatmul.mubr.bf16.vlgmr.msra.gmra.mrb[0].mxu0 %v348_v29  ;;  %1959 = vmatmul.mubr.bf16.vlgmr.msra.gmra.mrb[0].mxu1 %v348_v29  ;;  %s3130_s27 = scalar_lea.vmem %s2339_s26, 32  ;;  %p3135_p1 = scmp.lt.s32.totalorder %s2339_s26, %s2339_s26 }
 0x103   :  { %2636 = vmatpush3.bf16.msra.mxu0 %v3096_v30  ;;  %2658 = vmatpush3.bf16.msra.mxu1 %v3097_v31  ;;  %p3131_p0 = scmp.ne.s32.totalorder %s2339_s26, %s3130_s27  ;;  %p3136_p2 = scmp.lt.s32.totalorder %s3130_s27, %s3130_s27 }
 0x104   :  { %2637 = vmatprep.subr.bf16.mxu0 %v3098_v32  ;;  %2659 = vmatprep.subr.bf16.mxu1 %v3099_v21 }
 0x105   :  { %p3137_p3 = por %p3136_p2, %p3135_p1 }
 0x107   :  { %2638 = vmatpush3.bf16.msra.mxu0 %v3100_v33  ;;  %2660 = vmatpush3.bf16.msra.mxu1 %v3101_v34  ;;  %p3138_p4 = pnand %p3137_p3, %p3131_p0 }
 0x108   :  { %2639 = vmatprep.subr.bf16.mxu0 %v3102_v20  ;;  %2661 = vmatprep.subr.bf16.mxu1 %v3103_v35 }
 0x10b   :  { %2640 = vmatpush3.bf16.msra.mxu0 %v3104_v36  ;;  %2662 = vmatpush3.bf16.msra.mxu1 %v3105_v37 }
 0x10c   :  { %2641 = vmatprep.subr.bf16.mxu0 %v3106_v38  ;;  %2663 = vmatprep.subr.bf16.mxu1 %v3107_v39 }
 0x10f   :  { %2642 = vmatpush3.bf16.msra.mxu0 %v3108_v40  ;;  %2664 = vmatpush3.bf16.msra.mxu1 %v3109_v41 }
 0x110   :  { %2643 = vmatprep.subr.bf16.mxu0 %v3110_v43  ;;  %2665 = vmatprep.subr.bf16.mxu1 %v3111_v44 }
 0x113   :  { %2644 = vmatpush3.bf16.msra.mxu0 %v3112_v45  ;;  %2666 = vmatpush3.bf16.msra.mxu1 %v3113_v46 }
 0x114   :  { %2645 = vmatprep.subr.bf16.mxu0 %v3114_v47  ;;  %2667 = vmatprep.subr.bf16.mxu1 %v3115_v48 }
 0x117   :  { %2646 = vmatpush3.bf16.msra.mxu0 %v3116_v49  ;;  %2668 = vmatpush3.bf16.msra.mxu1 %v3117_v50 }
 0x118   :  { %2647 = vmatprep.subr.bf16.mxu0 %v3118_v51  ;;  %2669 = vmatprep.subr.bf16.mxu1 %v3119_v52 }
 0x11b   :  { %2648 = vmatpush3.bf16.msra.mxu0 %v3120_v53  ;;  %2670 = vmatpush3.bf16.msra.mxu1 %v3121_v54 }
 0x11c   :  { %2649 = vmatprep.subr.bf16.mxu0 %v3122_v55  ;;  %2671 = vmatprep.subr.bf16.mxu1 %v3123_v56 }
 0x11f   :  { %2650 = vmatpush3.bf16.msra.mxu0 %v3124_v57  ;;  %2672 = vmatpush3.bf16.msra.mxu1 %v3125_v58 }
 0x1d5   :  { %v1796_v4 = vpop.f32.mrb[0].mxu0  ;;  %v1960_v5 = vpop.f32.mrb[0].mxu1 }
 0x1d6   :  { %v2679_v6 = vadd.f32 %v1796_v4, %v284_v0  ;;  %v2681_v7 = vadd.f32 %v1960_v5, %v292_v1  ;;  %v1798_v8 = vpop.f32.mrb[1].mxu0  ;;  %v1962_v9 = vpop.f32.mrb[1].mxu1 }
 0x1d7   :  { %v2680_v10 = vadd.f32 %v1798_v8, %v288_v2  ;;  %v2682_v11 = vadd.f32 %v1962_v9, %v296_v3  ;;  %v1800_v12 = vpop.f32.mrb[2].mxu0  ;;  %v1964_v13 = vpop.f32.mrb[2].mxu1 }
 0x1d8   :  { %v1967_v14 = vmax.f32 %v2679_v6, 0.0  ;;  %v1969_v16 = vmax.f32 %v2681_v7, 0.0  ;;  %v1801_v17 = vpop.f32.mrb[3].mxu0  ;;  %v1965_v18 = vpop.f32.mrb[3].mxu1 }
 0x1d9   :  { %v1968_v19 = vmax.f32 %v2680_v10, 0.0  ;;  %v1970_v42 = vmax.f32 %v2682_v11, 0.0 }
 0x1da   :  { %v1971_v24 = vpack.c.bf16 %v1967_v14, %v1967_v14  ;;  %v1973_v25 = vpack.c.bf16 %v1969_v16, %v1969_v16 }
 0x1db   :  { %v1972_v22 = vpack.c.bf16 %v1968_v19, %v1968_v19  ;;  %v1974_v23 = vpack.c.bf16 %v1970_v42, %v1970_v42 }
 0x1dd   :  { %2270 = vmatprep.mubr.bf16.mxu0 %v1972_v22  ;;  %2310 = vmatprep.mubr.bf16.mxu1 %v1974_v23 }
 0x1de   :  { %2271 = vmatmul.mubr.bf16.vlgmr.msra.gmra.mrb[4].mxu0 %v1971_v24  ;;  %2311 = vmatmul.mubr.bf16.vlgmr.msra.gmra.mrb[4].mxu1 %v1973_v25 }
 0x2b1   :  { %v2651_v26 = vpop.f32.mrb[4].mxu0  ;;  %v2673_v27 = vpop.f32.mrb[4].mxu1 }
 0x2b2   :  { %v2652_v28 = vpop.f32.mrb[5].mxu0  ;;  %v2674_v29 = vpop.f32.mrb[5].mxu1 }
 0x2b3   :  { %v2653_v30 = vadd.f32 %v2652_v28, %v2651_v26  ;;  %v2675_v31 = vadd.f32 %v2674_v29, %v2673_v27  ;;  %v2654_v32 = vpop.f32.mrb[6].mxu0  ;;  %v2676_v21 = vpop.f32.mrb[6].mxu1 }
 0x2b4   :  { %v2655_v33 = vpop.f32.mrb[7].mxu0  ;;  %v2677_v34 = vpop.f32.mrb[7].mxu1 }
 0x2b5   :  { %v2273_v20 = vadd.f32 %v2653_v30, %v2602_v15 }
 0x2b7   :  { %v2313_v35 = vadd.f32 %v2675_v31, %v2273_v20 }
 0x2b9   :  { %v2319_v36 = vsel %vm2318_vm0, %v2313_v35, -inf }
 0x2ba   :  { %2320 = vmax.xlane.f32.xlu0 %v2319_v36 }
 0x347   :  { %v2321_v37 = vpop.xlane.xlu0 %2320 }
 0x348   :  { %v2322_v38 = vsub.f32 %v2313_v35, %v2321_v37 }
 0x34a   :  { %v2323_v39 = vmul.f32 1.442695, %v2322_v38 }
 0x34c   :  { %3126 = vpow2.f32 %v2323_v39 }
 0x356   :  { %v3127_v40 = vpop.eup %3126 }
 0x357   :  { %v2325_v41 = vsel %vm2318_vm0, %v3127_v40, 0.0 }
 0x358   :  { %2326 = vadd.xlane.f32.xlu0 %v2325_v41 }
 0x3e5   :  { %v2327_v43 = vpop.xlane.xlu0 %2326 }
 0x3e6   :  { %3128 = vlog2.f32 %v2327_v43 }
 0x3f0   :  { %v3129_v44 = vpop.eup %3128 }
 0x3f1   :  { %v2329_v45 = vmul.f32 0.6931472, %v3129_v44 }
 0x3f3   :  { %v2330_v46 = vsub.f32 %v2322_v38, %v2329_v45 }
 0x3f5   :  { %2331 = vst.msk [vmem:[#allocation2] sm:$0x3] %vm2318_vm0, %v2330_v46 }
 0x3f6   :  { %3141 = shalt.err (!%p3138_p4)
}
 0x3f7   :  { %s3142_s30 = scalar_lea.hbm %s4112_s5, 32 }
 0x3f8   :  { %p3143_p5 = scmp.ne.s32.totalorder %s4112_s5, %s3142_s30  ;;  %p3146_p6 = scmp.lt.u32.totalorder %s3142_s30, %s4112_s5 }
 0x3fa   :  { %p3148_p7 = pnand %p3146_p6, %p3143_p5 }
 0x3fc   :  { %3151 = shalt.err (!%p3148_p7)
}
 0x3fd   :  { %2341 = dma.vmem_to_hbm [thread:$0]  %s2339_s26, 32, %s4112_s5, [#allocation3]  }
 0x3fe   :  { %3152 = dma.done.wait [#allocation3], 32  }
 0x3ff   :  { %3153 = vsyncadd [#allocation3], 4294967264 }
 0x400   :  { %2345 = vsyncpa [#allocation3], 1 }

</bundles_post_ra>
